<compile_context>
chip_gen: v7x
topology: tpu7x:2x2x1
jax: 0.10.0
libtpu: 0.0.40
codegen_flags: <defaults>
</compile_context>

<pallas_src>
import jax
import jax.numpy as jnp
from jax.experimental import pallas as pl
from jax.experimental.pallas import tpu as pltpu

HIDDEN_SIZE = 128
INPUT_SIZE = 28
NUM_CLASSES = 10
NUM_LAYERS = 2          # hard-wired as two explicit layers in the kernel
OUT_PAD = 128           # lane-dense padded FC output width
SUBLANE = 8             # f32 sublane granule for batch padding


def _lstm_fc_kernel(gx0_ref, whh0_ref, wih1_ref, b1_ref, whh1_ref,
                    fcw_ref, fcb_ref, out_ref, h0seq_ref, gx1_ref):
    """Layer-wavefront 2-layer LSTM recurrence + final Linear.

    gx0_ref:   (T, B, 4H)   precomputed layer-0 input gates (b0 folded in)
    whh0_ref:  (H, 4H)      layer-0 recurrent weights (transposed)
    wih1_ref:  (H, 4H)      layer-1 input weights (transposed)
    b1_ref:    (1, 4H)      layer-1 fused bias (b_ih1 + b_hh1)
    whh1_ref:  (H, 4H)      layer-1 recurrent weights (transposed)
    fcw_ref:   (H, OUT_PAD) lane-padded FC weights (transposed)
    fcb_ref:   (1, OUT_PAD) lane-padded FC bias
    out_ref:   (B, OUT_PAD)
    h0seq_ref: (T, B, H)    VMEM scratch - layer-0 hidden sequence
    gx1_ref:   (T, B, 4H)   VMEM scratch - layer-1 input gates (bias folded)
    """
    T, B, G = gx0_ref.shape
    H = G // 4

    def gates_to_hc(gates, c):
        # PyTorch LSTM gate order: [i | f | g | o], each H wide (lane-aligned).
        i = jax.nn.sigmoid(gates[:, 0 * H:1 * H])
        f = jax.nn.sigmoid(gates[:, 1 * H:2 * H])
        g = jnp.tanh(gates[:, 2 * H:3 * H])
        o = jax.nn.sigmoid(gates[:, 3 * H:4 * H])
        c_new = f * c + i * g
        h_new = o * jnp.tanh(c_new)
        return h_new, c_new

    zeros = jnp.zeros((B, H), jnp.float32)

    # ---- Phase 1: layer-0 recurrence (serial path: one K=128 matmul per step) ----
    h0, c0 = zeros, zeros
    for t in range(T):
        g0 = gx0_ref[t] + jnp.dot(h0, whh0_ref[...],
                                  preferred_element_type=jnp.float32)
        h0, c0 = gates_to_hc(g0, c0)
        h0seq_ref[t] = h0

    # ---- Phase 2: batched layer-1 input projection (one MXU-efficient matmul) ----
    # (T*B, H) @ (H, 4H) + b1 -> bias folded here, removed from the serial loop.
    h0_all = h0seq_ref[...].reshape(T * B, H)
    gx1 = jnp.dot(h0_all, wih1_ref[...],
                  preferred_element_type=jnp.float32) + b1_ref[...]
    gx1_ref[...] = gx1.reshape(T, B, G)

    # ---- Phase 3: layer-1 recurrence (serial path: one K=128 matmul per step) ----
    h1, c1 = zeros, zeros
    for t in range(T):
        g1 = gx1_ref[t] + jnp.dot(h1, whh1_ref[...],
                                  preferred_element_type=jnp.float32)
        h1, c1 = gates_to_hc(g1, c1)

    # ---- fc(out[:, -1, :]) == last hidden of the top layer; lane-dense store ----
    out_ref[...] = (jnp.dot(h1, fcw_ref[...], preferred_element_type=jnp.float32)
                    + fcb_ref[...])


def init_params(key, input_size=INPUT_SIZE, hidden_size=HIDDEN_SIZE,
                num_classes=NUM_CLASSES):
    """Deterministic synthetic parameters with PyTorch LSTM/Linear shapes."""
    H = hidden_size
    k = 1.0 / jnp.sqrt(jnp.float32(H))
    keys = jax.random.split(key, 10)
    u = lambda kk, shape: jax.random.uniform(kk, shape, jnp.float32, -k, k)
    return {
        # layer 0
        'w_ih0': u(keys[0], (4 * H, input_size)),
        'w_hh0': u(keys[1], (4 * H, H)),
        'b_ih0': u(keys[2], (4 * H,)),
        'b_hh0': u(keys[3], (4 * H,)),
        # layer 1
        'w_ih1': u(keys[4], (4 * H, H)),
        'w_hh1': u(keys[5], (4 * H, H)),
        'b_ih1': u(keys[6], (4 * H,)),
        'b_hh1': u(keys[7], (4 * H,)),
        # fc
        'fc_w': u(keys[8], (num_classes, H)),
        'fc_b': u(keys[9], (num_classes,)),
    }


def rnn_forward(x, params):
    """x: (batch, seq, input) float32, batch_first like the PyTorch module."""
    B, T, I = x.shape
    H = params['w_hh0'].shape[1]
    C = params['fc_w'].shape[0]
    G = 4 * H

    # Pad batch to the f32 sublane granule so every (B, *) tile is a full (8,128)
    # vreg (unmasked loads/stores, no wasted VALU/EUP lanes).  Padded rows produce
    # finite garbage and are sliced off below.
    B_pad = max(SUBLANE, ((B + SUBLANE - 1) // SUBLANE) * SUBLANE)
    if B_pad != B:
        x = jnp.pad(x, ((0, B_pad - B), (0, 0), (0, 0)))

    # Hoisted layer-0 input projection: one big batched matmul, bias folded,
    # time-major output (transpose folded into the einsum output layout).
    # TODO(synk): at large T*B on v5e, compute this per T-block inside the kernel to
    # avoid the ~18x HBM inflation of materializing gx0.
    b0 = params['b_ih0'] + params['b_hh0']
    gx0 = jnp.einsum('bti,gi->tbg', x, params['w_ih0']) + b0          # (T, B_pad, 4H)

    whh0 = params['w_hh0'].T                                          # (H, 4H)
    wih1 = params['w_ih1'].T                                          # (H, 4H)
    whh1 = params['w_hh1'].T                                          # (H, 4H)
    b1 = (params['b_ih1'] + params['b_hh1']).reshape(1, G)

    # Lane-dense FC: pad to 128 output lanes (unmasked stores), slice afterwards.
    fcw_pad = jnp.zeros((H, OUT_PAD), jnp.float32).at[:, :C].set(params['fc_w'].T)
    fcb_pad = jnp.zeros((1, OUT_PAD), jnp.float32).at[:, :C].set(params['fc_b'])

    vmem = pl.BlockSpec(memory_space=pltpu.MemorySpace.VMEM)
    out_pad = pl.pallas_call(
        _lstm_fc_kernel,
        out_shape=jax.ShapeDtypeStruct((B_pad, OUT_PAD), jnp.float32),
        in_specs=[vmem] * 7,
        out_specs=vmem,
        scratch_shapes=[
            pltpu.VMEM((T, B_pad, H), jnp.float32),    # layer-0 hidden sequence
            pltpu.VMEM((T, B_pad, G), jnp.float32),    # layer-1 input gates
        ],
    )(gx0, whh0, wih1, b1, whh1, fcw_pad, fcb_pad)

    return out_pad[:B, :C]


def rnn_forward_ref(x, params):
    """Pure-JAX reference matching PyTorch nn.LSTM semantics (i,f,g,o order)."""
    B, T, I = x.shape
    H = params['w_hh0'].shape[1]

    def cell(xt, h, c, w_ih, w_hh, b_ih, b_hh):
        gates = xt @ w_ih.T + h @ w_hh.T + b_ih + b_hh
        i = jax.nn.sigmoid(gates[:, 0 * H:1 * H])
        f = jax.nn.sigmoid(gates[:, 1 * H:2 * H])
        g = jnp.tanh(gates[:, 2 * H:3 * H])
        o = jax.nn.sigmoid(gates[:, 3 * H:4 * H])
        c = f * c + i * g
        h = o * jnp.tanh(c)
        return h, c

    h0 = jnp.zeros((B, H), jnp.float32)
    c0 = jnp.zeros((B, H), jnp.float32)
    h1 = jnp.zeros((B, H), jnp.float32)
    c1 = jnp.zeros((B, H), jnp.float32)
    for t in range(T):
        xt = x[:, t, :]
        h0, c0 = cell(xt, h0, c0, params['w_ih0'], params['w_hh0'],
                      params['b_ih0'], params['b_hh0'])
        h1, c1 = cell(h0, h1, c1, params['w_ih1'], params['w_hh1'],
                      params['b_ih1'], params['b_hh1'])
    return h1 @ params['fc_w'].T + params['fc_b']


if __name__ == "__main__":
    key = jax.random.PRNGKey(0)
    kx, kp = jax.random.split(key)

    batch, seq = 4, 8
    x = jax.random.normal(kx, (batch, seq, INPUT_SIZE), jnp.float32)
    params = init_params(kp)

    out = rnn_forward(x, params)
    out = jax.block_until_ready(out)

    ref = rnn_forward_ref(x, params)
    assert out.shape == (batch, NUM_CLASSES)
    assert jnp.allclose(out, ref, atol=1e-4, rtol=1e-4), (
        f"max abs err {jnp.max(jnp.abs(out - ref))}")

    print("KERNEL_OK")
</pallas_src>

<mosaic_0001>
module attributes {stable_mosaic.version = 11 : i64} {
  func.func @_lstm_fc_kernel(%arg0: memref<8x8x512xf32, #tpu.memory_space<vmem>>, %arg1: memref<128x512xf32, #tpu.memory_space<vmem>>, %arg2: memref<128x512xf32, #tpu.memory_space<vmem>>, %arg3: memref<1x512xf32, #tpu.memory_space<vmem>>, %arg4: memref<128x512xf32, #tpu.memory_space<vmem>>, %arg5: memref<128x128xf32, #tpu.memory_space<vmem>>, %arg6: memref<1x128xf32, #tpu.memory_space<vmem>>, %arg7: memref<8x128xf32, #tpu.memory_space<vmem>>, %arg8: memref<8x8x128xf32, #tpu.memory_space<vmem>>, %arg9: memref<8x8x512xf32, #tpu.memory_space<vmem>>) attributes {dimension_semantics = [], scalar_prefetch = 0 : i64, scratch_operands = 2 : i64, tpu.core_type = #tpu.core_type<tc>} {
    %cst = arith.constant 0.000000e+00 : f32
    %0 = vector.broadcast %cst : f32 to vector<8x128xf32>
    %c0 = arith.constant 0 : index
    %c0_0 = arith.constant 0 : index
    %c0_1 = arith.constant 0 : index
    %1 = vector.load %arg0[%c0, %c0_0, %c0_1] : memref<8x8x512xf32, #tpu.memory_space<vmem>>, vector<1x8x512xf32>
    %2 = vector.shape_cast %1 : vector<1x8x512xf32> to vector<8x512xf32>
    %c0_2 = arith.constant 0 : index
    %c0_3 = arith.constant 0 : index
    %3 = vector.load %arg1[%c0_2, %c0_3] : memref<128x512xf32, #tpu.memory_space<vmem>>, vector<128x512xf32>
    %cst_4 = arith.constant dense<0.000000e+00> : vector<8x512xf32>
    %4 = tpu.matmul %0, %3, %cst_4 {dimension_numbers = #tpu.dot_dimension_numbers<[1], [0], [0], [1], [0, 0, 1, 1], [], []>} : vector<8x128xf32>, vector<128x512xf32>, vector<8x512xf32> -> vector<8x512xf32>
    %5 = arith.addf %2, %4 : vector<8x512xf32>
    %6 = vector.extract_strided_slice %5 {offsets = [0, 0], sizes = [8, 128], strides = [1, 1]} : vector<8x512xf32> to vector<8x128xf32>
    %7 = arith.negf %6 : vector<8x128xf32>
    %8 = math.exp %7 : vector<8x128xf32>
    %cst_5 = arith.constant 1.000000e+00 : f32
    %9 = vector.broadcast %cst_5 : f32 to vector<8x128xf32>
    %10 = arith.addf %9, %8 : vector<8x128xf32>
    %11 = arith.divf %9, %10 : vector<8x128xf32>
    %12 = vector.extract_strided_slice %5 {offsets = [0, 128], sizes = [8, 128], strides = [1, 1]} : vector<8x512xf32> to vector<8x128xf32>
    %13 = arith.negf %12 : vector<8x128xf32>
    %14 = math.exp %13 : vector<8x128xf32>
    %cst_6 = arith.constant 1.000000e+00 : f32
    %15 = vector.broadcast %cst_6 : f32 to vector<8x128xf32>
    %16 = arith.addf %15, %14 : vector<8x128xf32>
    %17 = arith.divf %15, %16 : vector<8x128xf32>
    %18 = vector.extract_strided_slice %5 {offsets = [0, 256], sizes = [8, 128], strides = [1, 1]} : vector<8x512xf32> to vector<8x128xf32>
    %19 = math.tanh %18 : vector<8x128xf32>
    %20 = vector.extract_strided_slice %5 {offsets = [0, 384], sizes = [8, 128], strides = [1, 1]} : vector<8x512xf32> to vector<8x128xf32>
    %21 = arith.negf %20 : vector<8x128xf32>
    %22 = math.exp %21 : vector<8x128xf32>
    %cst_7 = arith.constant 1.000000e+00 : f32
    %23 = vector.broadcast %cst_7 : f32 to vector<8x128xf32>
    %24 = arith.addf %23, %22 : vector<8x128xf32>
    %25 = arith.divf %23, %24 : vector<8x128xf32>
    %26 = arith.mulf %17, %0 : vector<8x128xf32>
    %27 = arith.mulf %11, %19 : vector<8x128xf32>
    %28 = arith.addf %26, %27 : vector<8x128xf32>
    %29 = math.tanh %28 : vector<8x128xf32>
    %30 = arith.mulf %25, %29 : vector<8x128xf32>
    %c0_8 = arith.constant 0 : index
    %c0_9 = arith.constant 0 : index
    %c0_10 = arith.constant 0 : index
    %31 = vector.load %arg8[%c0_8, %c0_9, %c0_10] : memref<8x8x128xf32, #tpu.memory_space<vmem>>, vector<1x8x128xf32>
    %32 = vector.shape_cast %31 : vector<1x8x128xf32> to vector<8x128xf32>
    %33 = vector.shape_cast %30 : vector<8x128xf32> to vector<1x8x128xf32>
    tpu.vector_store %arg8[%c0_8, %c0_9, %c0_10], %33 {strides = array<i32>} : memref<8x8x128xf32, #tpu.memory_space<vmem>>, vector<1x8x128xf32>,
    %c1 = arith.constant 1 : index
    %c0_11 = arith.constant 0 : index
    %c0_12 = arith.constant 0 : index
    %34 = vector.load %arg0[%c1, %c0_11, %c0_12] : memref<8x8x512xf32, #tpu.memory_space<vmem>>, vector<1x8x512xf32>
    %35 = vector.shape_cast %34 : vector<1x8x512xf32> to vector<8x512xf32>
    %c0_13 = arith.constant 0 : index
    %c0_14 = arith.constant 0 : index
    %36 = vector.load %arg1[%c0_13, %c0_14] : memref<128x512xf32, #tpu.memory_space<vmem>>, vector<128x512xf32>
    %cst_15 = arith.constant dense<0.000000e+00> : vector<8x512xf32>
    %37 = tpu.matmul %30, %36, %cst_15 {dimension_numbers = #tpu.dot_dimension_numbers<[1], [0], [0], [1], [0, 0, 1, 1], [], []>} : vector<8x128xf32>, vector<128x512xf32>, vector<8x512xf32> -> vector<8x512xf32>
    %38 = arith.addf %35, %37 : vector<8x512xf32>
    %39 = vector.extract_strided_slice %38 {offsets = [0, 0], sizes = [8, 128], strides = [1, 1]} : vector<8x512xf32> to vector<8x128xf32>
    %40 = arith.negf %39 : vector<8x128xf32>
    %41 = math.exp %40 : vector<8x128xf32>
    %cst_16 = arith.constant 1.000000e+00 : f32
    %42 = vector.broadcast %cst_16 : f32 to vector<8x128xf32>
    %43 = arith.addf %42, %41 : vector<8x128xf32>
    %44 = arith.divf %42, %43 : vector<8x128xf32>
    %45 = vector.extract_strided_slice %38 {offsets = [0, 128], sizes = [8, 128], strides = [1, 1]} : vector<8x512xf32> to vector<8x128xf32>
    %46 = arith.negf %45 : vector<8x128xf32>
    %47 = math.exp %46 : vector<8x128xf32>
    %cst_17 = arith.constant 1.000000e+00 : f32
    %48 = vector.broadcast %cst_17 : f32 to vector<8x128xf32>
    %49 = arith.addf %48, %47 : vector<8x128xf32>
    %50 = arith.divf %48, %49 : vector<8x128xf32>
    %51 = vector.extract_strided_slice %38 {offsets = [0, 256], sizes = [8, 128], strides = [1, 1]} : vector<8x512xf32> to vector<8x128xf32>
    %52 = math.tanh %51 : vector<8x128xf32>
    %53 = vector.extract_strided_slice %38 {offsets = [0, 384], sizes = [8, 128], strides = [1, 1]} : vector<8x512xf32> to vector<8x128xf32>
    %54 = arith.negf %53 : vector<8x128xf32>
    %55 = math.exp %54 : vector<8x128xf32>
    %cst_18 = arith.constant 1.000000e+00 : f32
    %56 = vector.broadcast %cst_18 : f32 to vector<8x128xf32>
    %57 = arith.addf %56, %55 : vector<8x128xf32>
    %58 = arith.divf %56, %57 : vector<8x128xf32>
    %59 = arith.mulf %50, %28 : vector<8x128xf32>
    %60 = arith.mulf %44, %52 : vector<8x128xf32>
    %61 = arith.addf %59, %60 : vector<8x128xf32>
    %62 = math.tanh %61 : vector<8x128xf32>
    %63 = arith.mulf %58, %62 : vector<8x128xf32>
    %c1_19 = arith.constant 1 : index
    %c0_20 = arith.constant 0 : index
    %c0_21 = arith.constant 0 : index
    %64 = vector.load %arg8[%c1_19, %c0_20, %c0_21] : memref<8x8x128xf32, #tpu.memory_space<vmem>>, vector<1x8x128xf32>
    %65 = vector.shape_cast %64 : vector<1x8x128xf32> to vector<8x128xf32>
    %66 = vector.shape_cast %63 : vector<8x128xf32> to vector<1x8x128xf32>
    tpu.vector_store %arg8[%c1_19, %c0_20, %c0_21], %66 {strides = array<i32>} : memref<8x8x128xf32, #tpu.memory_space<vmem>>, vector<1x8x128xf32>,
    %c2 = arith.constant 2 : index
    %c0_22 = arith.constant 0 : index
    %c0_23 = arith.constant 0 : index
    %67 = vector.load %arg0[%c2, %c0_22, %c0_23] : memref<8x8x512xf32, #tpu.memory_space<vmem>>, vector<1x8x512xf32>
    %68 = vector.shape_cast %67 : vector<1x8x512xf32> to vector<8x512xf32>
    %c0_24 = arith.constant 0 : index
    %c0_25 = arith.constant 0 : index
    %69 = vector.load %arg1[%c0_24, %c0_25] : memref<128x512xf32, #tpu.memory_space<vmem>>, vector<128x512xf32>
    %cst_26 = arith.constant dense<0.000000e+00> : vector<8x512xf32>
    %70 = tpu.matmul %63, %69, %cst_26 {dimension_numbers = #tpu.dot_dimension_numbers<[1], [0], [0], [1], [0, 0, 1, 1], [], []>} : vector<8x128xf32>, vector<128x512xf32>, vector<8x512xf32> -> vector<8x512xf32>
    %71 = arith.addf %68, %70 : vector<8x512xf32>
    %72 = vector.extract_strided_slice %71 {offsets = [0, 0], sizes = [8, 128], strides = [1, 1]} : vector<8x512xf32> to vector<8x128xf32>
    %73 = arith.negf %72 : vector<8x128xf32>
    %74 = math.exp %73 : vector<8x128xf32>
    %cst_27 = arith.constant 1.000000e+00 : f32
    %75 = vector.broadcast %cst_27 : f32 to vector<8x128xf32>
    %76 = arith.addf %75, %74 : vector<8x128xf32>
    %77 = arith.divf %75, %76 : vector<8x128xf32>
    %78 = vector.extract_strided_slice %71 {offsets = [0, 128], sizes = [8, 128], strides = [1, 1]} : vector<8x512xf32> to vector<8x128xf32>
    %79 = arith.negf %78 : vector<8x128xf32>
    %80 = math.exp %79 : vector<8x128xf32>
    %cst_28 = arith.constant 1.000000e+00 : f32
    %81 = vector.broadcast %cst_28 : f32 to vector<8x128xf32>
    %82 = arith.addf %81, %80 : vector<8x128xf32>
    %83 = arith.divf %81, %82 : vector<8x128xf32>
    %84 = vector.extract_strided_slice %71 {offsets = [0, 256], sizes = [8, 128], strides = [1, 1]} : vector<8x512xf32> to vector<8x128xf32>
    %85 = math.tanh %84 : vector<8x128xf32>
    %86 = vector.extract_strided_slice %71 {offsets = [0, 384], sizes = [8, 128], strides = [1, 1]} : vector<8x512xf32> to vector<8x128xf32>
    %87 = arith.negf %86 : vector<8x128xf32>
    %88 = math.exp %87 : vector<8x128xf32>
    %cst_29 = arith.constant 1.000000e+00 : f32
    %89 = vector.broadcast %cst_29 : f32 to vector<8x128xf32>
    %90 = arith.addf %89, %88 : vector<8x128xf32>
    %91 = arith.divf %89, %90 : vector<8x128xf32>
    %92 = arith.mulf %83, %61 : vector<8x128xf32>
    %93 = arith.mulf %77, %85 : vector<8x128xf32>
    %94 = arith.addf %92, %93 : vector<8x128xf32>
    %95 = math.tanh %94 : vector<8x128xf32>
    %96 = arith.mulf %91, %95 : vector<8x128xf32>
    %c2_30 = arith.constant 2 : index
    %c0_31 = arith.constant 0 : index
    %c0_32 = arith.constant 0 : index
    %97 = vector.load %arg8[%c2_30, %c0_31, %c0_32] : memref<8x8x128xf32, #tpu.memory_space<vmem>>, vector<1x8x128xf32>
    %98 = vector.shape_cast %97 : vector<1x8x128xf32> to vector<8x128xf32>
    %99 = vector.shape_cast %96 : vector<8x128xf32> to vector<1x8x128xf32>
    tpu.vector_store %arg8[%c2_30, %c0_31, %c0_32], %99 {strides = array<i32>} : memref<8x8x128xf32, #tpu.memory_space<vmem>>, vector<1x8x128xf32>,
    %c3 = arith.constant 3 : index
    %c0_33 = arith.constant 0 : index
    %c0_34 = arith.constant 0 : index
    %100 = vector.load %arg0[%c3, %c0_33, %c0_34] : memref<8x8x512xf32, #tpu.memory_space<vmem>>, vector<1x8x512xf32>
    %101 = vector.shape_cast %100 : vector<1x8x512xf32> to vector<8x512xf32>
    %c0_35 = arith.constant 0 : index
    %c0_36 = arith.constant 0 : index
    %102 = vector.load %arg1[%c0_35, %c0_36] : memref<128x512xf32, #tpu.memory_space<vmem>>, vector<128x512xf32>
    %cst_37 = arith.constant dense<0.000000e+00> : vector<8x512xf32>
    %103 = tpu.matmul %96, %102, %cst_37 {dimension_numbers = #tpu.dot_dimension_numbers<[1], [0], [0], [1], [0, 0, 1, 1], [], []>} : vector<8x128xf32>, vector<128x512xf32>, vector<8x512xf32> -> vector<8x512xf32>
    %104 = arith.addf %101, %103 : vector<8x512xf32>
    %105 = vector.extract_strided_slice %104 {offsets = [0, 0], sizes = [8, 128], strides = [1, 1]} : vector<8x512xf32> to vector<8x128xf32>
    %106 = arith.negf %105 : vector<8x128xf32>
    %107 = math.exp %106 : vector<8x128xf32>
    %cst_38 = arith.constant 1.000000e+00 : f32
    %108 = vector.broadcast %cst_38 : f32 to vector<8x128xf32>
    %109 = arith.addf %108, %107 : vector<8x128xf32>
    %110 = arith.divf %108, %109 : vector<8x128xf32>
    %111 = vector.extract_strided_slice %104 {offsets = [0, 128], sizes = [8, 128], strides = [1, 1]} : vector<8x512xf32> to vector<8x128xf32>
    %112 = arith.negf %111 : vector<8x128xf32>
    %113 = math.exp %112 : vector<8x128xf32>
    %cst_39 = arith.constant 1.000000e+00 : f32
    %114 = vector.broadcast %cst_39 : f32 to vector<8x128xf32>
    %115 = arith.addf %114, %113 : vector<8x128xf32>
    %116 = arith.divf %114, %115 : vector<8x128xf32>
    %117 = vector.extract_strided_slice %104 {offsets = [0, 256], sizes = [8, 128], strides = [1, 1]} : vector<8x512xf32> to vector<8x128xf32>
    %118 = math.tanh %117 : vector<8x128xf32>
    %119 = vector.extract_strided_slice %104 {offsets = [0, 384], sizes = [8, 128], strides = [1, 1]} : vector<8x512xf32> to vector<8x128xf32>
    %120 = arith.negf %119 : vector<8x128xf32>
    %121 = math.exp %120 : vector<8x128xf32>
    %cst_40 = arith.constant 1.000000e+00 : f32
    %122 = vector.broadcast %cst_40 : f32 to vector<8x128xf32>
    %123 = arith.addf %122, %121 : vector<8x128xf32>
    %124 = arith.divf %122, %123 : vector<8x128xf32>
    %125 = arith.mulf %116, %94 : vector<8x128xf32>
    %126 = arith.mulf %110, %118 : vector<8x128xf32>
    %127 = arith.addf %125, %126 : vector<8x128xf32>
    %128 = math.tanh %127 : vector<8x128xf32>
    %129 = arith.mulf %124, %128 : vector<8x128xf32>
    %c3_41 = arith.constant 3 : index
    %c0_42 = arith.constant 0 : index
    %c0_43 = arith.constant 0 : index
    %130 = vector.load %arg8[%c3_41, %c0_42, %c0_43] : memref<8x8x128xf32, #tpu.memory_space<vmem>>, vector<1x8x128xf32>
    %131 = vector.shape_cast %130 : vector<1x8x128xf32> to vector<8x128xf32>
    %132 = vector.shape_cast %129 : vector<8x128xf32> to vector<1x8x128xf32>
    tpu.vector_store %arg8[%c3_41, %c0_42, %c0_43], %132 {strides = array<i32>} : memref<8x8x128xf32, #tpu.memory_space<vmem>>, vector<1x8x128xf32>,
    %c4 = arith.constant 4 : index
    %c0_44 = arith.constant 0 : index
    %c0_45 = arith.constant 0 : index
    %133 = vector.load %arg0[%c4, %c0_44, %c0_45] : memref<8x8x512xf32, #tpu.memory_space<vmem>>, vector<1x8x512xf32>
    %134 = vector.shape_cast %133 : vector<1x8x512xf32> to vector<8x512xf32>
    %c0_46 = arith.constant 0 : index
    %c0_47 = arith.constant 0 : index
    %135 = vector.load %arg1[%c0_46, %c0_47] : memref<128x512xf32, #tpu.memory_space<vmem>>, vector<128x512xf32>
    %cst_48 = arith.constant dense<0.000000e+00> : vector<8x512xf32>
    %136 = tpu.matmul %129, %135, %cst_48 {dimension_numbers = #tpu.dot_dimension_numbers<[1], [0], [0], [1], [0, 0, 1, 1], [], []>} : vector<8x128xf32>, vector<128x512xf32>, vector<8x512xf32> -> vector<8x512xf32>
    %137 = arith.addf %134, %136 : vector<8x512xf32>
    %138 = vector.extract_strided_slice %137 {offsets = [0, 0], sizes = [8, 128], strides = [1, 1]} : vector<8x512xf32> to vector<8x128xf32>
    %139 = arith.negf %138 : vector<8x128xf32>
    %140 = math.exp %139 : vector<8x128xf32>
    %cst_49 = arith.constant 1.000000e+00 : f32
    %141 = vector.broadcast %cst_49 : f32 to vector<8x128xf32>
    %142 = arith.addf %141, %140 : vector<8x128xf32>
    %143 = arith.divf %141, %142 : vector<8x128xf32>
    %144 = vector.extract_strided_slice %137 {offsets = [0, 128], sizes = [8, 128], strides = [1, 1]} : vector<8x512xf32> to vector<8x128xf32>
    %145 = arith.negf %144 : vector<8x128xf32>
    %146 = math.exp %145 : vector<8x128xf32>
    %cst_50 = arith.constant 1.000000e+00 : f32
    %147 = vector.broadcast %cst_50 : f32 to vector<8x128xf32>
    %148 = arith.addf %147, %146 : vector<8x128xf32>
    %149 = arith.divf %147, %148 : vector<8x128xf32>
    %150 = vector.extract_strided_slice %137 {offsets = [0, 256], sizes = [8, 128], strides = [1, 1]} : vector<8x512xf32> to vector<8x128xf32>
    %151 = math.tanh %150 : vector<8x128xf32>
    %152 = vector.extract_strided_slice %137 {offsets = [0, 384], sizes = [8, 128], strides = [1, 1]} : vector<8x512xf32> to vector<8x128xf32>
    %153 = arith.negf %152 : vector<8x128xf32>
    %154 = math.exp %153 : vector<8x128xf32>
    %cst_51 = arith.constant 1.000000e+00 : f32
    %155 = vector.broadcast %cst_51 : f32 to vector<8x128xf32>
    %156 = arith.addf %155, %154 : vector<8x128xf32>
    %157 = arith.divf %155, %156 : vector<8x128xf32>
    %158 = arith.mulf %149, %127 : vector<8x128xf32>
    %159 = arith.mulf %143, %151 : vector<8x128xf32>
    %160 = arith.addf %158, %159 : vector<8x128xf32>
    %161 = math.tanh %160 : vector<8x128xf32>
    %162 = arith.mulf %157, %161 : vector<8x128xf32>
    %c4_52 = arith.constant 4 : index
    %c0_53 = arith.constant 0 : index
    %c0_54 = arith.constant 0 : index
    %163 = vector.load %arg8[%c4_52, %c0_53, %c0_54] : memref<8x8x128xf32, #tpu.memory_space<vmem>>, vector<1x8x128xf32>
    %164 = vector.shape_cast %163 : vector<1x8x128xf32> to vector<8x128xf32>
    %165 = vector.shape_cast %162 : vector<8x128xf32> to vector<1x8x128xf32>
    tpu.vector_store %arg8[%c4_52, %c0_53, %c0_54], %165 {strides = array<i32>} : memref<8x8x128xf32, #tpu.memory_space<vmem>>, vector<1x8x128xf32>,
    %c5 = arith.constant 5 : index
    %c0_55 = arith.constant 0 : index
    %c0_56 = arith.constant 0 : index
    %166 = vector.load %arg0[%c5, %c0_55, %c0_56] : memref<8x8x512xf32, #tpu.memory_space<vmem>>, vector<1x8x512xf32>
    %167 = vector.shape_cast %166 : vector<1x8x512xf32> to vector<8x512xf32>
    %c0_57 = arith.constant 0 : index
    %c0_58 = arith.constant 0 : index
    %168 = vector.load %arg1[%c0_57, %c0_58] : memref<128x512xf32, #tpu.memory_space<vmem>>, vector<128x512xf32>
    %cst_59 = arith.constant dense<0.000000e+00> : vector<8x512xf32>
    %169 = tpu.matmul %162, %168, %cst_59 {dimension_numbers = #tpu.dot_dimension_numbers<[1], [0], [0], [1], [0, 0, 1, 1], [], []>} : vector<8x128xf32>, vector<128x512xf32>, vector<8x512xf32> -> vector<8x512xf32>
    %170 = arith.addf %167, %169 : vector<8x512xf32>
    %171 = vector.extract_strided_slice %170 {offsets = [0, 0], sizes = [8, 128], strides = [1, 1]} : vector<8x512xf32> to vector<8x128xf32>
    %172 = arith.negf %171 : vector<8x128xf32>
    %173 = math.exp %172 : vector<8x128xf32>
    %cst_60 = arith.constant 1.000000e+00 : f32
    %174 = vector.broadcast %cst_60 : f32 to vector<8x128xf32>
    %175 = arith.addf %174, %173 : vector<8x128xf32>
    %176 = arith.divf %174, %175 : vector<8x128xf32>
    %177 = vector.extract_strided_slice %170 {offsets = [0, 128], sizes = [8, 128], strides = [1, 1]} : vector<8x512xf32> to vector<8x128xf32>
    %178 = arith.negf %177 : vector<8x128xf32>
    %179 = math.exp %178 : vector<8x128xf32>
    %cst_61 = arith.constant 1.000000e+00 : f32
    %180 = vector.broadcast %cst_61 : f32 to vector<8x128xf32>
    %181 = arith.addf %180, %179 : vector<8x128xf32>
    %182 = arith.divf %180, %181 : vector<8x128xf32>
    %183 = vector.extract_strided_slice %170 {offsets = [0, 256], sizes = [8, 128], strides = [1, 1]} : vector<8x512xf32> to vector<8x128xf32>
    %184 = math.tanh %183 : vector<8x128xf32>
    %185 = vector.extract_strided_slice %170 {offsets = [0, 384], sizes = [8, 128], strides = [1, 1]} : vector<8x512xf32> to vector<8x128xf32>
    %186 = arith.negf %185 : vector<8x128xf32>
    %187 = math.exp %186 : vector<8x128xf32>
    %cst_62 = arith.constant 1.000000e+00 : f32
    %188 = vector.broadcast %cst_62 : f32 to vector<8x128xf32>
    %189 = arith.addf %188, %187 : vector<8x128xf32>
    %190 = arith.divf %188, %189 : vector<8x128xf32>
    %191 = arith.mulf %182, %160 : vector<8x128xf32>
    %192 = arith.mulf %176, %184 : vector<8x128xf32>
    %193 = arith.addf %191, %192 : vector<8x128xf32>
    %194 = math.tanh %193 : vector<8x128xf32>
    %195 = arith.mulf %190, %194 : vector<8x128xf32>
    %c5_63 = arith.constant 5 : index
    %c0_64 = arith.constant 0 : index
    %c0_65 = arith.constant 0 : index
    %196 = vector.load %arg8[%c5_63, %c0_64, %c0_65] : memref<8x8x128xf32, #tpu.memory_space<vmem>>, vector<1x8x128xf32>
    %197 = vector.shape_cast %196 : vector<1x8x128xf32> to vector<8x128xf32>
    %198 = vector.shape_cast %195 : vector<8x128xf32> to vector<1x8x128xf32>
    tpu.vector_store %arg8[%c5_63, %c0_64, %c0_65], %198 {strides = array<i32>} : memref<8x8x128xf32, #tpu.memory_space<vmem>>, vector<1x8x128xf32>,
    %c6 = arith.constant 6 : index
    %c0_66 = arith.constant 0 : index
    %c0_67 = arith.constant 0 : index
    %199 = vector.load %arg0[%c6, %c0_66, %c0_67] : memref<8x8x512xf32, #tpu.memory_space<vmem>>, vector<1x8x512xf32>
    %200 = vector.shape_cast %199 : vector<1x8x512xf32> to vector<8x512xf32>
    %c0_68 = arith.constant 0 : index
    %c0_69 = arith.constant 0 : index
    %201 = vector.load %arg1[%c0_68, %c0_69] : memref<128x512xf32, #tpu.memory_space<vmem>>, vector<128x512xf32>
    %cst_70 = arith.constant dense<0.000000e+00> : vector<8x512xf32>
    %202 = tpu.matmul %195, %201, %cst_70 {dimension_numbers = #tpu.dot_dimension_numbers<[1], [0], [0], [1], [0, 0, 1, 1], [], []>} : vector<8x128xf32>, vector<128x512xf32>, vector<8x512xf32> -> vector<8x512xf32>
    %203 = arith.addf %200, %202 : vector<8x512xf32>
    %204 = vector.extract_strided_slice %203 {offsets = [0, 0], sizes = [8, 128], strides = [1, 1]} : vector<8x512xf32> to vector<8x128xf32>
    %205 = arith.negf %204 : vector<8x128xf32>
    %206 = math.exp %205 : vector<8x128xf32>
    %cst_71 = arith.constant 1.000000e+00 : f32
    %207 = vector.broadcast %cst_71 : f32 to vector<8x128xf32>
    %208 = arith.addf %207, %206 : vector<8x128xf32>
    %209 = arith.divf %207, %208 : vector<8x128xf32>
    %210 = vector.extract_strided_slice %203 {offsets = [0, 128], sizes = [8, 128], strides = [1, 1]} : vector<8x512xf32> to vector<8x128xf32>
    %211 = arith.negf %210 : vector<8x128xf32>
    %212 = math.exp %211 : vector<8x128xf32>
    %cst_72 = arith.constant 1.000000e+00 : f32
    %213 = vector.broadcast %cst_72 : f32 to vector<8x128xf32>
    %214 = arith.addf %213, %212 : vector<8x128xf32>
    %215 = arith.divf %213, %214 : vector<8x128xf32>
    %216 = vector.extract_strided_slice %203 {offsets = [0, 256], sizes = [8, 128], strides = [1, 1]} : vector<8x512xf32> to vector<8x128xf32>
    %217 = math.tanh %216 : vector<8x128xf32>
    %218 = vector.extract_strided_slice %203 {offsets = [0, 384], sizes = [8, 128], strides = [1, 1]} : vector<8x512xf32> to vector<8x128xf32>
    %219 = arith.negf %218 : vector<8x128xf32>
    %220 = math.exp %219 : vector<8x128xf32>
    %cst_73 = arith.constant 1.000000e+00 : f32
    %221 = vector.broadcast %cst_73 : f32 to vector<8x128xf32>
    %222 = arith.addf %221, %220 : vector<8x128xf32>
    %223 = arith.divf %221, %222 : vector<8x128xf32>
    %224 = arith.mulf %215, %193 : vector<8x128xf32>
    %225 = arith.mulf %209, %217 : vector<8x128xf32>
    %226 = arith.addf %224, %225 : vector<8x128xf32>
    %227 = math.tanh %226 : vector<8x128xf32>
    %228 = arith.mulf %223, %227 : vector<8x128xf32>
    %c6_74 = arith.constant 6 : index
    %c0_75 = arith.constant 0 : index
    %c0_76 = arith.constant 0 : index
    %229 = vector.load %arg8[%c6_74, %c0_75, %c0_76] : memref<8x8x128xf32, #tpu.memory_space<vmem>>, vector<1x8x128xf32>
    %230 = vector.shape_cast %229 : vector<1x8x128xf32> to vector<8x128xf32>
    %231 = vector.shape_cast %228 : vector<8x128xf32> to vector<1x8x128xf32>
    tpu.vector_store %arg8[%c6_74, %c0_75, %c0_76], %231 {strides = array<i32>} : memref<8x8x128xf32, #tpu.memory_space<vmem>>, vector<1x8x128xf32>,
    %c7 = arith.constant 7 : index
    %c0_77 = arith.constant 0 : index
    %c0_78 = arith.constant 0 : index
    %232 = vector.load %arg0[%c7, %c0_77, %c0_78] : memref<8x8x512xf32, #tpu.memory_space<vmem>>, vector<1x8x512xf32>
    %233 = vector.shape_cast %232 : vector<1x8x512xf32> to vector<8x512xf32>
    %c0_79 = arith.constant 0 : index
    %c0_80 = arith.constant 0 : index
    %234 = vector.load %arg1[%c0_79, %c0_80] : memref<128x512xf32, #tpu.memory_space<vmem>>, vector<128x512xf32>
    %cst_81 = arith.constant dense<0.000000e+00> : vector<8x512xf32>
    %235 = tpu.matmul %228, %234, %cst_81 {dimension_numbers = #tpu.dot_dimension_numbers<[1], [0], [0], [1], [0, 0, 1, 1], [], []>} : vector<8x128xf32>, vector<128x512xf32>, vector<8x512xf32> -> vector<8x512xf32>
    %236 = arith.addf %233, %235 : vector<8x512xf32>
    %237 = vector.extract_strided_slice %236 {offsets = [0, 0], sizes = [8, 128], strides = [1, 1]} : vector<8x512xf32> to vector<8x128xf32>
    %238 = arith.negf %237 : vector<8x128xf32>
    %239 = math.exp %238 : vector<8x128xf32>
    %cst_82 = arith.constant 1.000000e+00 : f32
    %240 = vector.broadcast %cst_82 : f32 to vector<8x128xf32>
    %241 = arith.addf %240, %239 : vector<8x128xf32>
    %242 = arith.divf %240, %241 : vector<8x128xf32>
    %243 = vector.extract_strided_slice %236 {offsets = [0, 128], sizes = [8, 128], strides = [1, 1]} : vector<8x512xf32> to vector<8x128xf32>
    %244 = arith.negf %243 : vector<8x128xf32>
    %245 = math.exp %244 : vector<8x128xf32>
    %cst_83 = arith.constant 1.000000e+00 : f32
    %246 = vector.broadcast %cst_83 : f32 to vector<8x128xf32>
    %247 = arith.addf %246, %245 : vector<8x128xf32>
    %248 = arith.divf %246, %247 : vector<8x128xf32>
    %249 = vector.extract_strided_slice %236 {offsets = [0, 256], sizes = [8, 128], strides = [1, 1]} : vector<8x512xf32> to vector<8x128xf32>
    %250 = math.tanh %249 : vector<8x128xf32>
    %251 = vector.extract_strided_slice %236 {offsets = [0, 384], sizes = [8, 128], strides = [1, 1]} : vector<8x512xf32> to vector<8x128xf32>
    %252 = arith.negf %251 : vector<8x128xf32>
    %253 = math.exp %252 : vector<8x128xf32>
    %cst_84 = arith.constant 1.000000e+00 : f32
    %254 = vector.broadcast %cst_84 : f32 to vector<8x128xf32>
    %255 = arith.addf %254, %253 : vector<8x128xf32>
    %256 = arith.divf %254, %255 : vector<8x128xf32>
    %257 = arith.mulf %248, %226 : vector<8x128xf32>
    %258 = arith.mulf %242, %250 : vector<8x128xf32>
    %259 = arith.addf %257, %258 : vector<8x128xf32>
    %260 = math.tanh %259 : vector<8x128xf32>
    %261 = arith.mulf %256, %260 : vector<8x128xf32>
    %c7_85 = arith.constant 7 : index
    %c0_86 = arith.constant 0 : index
    %c0_87 = arith.constant 0 : index
    %262 = vector.load %arg8[%c7_85, %c0_86, %c0_87] : memref<8x8x128xf32, #tpu.memory_space<vmem>>, vector<1x8x128xf32>
    %263 = vector.shape_cast %262 : vector<1x8x128xf32> to vector<8x128xf32>
    %264 = vector.shape_cast %261 : vector<8x128xf32> to vector<1x8x128xf32>
    tpu.vector_store %arg8[%c7_85, %c0_86, %c0_87], %264 {strides = array<i32>} : memref<8x8x128xf32, #tpu.memory_space<vmem>>, vector<1x8x128xf32>,
    %c0_88 = arith.constant 0 : index
    %c0_89 = arith.constant 0 : index
    %c0_90 = arith.constant 0 : index
    %265 = vector.load %arg8[%c0_88, %c0_89, %c0_90] : memref<8x8x128xf32, #tpu.memory_space<vmem>>, vector<8x8x128xf32>
    %266 = vector.shape_cast %265 : vector<8x8x128xf32> to vector<64x128xf32>
    %c0_91 = arith.constant 0 : index
    %c0_92 = arith.constant 0 : index
    %267 = vector.load %arg2[%c0_91, %c0_92] : memref<128x512xf32, #tpu.memory_space<vmem>>, vector<128x512xf32>
    %cst_93 = arith.constant dense<0.000000e+00> : vector<64x512xf32>
    %268 = tpu.matmul %266, %267, %cst_93 {dimension_numbers = #tpu.dot_dimension_numbers<[1], [0], [0], [1], [0, 0, 1, 1], [], []>} : vector<64x128xf32>, vector<128x512xf32>, vector<64x512xf32> -> vector<64x512xf32>
    %c0_94 = arith.constant 0 : index
    %c0_95 = arith.constant 0 : index
    %269 = vector.load %arg3[%c0_94, %c0_95] : memref<1x512xf32, #tpu.memory_space<vmem>>, vector<1x512xf32>
    %270 = vector.broadcast %269 : vector<1x512xf32> to vector<64x512xf32>
    %271 = arith.addf %268, %270 : vector<64x512xf32>
    %272 = vector.shape_cast %271 : vector<64x512xf32> to vector<8x8x512xf32>
    %c0_96 = arith.constant 0 : index
    %c0_97 = arith.constant 0 : index
    %c0_98 = arith.constant 0 : index
    %273 = vector.load %arg9[%c0_96, %c0_97, %c0_98] : memref<8x8x512xf32, #tpu.memory_space<vmem>>, vector<8x8x512xf32>
    tpu.vector_store %arg9[%c0_96, %c0_97, %c0_98], %272 {strides = array<i32>} : memref<8x8x512xf32, #tpu.memory_space<vmem>>, vector<8x8x512xf32>,
    %c0_99 = arith.constant 0 : index
    %c0_100 = arith.constant 0 : index
    %c0_101 = arith.constant 0 : index
    %274 = vector.load %arg9[%c0_99, %c0_100, %c0_101] : memref<8x8x512xf32, #tpu.memory_space<vmem>>, vector<1x8x512xf32>
    %275 = vector.shape_cast %274 : vector<1x8x512xf32> to vector<8x512xf32>
    %c0_102 = arith.constant 0 : index
    %c0_103 = arith.constant 0 : index
    %276 = vector.load %arg4[%c0_102, %c0_103] : memref<128x512xf32, #tpu.memory_space<vmem>>, vector<128x512xf32>
    %cst_104 = arith.constant dense<0.000000e+00> : vector<8x512xf32>
    %277 = tpu.matmul %0, %276, %cst_104 {dimension_numbers = #tpu.dot_dimension_numbers<[1], [0], [0], [1], [0, 0, 1, 1], [], []>} : vector<8x128xf32>, vector<128x512xf32>, vector<8x512xf32> -> vector<8x512xf32>
    %278 = arith.addf %275, %277 : vector<8x512xf32>
    %279 = vector.extract_strided_slice %278 {offsets = [0, 0], sizes = [8, 128], strides = [1, 1]} : vector<8x512xf32> to vector<8x128xf32>
    %280 = arith.negf %279 : vector<8x128xf32>
    %281 = math.exp %280 : vector<8x128xf32>
    %cst_105 = arith.constant 1.000000e+00 : f32
    %282 = vector.broadcast %cst_105 : f32 to vector<8x128xf32>
    %283 = arith.addf %282, %281 : vector<8x128xf32>
    %284 = arith.divf %282, %283 : vector<8x128xf32>
    %285 = vector.extract_strided_slice %278 {offsets = [0, 128], sizes = [8, 128], strides = [1, 1]} : vector<8x512xf32> to vector<8x128xf32>
    %286 = arith.negf %285 : vector<8x128xf32>
    %287 = math.exp %286 : vector<8x128xf32>
    %cst_106 = arith.constant 1.000000e+00 : f32
    %288 = vector.broadcast %cst_106 : f32 to vector<8x128xf32>
    %289 = arith.addf %288, %287 : vector<8x128xf32>
    %290 = arith.divf %288, %289 : vector<8x128xf32>
    %291 = vector.extract_strided_slice %278 {offsets = [0, 256], sizes = [8, 128], strides = [1, 1]} : vector<8x512xf32> to vector<8x128xf32>
    %292 = math.tanh %291 : vector<8x128xf32>
    %293 = vector.extract_strided_slice %278 {offsets = [0, 384], sizes = [8, 128], strides = [1, 1]} : vector<8x512xf32> to vector<8x128xf32>
    %294 = arith.negf %293 : vector<8x128xf32>
    %295 = math.exp %294 : vector<8x128xf32>
    %cst_107 = arith.constant 1.000000e+00 : f32
    %296 = vector.broadcast %cst_107 : f32 to vector<8x128xf32>
    %297 = arith.addf %296, %295 : vector<8x128xf32>
    %298 = arith.divf %296, %297 : vector<8x128xf32>
    %299 = arith.mulf %290, %0 : vector<8x128xf32>
    %300 = arith.mulf %284, %292 : vector<8x128xf32>
    %301 = arith.addf %299, %300 : vector<8x128xf32>
    %302 = math.tanh %301 : vector<8x128xf32>
    %303 = arith.mulf %298, %302 : vector<8x128xf32>
    %c1_108 = arith.constant 1 : index
    %c0_109 = arith.constant 0 : index
    %c0_110 = arith.constant 0 : index
    %304 = vector.load %arg9[%c1_108, %c0_109, %c0_110] : memref<8x8x512xf32, #tpu.memory_space<vmem>>, vector<1x8x512xf32>
    %305 = vector.shape_cast %304 : vector<1x8x512xf32> to vector<8x512xf32>
    %c0_111 = arith.constant 0 : index
    %c0_112 = arith.constant 0 : index
    %306 = vector.load %arg4[%c0_111, %c0_112] : memref<128x512xf32, #tpu.memory_space<vmem>>, vector<128x512xf32>
    %cst_113 = arith.constant dense<0.000000e+00> : vector<8x512xf32>
    %307 = tpu.matmul %303, %306, %cst_113 {dimension_numbers = #tpu.dot_dimension_numbers<[1], [0], [0], [1], [0, 0, 1, 1], [], []>} : vector<8x128xf32>, vector<128x512xf32>, vector<8x512xf32> -> vector<8x512xf32>
    %308 = arith.addf %305, %307 : vector<8x512xf32>
    %309 = vector.extract_strided_slice %308 {offsets = [0, 0], sizes = [8, 128], strides = [1, 1]} : vector<8x512xf32> to vector<8x128xf32>
    %310 = arith.negf %309 : vector<8x128xf32>
    %311 = math.exp %310 : vector<8x128xf32>
    %cst_114 = arith.constant 1.000000e+00 : f32
    %312 = vector.broadcast %cst_114 : f32 to vector<8x128xf32>
    %313 = arith.addf %312, %311 : vector<8x128xf32>
    %314 = arith.divf %312, %313 : vector<8x128xf32>
    %315 = vector.extract_strided_slice %308 {offsets = [0, 128], sizes = [8, 128], strides = [1, 1]} : vector<8x512xf32> to vector<8x128xf32>
    %316 = arith.negf %315 : vector<8x128xf32>
    %317 = math.exp %316 : vector<8x128xf32>
    %cst_115 = arith.constant 1.000000e+00 : f32
    %318 = vector.broadcast %cst_115 : f32 to vector<8x128xf32>
    %319 = arith.addf %318, %317 : vector<8x128xf32>
    %320 = arith.divf %318, %319 : vector<8x128xf32>
    %321 = vector.extract_strided_slice %308 {offsets = [0, 256], sizes = [8, 128], strides = [1, 1]} : vector<8x512xf32> to vector<8x128xf32>
    %322 = math.tanh %321 : vector<8x128xf32>
    %323 = vector.extract_strided_slice %308 {offsets = [0, 384], sizes = [8, 128], strides = [1, 1]} : vector<8x512xf32> to vector<8x128xf32>
    %324 = arith.negf %323 : vector<8x128xf32>
    %325 = math.exp %324 : vector<8x128xf32>
    %cst_116 = arith.constant 1.000000e+00 : f32
    %326 = vector.broadcast %cst_116 : f32 to vector<8x128xf32>
    %327 = arith.addf %326, %325 : vector<8x128xf32>
    %328 = arith.divf %326, %327 : vector<8x128xf32>
    %329 = arith.mulf %320, %301 : vector<8x128xf32>
    %330 = arith.mulf %314, %322 : vector<8x128xf32>
    %331 = arith.addf %329, %330 : vector<8x128xf32>
    %332 = math.tanh %331 : vector<8x128xf32>
    %333 = arith.mulf %328, %332 : vector<8x128xf32>
    %c2_117 = arith.constant 2 : index
    %c0_118 = arith.constant 0 : index
    %c0_119 = arith.constant 0 : index
    %334 = vector.load %arg9[%c2_117, %c0_118, %c0_119] : memref<8x8x512xf32, #tpu.memory_space<vmem>>, vector<1x8x512xf32>
    %335 = vector.shape_cast %334 : vector<1x8x512xf32> to vector<8x512xf32>
    %c0_120 = arith.constant 0 : index
    %c0_121 = arith.constant 0 : index
    %336 = vector.load %arg4[%c0_120, %c0_121] : memref<128x512xf32, #tpu.memory_space<vmem>>, vector<128x512xf32>
    %cst_122 = arith.constant dense<0.000000e+00> : vector<8x512xf32>
    %337 = tpu.matmul %333, %336, %cst_122 {dimension_numbers = #tpu.dot_dimension_numbers<[1], [0], [0], [1], [0, 0, 1, 1], [], []>} : vector<8x128xf32>, vector<128x512xf32>, vector<8x512xf32> -> vector<8x512xf32>
    %338 = arith.addf %335, %337 : vector<8x512xf32>
    %339 = vector.extract_strided_slice %338 {offsets = [0, 0], sizes = [8, 128], strides = [1, 1]} : vector<8x512xf32> to vector<8x128xf32>
    %340 = arith.negf %339 : vector<8x128xf32>
    %341 = math.exp %340 : vector<8x128xf32>
    %cst_123 = arith.constant 1.000000e+00 : f32
    %342 = vector.broadcast %cst_123 : f32 to vector<8x128xf32>
    %343 = arith.addf %342, %341 : vector<8x128xf32>
    %344 = arith.divf %342, %343 : vector<8x128xf32>
    %345 = vector.extract_strided_slice %338 {offsets = [0, 128], sizes = [8, 128], strides = [1, 1]} : vector<8x512xf32> to vector<8x128xf32>
    %346 = arith.negf %345 : vector<8x128xf32>
    %347 = math.exp %346 : vector<8x128xf32>
    %cst_124 = arith.constant 1.000000e+00 : f32
    %348 = vector.broadcast %cst_124 : f32 to vector<8x128xf32>
    %349 = arith.addf %348, %347 : vector<8x128xf32>
    %350 = arith.divf %348, %349 : vector<8x128xf32>
    %351 = vector.extract_strided_slice %338 {offsets = [0, 256], sizes = [8, 128], strides = [1, 1]} : vector<8x512xf32> to vector<8x128xf32>
    %352 = math.tanh %351 : vector<8x128xf32>
    %353 = vector.extract_strided_slice %338 {offsets = [0, 384], sizes = [8, 128], strides = [1, 1]} : vector<8x512xf32> to vector<8x128xf32>
    %354 = arith.negf %353 : vector<8x128xf32>
    %355 = math.exp %354 : vector<8x128xf32>
    %cst_125 = arith.constant 1.000000e+00 : f32
    %356 = vector.broadcast %cst_125 : f32 to vector<8x128xf32>
    %357 = arith.addf %356, %355 : vector<8x128xf32>
    %358 = arith.divf %356, %357 : vector<8x128xf32>
    %359 = arith.mulf %350, %331 : vector<8x128xf32>
    %360 = arith.mulf %344, %352 : vector<8x128xf32>
    %361 = arith.addf %359, %360 : vector<8x128xf32>
    %362 = math.tanh %361 : vector<8x128xf32>
    %363 = arith.mulf %358, %362 : vector<8x128xf32>
    %c3_126 = arith.constant 3 : index
    %c0_127 = arith.constant 0 : index
    %c0_128 = arith.constant 0 : index
    %364 = vector.load %arg9[%c3_126, %c0_127, %c0_128] : memref<8x8x512xf32, #tpu.memory_space<vmem>>, vector<1x8x512xf32>
    %365 = vector.shape_cast %364 : vector<1x8x512xf32> to vector<8x512xf32>
    %c0_129 = arith.constant 0 : index
    %c0_130 = arith.constant 0 : index
    %366 = vector.load %arg4[%c0_129, %c0_130] : memref<128x512xf32, #tpu.memory_space<vmem>>, vector<128x512xf32>
    %cst_131 = arith.constant dense<0.000000e+00> : vector<8x512xf32>
    %367 = tpu.matmul %363, %366, %cst_131 {dimension_numbers = #tpu.dot_dimension_numbers<[1], [0], [0], [1], [0, 0, 1, 1], [], []>} : vector<8x128xf32>, vector<128x512xf32>, vector<8x512xf32> -> vector<8x512xf32>
    %368 = arith.addf %365, %367 : vector<8x512xf32>
    %369 = vector.extract_strided_slice %368 {offsets = [0, 0], sizes = [8, 128], strides = [1, 1]} : vector<8x512xf32> to vector<8x128xf32>
    %370 = arith.negf %369 : vector<8x128xf32>
    %371 = math.exp %370 : vector<8x128xf32>
    %cst_132 = arith.constant 1.000000e+00 : f32
    %372 = vector.broadcast %cst_132 : f32 to vector<8x128xf32>
    %373 = arith.addf %372, %371 : vector<8x128xf32>
    %374 = arith.divf %372, %373 : vector<8x128xf32>
    %375 = vector.extract_strided_slice %368 {offsets = [0, 128], sizes = [8, 128], strides = [1, 1]} : vector<8x512xf32> to vector<8x128xf32>
    %376 = arith.negf %375 : vector<8x128xf32>
    %377 = math.exp %376 : vector<8x128xf32>
    %cst_133 = arith.constant 1.000000e+00 : f32
    %378 = vector.broadcast %cst_133 : f32 to vector<8x128xf32>
    %379 = arith.addf %378, %377 : vector<8x128xf32>
    %380 = arith.divf %378, %379 : vector<8x128xf32>
    %381 = vector.extract_strided_slice %368 {offsets = [0, 256], sizes = [8, 128], strides = [1, 1]} : vector<8x512xf32> to vector<8x128xf32>
    %382 = math.tanh %381 : vector<8x128xf32>
    %383 = vector.extract_strided_slice %368 {offsets = [0, 384], sizes = [8, 128], strides = [1, 1]} : vector<8x512xf32> to vector<8x128xf32>
    %384 = arith.negf %383 : vector<8x128xf32>
    %385 = math.exp %384 : vector<8x128xf32>
    %cst_134 = arith.constant 1.000000e+00 : f32
    %386 = vector.broadcast %cst_134 : f32 to vector<8x128xf32>
    %387 = arith.addf %386, %385 : vector<8x128xf32>
    %388 = arith.divf %386, %387 : vector<8x128xf32>
    %389 = arith.mulf %380, %361 : vector<8x128xf32>
    %390 = arith.mulf %374, %382 : vector<8x128xf32>
    %391 = arith.addf %389, %390 : vector<8x128xf32>
    %392 = math.tanh %391 : vector<8x128xf32>
    %393 = arith.mulf %388, %392 : vector<8x128xf32>
    %c4_135 = arith.constant 4 : index
    %c0_136 = arith.constant 0 : index
    %c0_137 = arith.constant 0 : index
    %394 = vector.load %arg9[%c4_135, %c0_136, %c0_137] : memref<8x8x512xf32, #tpu.memory_space<vmem>>, vector<1x8x512xf32>
    %395 = vector.shape_cast %394 : vector<1x8x512xf32> to vector<8x512xf32>
    %c0_138 = arith.constant 0 : index
    %c0_139 = arith.constant 0 : index
    %396 = vector.load %arg4[%c0_138, %c0_139] : memref<128x512xf32, #tpu.memory_space<vmem>>, vector<128x512xf32>
    %cst_140 = arith.constant dense<0.000000e+00> : vector<8x512xf32>
    %397 = tpu.matmul %393, %396, %cst_140 {dimension_numbers = #tpu.dot_dimension_numbers<[1], [0], [0], [1], [0, 0, 1, 1], [], []>} : vector<8x128xf32>, vector<128x512xf32>, vector<8x512xf32> -> vector<8x512xf32>
    %398 = arith.addf %395, %397 : vector<8x512xf32>
    %399 = vector.extract_strided_slice %398 {offsets = [0, 0], sizes = [8, 128], strides = [1, 1]} : vector<8x512xf32> to vector<8x128xf32>
    %400 = arith.negf %399 : vector<8x128xf32>
    %401 = math.exp %400 : vector<8x128xf32>
    %cst_141 = arith.constant 1.000000e+00 : f32
    %402 = vector.broadcast %cst_141 : f32 to vector<8x128xf32>
    %403 = arith.addf %402, %401 : vector<8x128xf32>
    %404 = arith.divf %402, %403 : vector<8x128xf32>
    %405 = vector.extract_strided_slice %398 {offsets = [0, 128], sizes = [8, 128], strides = [1, 1]} : vector<8x512xf32> to vector<8x128xf32>
    %406 = arith.negf %405 : vector<8x128xf32>
    %407 = math.exp %406 : vector<8x128xf32>
    %cst_142 = arith.constant 1.000000e+00 : f32
    %408 = vector.broadcast %cst_142 : f32 to vector<8x128xf32>
    %409 = arith.addf %408, %407 : vector<8x128xf32>
    %410 = arith.divf %408, %409 : vector<8x128xf32>
    %411 = vector.extract_strided_slice %398 {offsets = [0, 256], sizes = [8, 128], strides = [1, 1]} : vector<8x512xf32> to vector<8x128xf32>
    %412 = math.tanh %411 : vector<8x128xf32>
    %413 = vector.extract_strided_slice %398 {offsets = [0, 384], sizes = [8, 128], strides = [1, 1]} : vector<8x512xf32> to vector<8x128xf32>
    %414 = arith.negf %413 : vector<8x128xf32>
    %415 = math.exp %414 : vector<8x128xf32>
    %cst_143 = arith.constant 1.000000e+00 : f32
    %416 = vector.broadcast %cst_143 : f32 to vector<8x128xf32>
    %417 = arith.addf %416, %415 : vector<8x128xf32>
    %418 = arith.divf %416, %417 : vector<8x128xf32>
    %419 = arith.mulf %410, %391 : vector<8x128xf32>
    %420 = arith.mulf %404, %412 : vector<8x128xf32>
    %421 = arith.addf %419, %420 : vector<8x128xf32>
    %422 = math.tanh %421 : vector<8x128xf32>
    %423 = arith.mulf %418, %422 : vector<8x128xf32>
    %c5_144 = arith.constant 5 : index
    %c0_145 = arith.constant 0 : index
    %c0_146 = arith.constant 0 : index
    %424 = vector.load %arg9[%c5_144, %c0_145, %c0_146] : memref<8x8x512xf32, #tpu.memory_space<vmem>>, vector<1x8x512xf32>
    %425 = vector.shape_cast %424 : vector<1x8x512xf32> to vector<8x512xf32>
    %c0_147 = arith.constant 0 : index
    %c0_148 = arith.constant 0 : index
    %426 = vector.load %arg4[%c0_147, %c0_148] : memref<128x512xf32, #tpu.memory_space<vmem>>, vector<128x512xf32>
    %cst_149 = arith.constant dense<0.000000e+00> : vector<8x512xf32>
    %427 = tpu.matmul %423, %426, %cst_149 {dimension_numbers = #tpu.dot_dimension_numbers<[1], [0], [0], [1], [0, 0, 1, 1], [], []>} : vector<8x128xf32>, vector<128x512xf32>, vector<8x512xf32> -> vector<8x512xf32>
    %428 = arith.addf %425, %427 : vector<8x512xf32>
    %429 = vector.extract_strided_slice %428 {offsets = [0, 0], sizes = [8, 128], strides = [1, 1]} : vector<8x512xf32> to vector<8x128xf32>
    %430 = arith.negf %429 : vector<8x128xf32>
    %431 = math.exp %430 : vector<8x128xf32>
    %cst_150 = arith.constant 1.000000e+00 : f32
    %432 = vector.broadcast %cst_150 : f32 to vector<8x128xf32>
    %433 = arith.addf %432, %431 : vector<8x128xf32>
    %434 = arith.divf %432, %433 : vector<8x128xf32>
    %435 = vector.extract_strided_slice %428 {offsets = [0, 128], sizes = [8, 128], strides = [1, 1]} : vector<8x512xf32> to vector<8x128xf32>
    %436 = arith.negf %435 : vector<8x128xf32>
    %437 = math.exp %436 : vector<8x128xf32>
    %cst_151 = arith.constant 1.000000e+00 : f32
    %438 = vector.broadcast %cst_151 : f32 to vector<8x128xf32>
    %439 = arith.addf %438, %437 : vector<8x128xf32>
    %440 = arith.divf %438, %439 : vector<8x128xf32>
    %441 = vector.extract_strided_slice %428 {offsets = [0, 256], sizes = [8, 128], strides = [1, 1]} : vector<8x512xf32> to vector<8x128xf32>
    %442 = math.tanh %441 : vector<8x128xf32>
    %443 = vector.extract_strided_slice %428 {offsets = [0, 384], sizes = [8, 128], strides = [1, 1]} : vector<8x512xf32> to vector<8x128xf32>
    %444 = arith.negf %443 : vector<8x128xf32>
    %445 = math.exp %444 : vector<8x128xf32>
    %cst_152 = arith.constant 1.000000e+00 : f32
    %446 = vector.broadcast %cst_152 : f32 to vector<8x128xf32>
    %447 = arith.addf %446, %445 : vector<8x128xf32>
    %448 = arith.divf %446, %447 : vector<8x128xf32>
    %449 = arith.mulf %440, %421 : vector<8x128xf32>
    %450 = arith.mulf %434, %442 : vector<8x128xf32>
    %451 = arith.addf %449, %450 : vector<8x128xf32>
    %452 = math.tanh %451 : vector<8x128xf32>
    %453 = arith.mulf %448, %452 : vector<8x128xf32>
    %c6_153 = arith.constant 6 : index
    %c0_154 = arith.constant 0 : index
    %c0_155 = arith.constant 0 : index
    %454 = vector.load %arg9[%c6_153, %c0_154, %c0_155] : memref<8x8x512xf32, #tpu.memory_space<vmem>>, vector<1x8x512xf32>
    %455 = vector.shape_cast %454 : vector<1x8x512xf32> to vector<8x512xf32>
    %c0_156 = arith.constant 0 : index
    %c0_157 = arith.constant 0 : index
    %456 = vector.load %arg4[%c0_156, %c0_157] : memref<128x512xf32, #tpu.memory_space<vmem>>, vector<128x512xf32>
    %cst_158 = arith.constant dense<0.000000e+00> : vector<8x512xf32>
    %457 = tpu.matmul %453, %456, %cst_158 {dimension_numbers = #tpu.dot_dimension_numbers<[1], [0], [0], [1], [0, 0, 1, 1], [], []>} : vector<8x128xf32>, vector<128x512xf32>, vector<8x512xf32> -> vector<8x512xf32>
    %458 = arith.addf %455, %457 : vector<8x512xf32>
    %459 = vector.extract_strided_slice %458 {offsets = [0, 0], sizes = [8, 128], strides = [1, 1]} : vector<8x512xf32> to vector<8x128xf32>
    %460 = arith.negf %459 : vector<8x128xf32>
    %461 = math.exp %460 : vector<8x128xf32>
    %cst_159 = arith.constant 1.000000e+00 : f32
    %462 = vector.broadcast %cst_159 : f32 to vector<8x128xf32>
    %463 = arith.addf %462, %461 : vector<8x128xf32>
    %464 = arith.divf %462, %463 : vector<8x128xf32>
    %465 = vector.extract_strided_slice %458 {offsets = [0, 128], sizes = [8, 128], strides = [1, 1]} : vector<8x512xf32> to vector<8x128xf32>
    %466 = arith.negf %465 : vector<8x128xf32>
    %467 = math.exp %466 : vector<8x128xf32>
    %cst_160 = arith.constant 1.000000e+00 : f32
    %468 = vector.broadcast %cst_160 : f32 to vector<8x128xf32>
    %469 = arith.addf %468, %467 : vector<8x128xf32>
    %470 = arith.divf %468, %469 : vector<8x128xf32>
    %471 = vector.extract_strided_slice %458 {offsets = [0, 256], sizes = [8, 128], strides = [1, 1]} : vector<8x512xf32> to vector<8x128xf32>
    %472 = math.tanh %471 : vector<8x128xf32>
    %473 = vector.extract_strided_slice %458 {offsets = [0, 384], sizes = [8, 128], strides = [1, 1]} : vector<8x512xf32> to vector<8x128xf32>
    %474 = arith.negf %473 : vector<8x128xf32>
    %475 = math.exp %474 : vector<8x128xf32>
    %cst_161 = arith.constant 1.000000e+00 : f32
    %476 = vector.broadcast %cst_161 : f32 to vector<8x128xf32>
    %477 = arith.addf %476, %475 : vector<8x128xf32>
    %478 = arith.divf %476, %477 : vector<8x128xf32>
    %479 = arith.mulf %470, %451 : vector<8x128xf32>
    %480 = arith.mulf %464, %472 : vector<8x128xf32>
    %481 = arith.addf %479, %480 : vector<8x128xf32>
    %482 = math.tanh %481 : vector<8x128xf32>
    %483 = arith.mulf %478, %482 : vector<8x128xf32>
    %c7_162 = arith.constant 7 : index
    %c0_163 = arith.constant 0 : index
    %c0_164 = arith.constant 0 : index
    %484 = vector.load %arg9[%c7_162, %c0_163, %c0_164] : memref<8x8x512xf32, #tpu.memory_space<vmem>>, vector<1x8x512xf32>
    %485 = vector.shape_cast %484 : vector<1x8x512xf32> to vector<8x512xf32>
    %c0_165 = arith.constant 0 : index
    %c0_166 = arith.constant 0 : index
    %486 = vector.load %arg4[%c0_165, %c0_166] : memref<128x512xf32, #tpu.memory_space<vmem>>, vector<128x512xf32>
    %cst_167 = arith.constant dense<0.000000e+00> : vector<8x512xf32>
    %487 = tpu.matmul %483, %486, %cst_167 {dimension_numbers = #tpu.dot_dimension_numbers<[1], [0], [0], [1], [0, 0, 1, 1], [], []>} : vector<8x128xf32>, vector<128x512xf32>, vector<8x512xf32> -> vector<8x512xf32>
    %488 = arith.addf %485, %487 : vector<8x512xf32>
    %489 = vector.extract_strided_slice %488 {offsets = [0, 0], sizes = [8, 128], strides = [1, 1]} : vector<8x512xf32> to vector<8x128xf32>
    %490 = arith.negf %489 : vector<8x128xf32>
    %491 = math.exp %490 : vector<8x128xf32>
    %cst_168 = arith.constant 1.000000e+00 : f32
    %492 = vector.broadcast %cst_168 : f32 to vector<8x128xf32>
    %493 = arith.addf %492, %491 : vector<8x128xf32>
    %494 = arith.divf %492, %493 : vector<8x128xf32>
    %495 = vector.extract_strided_slice %488 {offsets = [0, 128], sizes = [8, 128], strides = [1, 1]} : vector<8x512xf32> to vector<8x128xf32>
    %496 = arith.negf %495 : vector<8x128xf32>
    %497 = math.exp %496 : vector<8x128xf32>
    %cst_169 = arith.constant 1.000000e+00 : f32
    %498 = vector.broadcast %cst_169 : f32 to vector<8x128xf32>
    %499 = arith.addf %498, %497 : vector<8x128xf32>
    %500 = arith.divf %498, %499 : vector<8x128xf32>
    %501 = vector.extract_strided_slice %488 {offsets = [0, 256], sizes = [8, 128], strides = [1, 1]} : vector<8x512xf32> to vector<8x128xf32>
    %502 = math.tanh %501 : vector<8x128xf32>
    %503 = vector.extract_strided_slice %488 {offsets = [0, 384], sizes = [8, 128], strides = [1, 1]} : vector<8x512xf32> to vector<8x128xf32>
    %504 = arith.negf %503 : vector<8x128xf32>
    %505 = math.exp %504 : vector<8x128xf32>
    %cst_170 = arith.constant 1.000000e+00 : f32
    %506 = vector.broadcast %cst_170 : f32 to vector<8x128xf32>
    %507 = arith.addf %506, %505 : vector<8x128xf32>
    %508 = arith.divf %506, %507 : vector<8x128xf32>
    %509 = arith.mulf %500, %481 : vector<8x128xf32>
    %510 = arith.mulf %494, %502 : vector<8x128xf32>
    %511 = arith.addf %509, %510 : vector<8x128xf32>
    %512 = math.tanh %511 : vector<8x128xf32>
    %513 = arith.mulf %508, %512 : vector<8x128xf32>
    %c0_171 = arith.constant 0 : index
    %c0_172 = arith.constant 0 : index
    %514 = vector.load %arg5[%c0_171, %c0_172] : memref<128x128xf32, #tpu.memory_space<vmem>>, vector<128x128xf32>
    %cst_173 = arith.constant dense<0.000000e+00> : vector<8x128xf32>
    %515 = tpu.matmul %513, %514, %cst_173 {dimension_numbers = #tpu.dot_dimension_numbers<[1], [0], [0], [1], [0, 0, 1, 1], [], []>} : vector<8x128xf32>, vector<128x128xf32>, vector<8x128xf32> -> vector<8x128xf32>
    %c0_174 = arith.constant 0 : index
    %c0_175 = arith.constant 0 : index
    %516 = vector.load %arg6[%c0_174, %c0_175] : memref<1x128xf32, #tpu.memory_space<vmem>>, vector<1x128xf32>
    %517 = vector.broadcast %516 : vector<1x128xf32> to vector<8x128xf32>
    %518 = arith.addf %515, %517 : vector<8x128xf32>
    %c0_176 = arith.constant 0 : index
    %c0_177 = arith.constant 0 : index
    %519 = vector.load %arg7[%c0_176, %c0_177] : memref<8x128xf32, #tpu.memory_space<vmem>>, vector<8x128xf32>
    tpu.vector_store %arg7[%c0_176, %c0_177], %518 {strides = array<i32>} : memref<8x128xf32, #tpu.memory_space<vmem>>, vector<8x128xf32>,
    return
  }
}

</mosaic_0001>

<bundles_post_ra>
// kernel: tpu_custom_call.1
= control target key start
LH: loop header
LB: loop body
LE: loop exit
PB: predicated region body
PF: predicated region fallthrough
CT: control target
= control target key end

     0   :  { %12 = vsyncpa [#allocation5], 0  ;;  %s6680_s0 = inlined_call_operand.hbm [shape: f32[8,8,512], index: 0, kind: input, shape index: {}]   ;;  %s6681_s1 = inlined_call_operand.hbm [shape: f32[128,512], index: 1, kind: input, shape index: {}]   ;;  %s6682_s2 = inlined_call_operand.hbm [shape: f32[128,512], index: 2, kind: input, shape index: {}]   ;;  %s6683_s3 = inlined_call_operand.vmem [shape: f32[1,512], index: 3, kind: input, shape index: {}]   ;;  %s6684_s4 = inlined_call_operand.hbm [shape: f32[128,512], index: 4, kind: input, shape index: {}]   ;;  %s6685_s5 = inlined_call_operand.hbm [shape: f32[128,128], index: 5, kind: input, shape index: {}]   ;;  %s6686_s6 = inlined_call_operand.vmem [shape: f32[1,128], index: 6, kind: input, shape index: {}]   ;;  %s6687_s7 = inlined_call_operand.hbm [shape: f32[8,128], index: 7, kind: output, shape index: {}]  }
   0x1   :  { %13 = vsyncpa [#allocation8], 0 }
   0x2   :  { %14 = vsyncpa [#allocation11], 0 }
   0x3   :  { %15 = vsyncpa [#allocation6], 0  ;;  %s5633_s24 = smov [#allocation7]   ;;  %s5634_s26 = smov [#allocation10]  }
   0x4   :  { %s33_s25 = sshll.u32 %s5633_s24, 4  ;;  %s59_s27 = sshll.u32 %s5634_s26, 4  ;;  %s34_s25 = int_to_ptr.vmem [resolvable:$true] %s33_s25  ;;  %s5686_s27 = int_to_ptr.vmem [resolvable:$true] %s59_s27 }
   0x5   :  { %s5493_s30 = scalar_lea.hbm %s6681_s1, 8192 }
   0x6   :  { %p5494_p0 = scmp.ne.s32.totalorder %s6681_s1, %s5493_s30  ;;  %p5497_p1 = scmp.lt.u32.totalorder %s5493_s30, %s6681_s1 }
   0x8   :  { %p5499_p2 = pnand %p5497_p1, %p5494_p0 }
   0xa   :  { %5502 = shalt.err (!%p5499_p2)
}
   0xb   :  { %s5503_s12 = scalar_lea.vmem %s34_s25, 8192  ;;  %p5508_p4 = scmp.lt.s32.totalorder %s34_s25, %s34_s25 }
   0xc   :  { %p5504_p3 = scmp.ne.s32.totalorder %s34_s25, %s5503_s12  ;;  %p5509_p5 = scmp.lt.s32.totalorder %s5503_s12, %s5503_s12 }
   0xe   :  { %p5510_p6 = por %p5509_p5, %p5508_p4 }
  0x10   :  { %p5511_p7 = pnand %p5510_p6, %p5504_p3 }
  0x12   :  { %5514 = shalt.err (!%p5511_p7)
}
  0x13   :  { %s5635_s13 = smov 512   ;;  %s5636_s14 = smov 32  }
  0x14   :  { %39 = dma.hbm_to_vmem [thread:$0]  %s6681_s1, 8192, %s34_s25, [#allocation8], %s5635_s13, %s5635_s13, %s5636_s14  }
  0x15   :  { %s5515_s19 = scalar_lea.hbm %s6684_s4, 8192 }
  0x16   :  { %p5516_p8 = scmp.ne.s32.totalorder %s6684_s4, %s5515_s19  ;;  %p5519_p9 = scmp.lt.u32.totalorder %s5515_s19, %s6684_s4 }
  0x18   :  { %p5521_p10 = pnand %p5519_p9, %p5516_p8 }
  0x1a   :  { %5524 = shalt.err (!%p5521_p10)
}
  0x1b   :  { %s5525_s24 = scalar_lea.vmem %s5686_s27, 8192  ;;  %p5530_p12 = scmp.lt.s32.totalorder %s5686_s27, %s5686_s27 }
  0x1c   :  { %p5526_p11 = scmp.ne.s32.totalorder %s5686_s27, %s5525_s24  ;;  %p5531_p13 = scmp.lt.s32.totalorder %s5525_s24, %s5525_s24 }
  0x1e   :  { %p5532_p0 = por %p5531_p13, %p5530_p12 }
  0x20   :  { %p5533_p1 = pnand %p5532_p0, %p5526_p11 }
  0x22   :  { %5536 = shalt.err (!%p5533_p1)
}
  0x23   :  { %65 = dma.hbm_to_vmem [thread:$0]  %s6684_s4, 8192, %s5686_s27, [#allocation11], %s5635_s13, %s5635_s13, %s5636_s14  }
  0x24   :  { %s5637_s26 = smov [#allocation4]   ;;  %s5638_s29 = smov [#allocation9]  }
  0x25   :  { %s21_s28 = sshll.u32 %s5637_s26, 4  ;;  %s45_s30 = sshll.u32 %s5638_s29, 4  ;;  %s22_s28 = int_to_ptr.vmem [resolvable:$true] %s21_s28  ;;  %s5723_s30 = int_to_ptr.vmem [resolvable:$true] %s45_s30 }
  0x26   :  { %s5537_s10 = scalar_lea.hbm %s6680_s0, 4096 }
  0x27   :  { %p5538_p2 = scmp.ne.s32.totalorder %s6680_s0, %s5537_s10  ;;  %p5541_p3 = scmp.lt.u32.totalorder %s5537_s10, %s6680_s0 }
  0x29   :  { %p5543_p4 = pnand %p5541_p3, %p5538_p2 }
  0x2b   :  { %5546 = shalt.err (!%p5543_p4)
}
  0x2c   :  { %s5547_s4 = scalar_lea.vmem %s22_s28, 4096  ;;  %p5552_p6 = scmp.lt.s32.totalorder %s22_s28, %s22_s28 }
  0x2d   :  { %p5548_p5 = scmp.ne.s32.totalorder %s22_s28, %s5547_s4  ;;  %p5553_p7 = scmp.lt.s32.totalorder %s5547_s4, %s5547_s4 }
  0x2f   :  { %p5554_p8 = por %p5553_p7, %p5552_p6 }
  0x31   :  { %p5555_p9 = pnand %p5554_p8, %p5548_p5 }
  0x33   :  { %5558 = shalt.err (!%p5555_p9)
}
  0x34   :  { %27 = dma.hbm_to_vmem [thread:$0]  %s6680_s0, 4096, %s22_s28, [#allocation5], %s5635_s13, %s5635_s13, %s5636_s14  }
  0x35   :  { %s5559_s20 = scalar_lea.hbm %s6682_s2, 8192 }
  0x36   :  { %p5560_p10 = scmp.ne.s32.totalorder %s6682_s2, %s5559_s20  ;;  %p5563_p11 = scmp.lt.u32.totalorder %s5559_s20, %s6682_s2 }
  0x38   :  { %p5565_p12 = pnand %p5563_p11, %p5560_p10 }
  0x3a   :  { %5568 = shalt.err (!%p5565_p12)
}
  0x3b   :  { %s5569_s1 = scalar_lea.vmem %s5723_s30, 8192  ;;  %p5574_p0 = scmp.lt.s32.totalorder %s5723_s30, %s5723_s30 }
  0x3c   :  { %p5570_p13 = scmp.ne.s32.totalorder %s5723_s30, %s5569_s1  ;;  %p5575_p1 = scmp.lt.s32.totalorder %s5569_s1, %s5569_s1 }
  0x3e   :  { %p5576_p2 = por %p5575_p1, %p5574_p0 }
  0x40   :  { %p5577_p3 = pnand %p5576_p2, %p5570_p13 }
  0x42   :  { %5580 = shalt.err (!%p5577_p3)
}
  0x43   :  { %51 = dma.hbm_to_vmem [thread:$0]  %s6682_s2, 8192, %s5723_s30, [#allocation8], %s5635_s13, %s5635_s13, %s5636_s14  }
  0x44   :  { %s5639_s26 = smov [#allocation12]   ;;  %s5581_s9 = scalar_lea.hbm %s6685_s5, 2048 }
  0x45   :  { %s71_s28 = sshll.u32 %s5639_s26, 4  ;;  %p5582_p4 = scmp.ne.s32.totalorder %s6685_s5, %s5581_s9  ;;  %s72_s28 = int_to_ptr.vmem [resolvable:$true] %s71_s28 }
  0x46   :  { %p5585_p5 = scmp.lt.u32.totalorder %s5581_s9, %s6685_s5 }
  0x48   :  { %p5587_p6 = pnand %p5585_p5, %p5582_p4 }
  0x4a   :  { %5590 = shalt.err (!%p5587_p6)
}
  0x4b   :  { %s5591_s16 = scalar_lea.vmem %s72_s28, 2048  ;;  %p5596_p8 = scmp.lt.s32.totalorder %s72_s28, %s72_s28 }
  0x4c   :  { %p5592_p7 = scmp.ne.s32.totalorder %s72_s28, %s5591_s16  ;;  %p5597_p9 = scmp.lt.s32.totalorder %s5591_s16, %s5591_s16 }
  0x4e   :  { %p5598_p10 = por %p5597_p9, %p5596_p8 }
  0x50   :  { %p5599_p11 = pnand %p5598_p10, %p5592_p7 }
  0x52   :  { %5602 = shalt.err (!%p5599_p11)
}
  0x53   :  { %s5640_s2 = smov 128   ;;  %s5641_s13 = smov 8  }
  0x54   :  { %77 = dma.hbm_to_vmem [thread:$0]  %s6685_s5, 2048, %s72_s28, [#allocation11], %s5640_s2, %s5640_s2, %s5641_s13  }
  0x55   :  { %5625 = dma.done.wait [#allocation5], 4096  }
  0x56   :  { %5626 = vsyncadd [#allocation5], 4294963200 }
  0x57   :  { %5627 = dma.done.wait [#allocation8], 16384  }
  0x58   :  { %5628 = vsyncadd [#allocation8], 4294950912 }
  0x59   :  { %5629 = dma.done.wait [#allocation11], 10240  }
  0x5a   :  { %5630 = vsyncadd [#allocation11], 4294957056  ;;  %v5642_v0 = vmov 0.0   ;;  %v100_v1 = vld [vmem:[#allocation7 + $0x8] sm:$0xff]  ;;  %v99_v3 = vld [vmem:[#allocation7] sm:$0xff]  ;;  %vm5644_vm0 = vmmov 0  }
  0x5b   :  { %227 = vmatprep.mubr.f32.mxu0 %v5642_v0  ;;  %298 = vmatprep.mubr.f32.mxu1 %v5642_v0  ;;  %v104_v2 = vld [vmem:[#allocation7 + $0x28] sm:$0xff]  ;;  %v103_v5 = vld [vmem:[#allocation7 + $0x20] sm:$0xff]  ;;  %v102_v19 = vld [vmem:[#allocation7 + $0x18] sm:$0xff]  ;;  %s5645_s17 = smov [#allocation13]  }
  0x5c   :  { %v5774_v4 = vpack.c.bf16 %v104_v2, %v100_v1  ;;  %v108_v6 = vld [vmem:[#allocation7 + $0x48] sm:$0xff]  ;;  %v5776_v8 = vpack.c.bf16 %v103_v5, %v99_v3  ;;  %v107_v10 = vld [vmem:[#allocation7 + $0x40] sm:$0xff]  ;;  %v106_v20 = vld [vmem:[#allocation7 + $0x38] sm:$0xff]  ;;  %s3936_s18 = sshll.u32 %s5645_s17, 4  ;;  %s3937_s18 = int_to_ptr.vmem [resolvable:$true] %s3936_s18 }
  0x5d   :  { %v112_v7 = vld [vmem:[#allocation7 + $0x68] sm:$0xff]  ;;  %v111_v11 = vld [vmem:[#allocation7 + $0x60] sm:$0xff]  ;;  %v5787_v22 = vpack.c.bf16 %v106_v20, %v102_v19  ;;  %v101_v23 = vld [vmem:[#allocation7 + $0x10] sm:$0xff]  ;;  %s5603_s19 = scalar_lea.vmem %s3937_s18, 128  ;;  %p5608_p13 = scmp.lt.s32.totalorder %s3937_s18, %s3937_s18 }
  0x5e   :  { %v5778_v9 = vpack.c.bf16 %v112_v7, %v108_v6  ;;  %v116_v12 = vld [vmem:[#allocation7 + $0x88] sm:$0xff]  ;;  %4049 = vmatprep.subr.bf16.mxu0 %v5774_v4  ;;  %v5782_v14 = vpack.c.bf16 %v111_v11, %v107_v10  ;;  %v115_v15 = vld [vmem:[#allocation7 + $0x80] sm:$0xff]  ;;  %v105_v24 = vld [vmem:[#allocation7 + $0x30] sm:$0xff]  ;;  %p5604_p12 = scmp.ne.s32.totalorder %s3937_s18, %s5603_s19  ;;  %p5609_p0 = scmp.lt.s32.totalorder %s5603_s19, %s5603_s19 }
  0x5f   :  { %v120_v13 = vld [vmem:[#allocation7 + $0xa8] sm:$0xff]  ;;  %4051 = vmatpush1.bf16.msra.mxu0 %v5776_v8  ;;  %v119_v16 = vld [vmem:[#allocation7 + $0xa0] sm:$0xff]  ;;  %v5789_v25 = vpack.c.bf16 %v105_v24, %v101_v23  ;;  %4081 = vmatprep.subr.bf16.mxu1 %v5787_v22  ;;  %v110_v27 = vld [vmem:[#allocation7 + $0x58] sm:$0xff] }
  0x60   :  { %4053 = vmatprep.subr.bf16.mxu0 %v5778_v9  ;;  %v5785_v17 = vpack.c.bf16 %v120_v13, %v116_v12  ;;  %v124_v18 = vld [vmem:[#allocation7 + $0xc8] sm:$0xff]  ;;  %v5792_v26 = vpack.c.bf16 %v119_v16, %v115_v15  ;;  %v114_v28 = vld [vmem:[#allocation7 + $0x78] sm:$0xff]  ;;  %v109_v29 = vld [vmem:[#allocation7 + $0x50] sm:$0xff]  ;;  %p5610_p1 = por %p5609_p0, %p5608_p13 }
  0x61   :  { %v128_v21 = vld [vmem:[#allocation7 + $0xe8] sm:$0xff]  ;;  %v123_v31 = vld [vmem:[#allocation7 + $0xc0] sm:$0xff]  ;;  %4083 = vmatpush1.bf16.msra.mxu1 %v5789_v25  ;;  %v5799_v33 = vpack.c.bf16 %v114_v28, %v110_v27  ;;  %v113_v34 = vld [vmem:[#allocation7 + $0x70] sm:$0xff] }
  0x62   :  { %v5796_v30 = vpack.c.bf16 %v128_v21, %v124_v18  ;;  %v127_v32 = vld [vmem:[#allocation7 + $0xe0] sm:$0xff]  ;;  %v132_v35 = vld [vmem:[#allocation7 + $0x108] sm:$0xff]  ;;  %v5801_v37 = vpack.c.bf16 %v113_v34, %v109_v29  ;;  %v118_v38 = vld [vmem:[#allocation7 + $0x98] sm:$0xff]  ;;  %p5611_p2 = pnand %p5610_p1, %p5604_p12 }
  0x63   :  { %4055 = vmatpush1.bf16.msra.mxu0 %v5782_v14  ;;  %v136_v36 = vld [vmem:[#allocation7 + $0x128] sm:$0xff]  ;;  %4085 = vmatprep.subr.bf16.mxu1 %v5799_v33  ;;  %v122_v39 = vld [vmem:[#allocation7 + $0xb8] sm:$0xff]  ;;  %v117_v40 = vld [vmem:[#allocation7 + $0x90] sm:$0xff]  ;;  %v5805_v42 = vpack.c.bf16 %v127_v32, %v123_v31 }
  0x64   :  { %4057 = vmatprep.subr.bf16.mxu0 %v5785_v17  ;;  %v121_v41 = vld [vmem:[#allocation7 + $0xb0] sm:$0xff]  ;;  %v131_v43 = vld [vmem:[#allocation7 + $0x100] sm:$0xff]  ;;  %v5807_v45 = vpack.c.bf16 %v122_v39, %v118_v38  ;;  %v5810_v46 = vpack.c.bf16 %v136_v36, %v132_v35  ;;  %v140_v47 = vld [vmem:[#allocation7 + $0x148] sm:$0xff] }
  0x65   :  { %v135_v44 = vld [vmem:[#allocation7 + $0x120] sm:$0xff]  ;;  %4087 = vmatpush1.bf16.msra.mxu1 %v5801_v37  ;;  %v5813_v48 = vpack.c.bf16 %v121_v41, %v117_v40  ;;  %v126_v49 = vld [vmem:[#allocation7 + $0xd8] sm:$0xff]  ;;  %v144_v51 = vld [vmem:[#allocation7 + $0x168] sm:$0xff] }
  0x66   :  { %v130_v50 = vld [vmem:[#allocation7 + $0xf8] sm:$0xff]  ;;  %4089 = vmatprep.subr.bf16.mxu1 %v5807_v45  ;;  %v125_v53 = vld [vmem:[#allocation7 + $0xd0] sm:$0xff]  ;;  %v5819_v55 = vpack.c.bf16 %v135_v44, %v131_v43  ;;  %v5822_v58 = vpack.c.bf16 %v144_v51, %v140_v47  ;;  %v139_v59 = vld [vmem:[#allocation7 + $0x140] sm:$0xff] }
  0x67   :  { %4059 = vmatpush1.bf16.msra.mxu0 %v5792_v26  ;;  %v5816_v52 = vpack.c.bf16 %v130_v50, %v126_v49  ;;  %v129_v54 = vld [vmem:[#allocation7 + $0xf0] sm:$0xff]  ;;  %v134_v56 = vld [vmem:[#allocation7 + $0x118] sm:$0xff]  ;;  %v143_v60 = vld [vmem:[#allocation7 + $0x160] sm:$0xff] }
  0x68   :  { %4061 = vmatprep.subr.bf16.mxu0 %v5796_v30  ;;  %v138_v57 = vld [vmem:[#allocation7 + $0x138] sm:$0xff]  ;;  %v148_v61 = vld [vmem:[#allocation7 + $0x188] sm:$0xff]  ;;  %v5825_v62 = vpack.c.bf16 %v129_v54, %v125_v53  ;;  %v133_v2 = vld [vmem:[#allocation7 + $0x110] sm:$0xff]  ;;  %v5831_v7 = vpack.c.bf16 %v143_v60, %v139_v59 }
  0x69   :  { %4091 = vmatpush1.bf16.msra.mxu1 %v5813_v48  ;;  %v152_v63 = vld [vmem:[#allocation7 + $0x1a8] sm:$0xff]  ;;  %v5828_v1 = vpack.c.bf16 %v138_v57, %v134_v56  ;;  %v137_v3 = vld [vmem:[#allocation7 + $0x130] sm:$0xff]  ;;  %v142_v5 = vld [vmem:[#allocation7 + $0x158] sm:$0xff] }
  0x6a   :  { %4093 = vmatprep.subr.bf16.mxu1 %v5816_v52  ;;  %v146_v6 = vld [vmem:[#allocation7 + $0x178] sm:$0xff]  ;;  %v5834_v10 = vpack.c.bf16 %v152_v63, %v148_v61  ;;  %v147_v11 = vld [vmem:[#allocation7 + $0x180] sm:$0xff]  ;;  %v156_v13 = vld [vmem:[#allocation7 + $0x1c8] sm:$0xff]  ;;  %v5837_v15 = vpack.c.bf16 %v137_v3, %v133_v2 }
  0x6b   :  { %4063 = vmatpush1.bf16.msra.mxu0 %v5805_v42  ;;  %v151_v12 = vld [vmem:[#allocation7 + $0x1a0] sm:$0xff]  ;;  %v160_v16 = vld [vmem:[#allocation7 + $0x1e8] sm:$0xff]  ;;  %v5840_v18 = vpack.c.bf16 %v146_v6, %v142_v5  ;;  %v141_v19 = vld [vmem:[#allocation7 + $0x150] sm:$0xff] }
  0x6c   :  { %4065 = vmatprep.subr.bf16.mxu0 %v5810_v46  ;;  %v145_v20 = vld [vmem:[#allocation7 + $0x170] sm:$0xff]  ;;  %v150_v21 = vld [vmem:[#allocation7 + $0x198] sm:$0xff]  ;;  %v5843_v24 = vpack.c.bf16 %v151_v12, %v147_v11  ;;  %v5846_v27 = vpack.c.bf16 %v160_v16, %v156_v13  ;;  %v155_v28 = vld [vmem:[#allocation7 + $0x1c0] sm:$0xff] }
  0x6d   :  { %4095 = vmatpush1.bf16.msra.mxu1 %v5825_v62  ;;  %v154_v23 = vld [vmem:[#allocation7 + $0x1b8] sm:$0xff]  ;;  %v159_v29 = vld [vmem:[#allocation7 + $0x1e0] sm:$0xff]  ;;  %v5849_v31 = vpack.c.bf16 %v145_v20, %v141_v19  ;;  %v149_v34 = vld [vmem:[#allocation7 + $0x190] sm:$0xff] }
  0x6e   :  { %4097 = vmatprep.subr.bf16.mxu1 %v5828_v1  ;;  %v5852_v32 = vpack.c.bf16 %v154_v23, %v150_v21  ;;  %v153_v35 = vld [vmem:[#allocation7 + $0x1b0] sm:$0xff]  ;;  %v158_v36 = vld [vmem:[#allocation7 + $0x1d8] sm:$0xff]  ;;  %v5855_v39 = vpack.c.bf16 %v159_v29, %v155_v28  ;;  %v95_v49 = vld [vmem:[#allocation4] sm:$0xff] }
  0x6f   :  { %4067 = vmatpush1.bf16.msra.mxu0 %v5819_v55  ;;  %v162_v38 = vld [vmem:[#allocation7 + $0x1f8] sm:$0xff]  ;;  %v5859_v40 = vpack.c.bf16 %v153_v35, %v149_v34  ;;  %v157_v43 = vld [vmem:[#allocation7 + $0x1d0] sm:$0xff]  ;;  %v96_v50 = vld [vmem:[#allocation4 + $0x8] sm:$0xff] }
  0x70   :  { %4069 = vmatprep.subr.bf16.mxu0 %v5822_v58  ;;  %v5862_v41 = vpack.c.bf16 %v162_v38, %v158_v36  ;;  %v161_v44 = vld [vmem:[#allocation7 + $0x1f0] sm:$0xff]  ;;  %v98_v60 = vld [vmem:[#allocation4 + $0x18] sm:$0xff] }
  0x71   :  { %4099 = vmatpush1.bf16.msra.mxu1 %v5837_v15  ;;  %v5866_v47 = vpack.c.bf16 %v161_v44, %v157_v43  ;;  %v97_v3 = vld [vmem:[#allocation4 + $0x10] sm:$0xff] }
  0x72   :  { %4101 = vmatprep.subr.bf16.mxu1 %v5840_v18 }
  0x73   :  { %4071 = vmatpush1.bf16.msra.mxu0 %v5831_v7 }
  0x74   :  { %4073 = vmatprep.subr.bf16.mxu0 %v5834_v10 }
  0x75   :  { %4103 = vmatpush1.bf16.msra.mxu1 %v5849_v31 }
  0x76   :  { %4105 = vmatprep.subr.bf16.mxu1 %v5852_v32 }
  0x77   :  { %4075 = vmatpush1.bf16.msra.mxu0 %v5843_v24 }
  0x78   :  { %4077 = vmatprep.subr.bf16.mxu0 %v5846_v27 }
  0x79   :  { %4107 = vmatpush1.bf16.msra.mxu1 %v5859_v40 }
  0x7a   :  { %4109 = vmatprep.subr.bf16.mxu1 %v5862_v41 }
  0x7b   :  { %4079 = vmatpush1.bf16.msra.mxu0 %v5855_v39 }
  0x7c   :  { %4113 = vmatprep.subr.bf16.mxu0 %v5774_v4 }
  0x7d   :  { %4111 = vmatpush1.bf16.msra.mxu1 %v5866_v47 }
  0x7e   :  { %228 = vmatmul.mubr.f32.vlgmr.msra.gmra.mrb[0].mxu0 %v5642_v0  ;;  %4145 = vmatprep.subr.bf16.mxu1 %v5787_v22 }
  0x7f   :  { %4115 = vmatpush1.bf16.msra.mxu0 %v5776_v8  ;;  %467 = vmatprep.mubr.f32.mxu0 %v5642_v0 }
  0x80   :  { %4117 = vmatprep.subr.bf16.mxu0 %v5778_v9  ;;  %299 = vmatmul.mubr.f32.vlgmr.msra.gmra.mrb[0].mxu1 %v5642_v0 }
  0x81   :  { %4147 = vmatpush1.bf16.msra.mxu1 %v5789_v25  ;;  %538 = vmatprep.mubr.f32.mxu1 %v5642_v0 }
  0x82   :  { %4149 = vmatprep.subr.bf16.mxu1 %v5799_v33 }
  0x83   :  { %4119 = vmatpush1.bf16.msra.mxu0 %v5782_v14 }
  0x84   :  { %4121 = vmatprep.subr.bf16.mxu0 %v5785_v17 }
  0x85   :  { %4151 = vmatpush1.bf16.msra.mxu1 %v5801_v37 }
  0x86   :  { %4153 = vmatprep.subr.bf16.mxu1 %v5807_v45 }
  0x87   :  { %4123 = vmatpush1.bf16.msra.mxu0 %v5792_v26 }
  0x88   :  { %4125 = vmatprep.subr.bf16.mxu0 %v5796_v30 }
  0x89   :  { %4155 = vmatpush1.bf16.msra.mxu1 %v5813_v48 }
  0x8a   :  { %4157 = vmatprep.subr.bf16.mxu1 %v5816_v52 }
  0x8b   :  { %4127 = vmatpush1.bf16.msra.mxu0 %v5805_v42 }
  0x8c   :  { %4129 = vmatprep.subr.bf16.mxu0 %v5810_v46 }
  0x8d   :  { %4159 = vmatpush1.bf16.msra.mxu1 %v5825_v62 }
  0x8e   :  { %4161 = vmatprep.subr.bf16.mxu1 %v5828_v1 }
  0x8f   :  { %4131 = vmatpush1.bf16.msra.mxu0 %v5819_v55 }
  0x90   :  { %4133 = vmatprep.subr.bf16.mxu0 %v5822_v58 }
  0x91   :  { %4163 = vmatpush1.bf16.msra.mxu1 %v5837_v15 }
  0x92   :  { %4165 = vmatprep.subr.bf16.mxu1 %v5840_v18 }
  0x93   :  { %4135 = vmatpush1.bf16.msra.mxu0 %v5831_v7 }
  0x94   :  { %4137 = vmatprep.subr.bf16.mxu0 %v5834_v10 }
  0x95   :  { %4167 = vmatpush1.bf16.msra.mxu1 %v5849_v31 }
  0x96   :  { %4169 = vmatprep.subr.bf16.mxu1 %v5852_v32 }
  0x97   :  { %4139 = vmatpush1.bf16.msra.mxu0 %v5843_v24 }
  0x98   :  { %4141 = vmatprep.subr.bf16.mxu0 %v5846_v27 }
  0x99   :  { %4171 = vmatpush1.bf16.msra.mxu1 %v5859_v40 }
  0x9a   :  { %4173 = vmatprep.subr.bf16.mxu1 %v5862_v41 }
  0x9b   :  { %4143 = vmatpush1.bf16.msra.mxu0 %v5855_v39 }
  0x9c   :  { %4177 = vmatprep.subr.bf16.mxu0 %v5774_v4 }
  0x9d   :  { %4175 = vmatpush1.bf16.msra.mxu1 %v5866_v47 }
  0x9e   :  { %4209 = vmatprep.subr.bf16.mxu1 %v5787_v22 }
 0x151   :  { %v229_v51 = vpop.f32.mrb[0].mxu0 }
 0x152   :  { %v305_v53 = vadd.f32 %v229_v51, %v95_v49  ;;  %v231_v54 = vpop.f32.mrb[1].mxu0 }
 0x153   :  { %v306_v56 = vadd.f32 %v231_v54, %v96_v50  ;;  %v300_v61 = vpop.f32.mrb[0].mxu1 }
 0x154   :  { %v3947_v57 = vmul.f32 -1.442695, %v305_v53  ;;  %v302_v63 = vpop.f32.mrb[1].mxu1  ;;  %v307_v6 = vadd.f32 %v300_v61, %v97_v3 }
 0x155   :  { %v3948_v59 = vmul.f32 -1.442695, %v306_v56  ;;  %v308_v2 = vadd.f32 %v302_v63, %v98_v60  ;;  %v338_v56 = vld [vmem:[#allocation4 + $0x38] sm:$0xff] }
 0x156   :  { %5237 = vpow2.f32 %v3947_v57  ;;  %v337_v57 = vld [vmem:[#allocation4 + $0x30] sm:$0xff] }
 0x157   :  { %5239 = vpow2.f32 %v3948_v59  ;;  %v3949_v5 = vmul.f32 -1.442695, %v308_v2 }
 0x159   :  { %5241 = vpow2.f32 %v3949_v5 }
 0x15a   :  { %5243 = vtanh.f32 %v307_v6 }
 0x160   :  { %v5238_v11 = vpop.eup %5237 }
 0x161   :  { %v5240_v12 = vpop.eup %5239  ;;  %v312_v13 = vadd.f32 1.0, %v5238_v11 }
 0x162   :  { %v318_v16 = vadd.f32 1.0, %v5240_v12 }
 0x163   :  { %5245 = vrcp.f32 %v312_v13  ;;  %v5242_v19 = vpop.eup %5241 }
 0x164   :  { %5247 = vrcp.f32 %v318_v16  ;;  %v5244_v20 = vpop.eup %5243  ;;  %v325_v23 = vadd.f32 1.0, %v5242_v19 }
 0x166   :  { %5249 = vrcp.f32 %v325_v23 }
 0x16d   :  { %v5246_v21 = vpop.eup %5245 }
 0x16e   :  { %v5248_v28 = vpop.eup %5247  ;;  %v329_v29 = vmul.f32 %v5246_v21, %v5244_v20 }
 0x16f   :  { %v328_v34 = vmul.f32 0.0, %v5248_v28  ;;  %v579_v28 = vld [vmem:[#allocation4 + $0x58] sm:$0xff] }
 0x170   :  { %v5250_v36 = vpop.eup %5249 }
 0x171   :  { %v5908_v35 = vadd.f32 %v329_v29, %v328_v34  ;;  %v578_v34 = vld [vmem:[#allocation4 + $0x50] sm:$0xff] }
 0x173   :  { %5251 = vtanh.f32 %v5908_v35 }
 0x17d   :  { %v5252_v38 = vpop.eup %5251 }
 0x17e   :  { %v5911_v43 = vmul.f32 %v5252_v38, %v5250_v36 }
 0x180   :  { %468 = vmatmul.mubr.f32.vlgmr.msra.gmra.mrb[2].mxu0 %v5911_v43  ;;  %539 = vmatmul.mubr.f32.vlgmr.msra.gmra.mrb[2].mxu1 %v5911_v43 }
 0x181   :  { %4179 = vmatpush1.bf16.msra.mxu0 %v5776_v8  ;;  %4211 = vmatpush1.bf16.msra.mxu1 %v5789_v25 }
 0x182   :  { %4181 = vmatprep.subr.bf16.mxu0 %v5778_v9  ;;  %4213 = vmatprep.subr.bf16.mxu1 %v5799_v33 }
 0x183   :  { %708 = vmatprep.mubr.f32.mxu0 %v5642_v0  ;;  %779 = vmatprep.mubr.f32.mxu1 %v5642_v0 }
 0x185   :  { %4183 = vmatpush1.bf16.msra.mxu0 %v5782_v14  ;;  %4215 = vmatpush1.bf16.msra.mxu1 %v5801_v37 }
 0x186   :  { %4185 = vmatprep.subr.bf16.mxu0 %v5785_v17  ;;  %4217 = vmatprep.subr.bf16.mxu1 %v5807_v45 }
 0x189   :  { %4187 = vmatpush1.bf16.msra.mxu0 %v5792_v26  ;;  %4219 = vmatpush1.bf16.msra.mxu1 %v5813_v48 }
 0x18a   :  { %4189 = vmatprep.subr.bf16.mxu0 %v5796_v30  ;;  %4221 = vmatprep.subr.bf16.mxu1 %v5816_v52 }
 0x18d   :  { %4191 = vmatpush1.bf16.msra.mxu0 %v5805_v42  ;;  %4223 = vmatpush1.bf16.msra.mxu1 %v5825_v62  ;;  %v335_v42 = vld [vmem:[#allocation4 + $0x20] sm:$0xff] }
 0x18e   :  { %4193 = vmatprep.subr.bf16.mxu0 %v5810_v46  ;;  %4225 = vmatprep.subr.bf16.mxu1 %v5828_v1 }
 0x191   :  { %4195 = vmatpush1.bf16.msra.mxu0 %v5819_v55  ;;  %4227 = vmatpush1.bf16.msra.mxu1 %v5837_v15  ;;  %v336_v55 = vld [vmem:[#allocation4 + $0x28] sm:$0xff] }
 0x192   :  { %4197 = vmatprep.subr.bf16.mxu0 %v5822_v58  ;;  %4229 = vmatprep.subr.bf16.mxu1 %v5840_v18 }
 0x195   :  { %4199 = vmatpush1.bf16.msra.mxu0 %v5831_v7  ;;  %4231 = vmatpush1.bf16.msra.mxu1 %v5849_v31 }
 0x196   :  { %4201 = vmatprep.subr.bf16.mxu0 %v5834_v10  ;;  %4233 = vmatprep.subr.bf16.mxu1 %v5852_v32 }
 0x199   :  { %4203 = vmatpush1.bf16.msra.mxu0 %v5843_v24  ;;  %4235 = vmatpush1.bf16.msra.mxu1 %v5859_v40 }
 0x19a   :  { %4205 = vmatprep.subr.bf16.mxu0 %v5846_v27  ;;  %4237 = vmatprep.subr.bf16.mxu1 %v5862_v41 }
 0x19d   :  { %4207 = vmatpush1.bf16.msra.mxu0 %v5855_v39  ;;  %4239 = vmatpush1.bf16.msra.mxu1 %v5866_v47 }
 0x19e   :  { %4241 = vmatprep.subr.bf16.mxu0 %v5774_v4  ;;  %4273 = vmatprep.subr.bf16.mxu1 %v5787_v22 }
 0x253   :  { %v469_v7 = vpop.f32.mrb[2].mxu0  ;;  %v540_v44 = vpop.f32.mrb[2].mxu1 }
 0x254   :  { %v545_v49 = vadd.f32 %v469_v7, %v335_v42  ;;  %v471_v24 = vpop.f32.mrb[3].mxu0  ;;  %v542_v50 = vpop.f32.mrb[3].mxu1  ;;  %v547_v60 = vadd.f32 %v540_v44, %v337_v57 }
 0x255   :  { %v546_v51 = vadd.f32 %v471_v24, %v336_v55  ;;  %v548_v39 = vadd.f32 %v542_v50, %v338_v56 }
 0x256   :  { %v3950_v53 = vmul.f32 -1.442695, %v545_v49 }
 0x257   :  { %v3951_v54 = vmul.f32 -1.442695, %v546_v51  ;;  %v3952_v59 = vmul.f32 -1.442695, %v548_v39 }
 0x258   :  { %5253 = vpow2.f32 %v3950_v53 }
 0x259   :  { %5255 = vpow2.f32 %v3951_v54 }
 0x25a   :  { %5257 = vpow2.f32 %v3952_v59  ;;  %v1063_v59 = vld [vmem:[#allocation7 + $0x8] sm:$0xff] }
 0x25b   :  { %5259 = vtanh.f32 %v547_v60  ;;  %v1067_v60 = vld [vmem:[#allocation7 + $0x28] sm:$0xff] }
 0x262   :  { %v5254_v4 = vpop.eup %5253 }
 0x263   :  { %v5256_v61 = vpop.eup %5255  ;;  %v552_v22 = vadd.f32 1.0, %v5254_v4  ;;  %v1065_v4 = vld [vmem:[#allocation7 + $0x18] sm:$0xff] }
 0x264   :  { %v558_v63 = vadd.f32 1.0, %v5256_v61  ;;  %v5258_v2 = vpop.eup %5257  ;;  %v6009_v61 = vpack.c.bf16 %v1067_v60, %v1063_v59  ;;  %v1103_v59 = vld [vmem:[#allocation7 + $0x148] sm:$0xff] }
 0x265   :  { %5261 = vrcp.f32 %v552_v22  ;;  %v5260_v3 = vpop.eup %5259  ;;  %v565_v12 = vadd.f32 1.0, %v5258_v2  ;;  %v1069_v22 = vld [vmem:[#allocation7 + $0x38] sm:$0xff]  ;;  %v1066_v2 = vld [vmem:[#allocation7 + $0x20] sm:$0xff]  ;;  %v1107_v60 = vld [vmem:[#allocation7 + $0x168] sm:$0xff] }
 0x266   :  { %5263 = vrcp.f32 %v558_v63  ;;  %v1062_v63 = vld [vmem:[#allocation7] sm:$0xff] }
 0x267   :  { %5265 = vrcp.f32 %v565_v12 }
 0x26f   :  { %v5262_v5 = vpop.eup %5261 }
 0x270   :  { %v5264_v6 = vpop.eup %5263  ;;  %v569_v11 = vmul.f32 %v5262_v5, %v5260_v3  ;;  %v6011_v3 = vpack.c.bf16 %v1069_v22, %v1065_v4  ;;  %v6013_v5 = vpack.c.bf16 %v1066_v2, %v1062_v63  ;;  %v1105_v4 = vld [vmem:[#allocation7 + $0x158] sm:$0xff]  ;;  %v6064_v22 = vpack.c.bf16 %v1107_v60, %v1103_v59  ;;  %v1104_v2 = vld [vmem:[#allocation7 + $0x150] sm:$0xff] }
 0x271   :  { %v568_v13 = vmul.f32 %v5264_v6, %v5908_v35  ;;  %v5266_v19 = vpop.eup %5265  ;;  %v1064_v6 = vld [vmem:[#allocation7 + $0x10] sm:$0xff]  ;;  %v1109_v63 = vld [vmem:[#allocation7 + $0x178] sm:$0xff] }
 0x272   :  { %v820_v60 = vld [vmem:[#allocation4 + $0x78] sm:$0xff] }
 0x273   :  { %v5950_v16 = vadd.f32 %v569_v11, %v568_v13  ;;  %v1068_v11 = vld [vmem:[#allocation7 + $0x30] sm:$0xff]  ;;  %v1071_v13 = vld [vmem:[#allocation7 + $0x48] sm:$0xff] }
 0x274   :  { %v6016_v12 = vpack.c.bf16 %v1068_v11, %v1064_v6  ;;  %v1108_v6 = vld [vmem:[#allocation7 + $0x170] sm:$0xff]  ;;  %v6067_v11 = vpack.c.bf16 %v1109_v63, %v1105_v4 }
 0x275   :  { %5267 = vtanh.f32 %v5950_v16  ;;  %v819_v63 = vld [vmem:[#allocation4 + $0x70] sm:$0xff] }
 0x27f   :  { %v5268_v20 = vpop.eup %5267 }
 0x280   :  { %v5953_v21 = vmul.f32 %v5268_v20, %v5266_v19  ;;  %v1073_v19 = vld [vmem:[#allocation7 + $0x58] sm:$0xff] }
 0x282   :  { %709 = vmatmul.mubr.f32.vlgmr.msra.gmra.mrb[4].mxu0 %v5953_v21  ;;  %780 = vmatmul.mubr.f32.vlgmr.msra.gmra.mrb[4].mxu1 %v5953_v21 }
 0x283   :  { %4243 = vmatpush1.bf16.msra.mxu0 %v5776_v8  ;;  %4275 = vmatpush1.bf16.msra.mxu1 %v5789_v25  ;;  %v845_v8 = vld [vmem:[#allocation7 + $0xc0] sm:$0xff] }
 0x284   :  { %4245 = vmatprep.subr.bf16.mxu0 %v5778_v9  ;;  %4277 = vmatprep.subr.bf16.mxu1 %v5799_v33  ;;  %v849_v9 = vld [vmem:[#allocation7 + $0xe0] sm:$0xff] }
 0x285   :  { %949 = vmatprep.mubr.f32.mxu0 %v5642_v0  ;;  %1020 = vmatprep.mubr.f32.mxu1 %v5642_v0  ;;  %v857_v25 = vld [vmem:[#allocation7 + $0x120] sm:$0xff] }
 0x286   :  { %v865_v33 = vld [vmem:[#allocation7 + $0x160] sm:$0xff] }
 0x287   :  { %4247 = vmatpush1.bf16.msra.mxu0 %v5782_v14  ;;  %4279 = vmatpush1.bf16.msra.mxu1 %v5801_v37  ;;  %v5980_v14 = vpack.c.bf16 %v849_v9, %v845_v8  ;;  %v1077_v8 = vld [vmem:[#allocation7 + $0x78] sm:$0xff]  ;;  %v1070_v9 = vld [vmem:[#allocation7 + $0x40] sm:$0xff] }
 0x288   :  { %4249 = vmatprep.subr.bf16.mxu0 %v5785_v17  ;;  %4281 = vmatprep.subr.bf16.mxu1 %v5807_v45  ;;  %v853_v17 = vld [vmem:[#allocation7 + $0x100] sm:$0xff] }
 0x289   :  { %v869_v45 = vld [vmem:[#allocation7 + $0x180] sm:$0xff] }
 0x28b   :  { %4251 = vmatpush1.bf16.msra.mxu0 %v5792_v26  ;;  %4283 = vmatpush1.bf16.msra.mxu1 %v5813_v48  ;;  %v5984_v26 = vpack.c.bf16 %v857_v25, %v853_v17  ;;  %v873_v48 = vld [vmem:[#allocation7 + $0x1a0] sm:$0xff]  ;;  %v6023_v25 = vpack.c.bf16 %v1077_v8, %v1073_v19  ;;  %v1115_v19 = vld [vmem:[#allocation7 + $0x1a8] sm:$0xff]  ;;  %v1113_v8 = vld [vmem:[#allocation7 + $0x198] sm:$0xff] }
 0x28c   :  { %4253 = vmatprep.subr.bf16.mxu0 %v5796_v30  ;;  %4285 = vmatprep.subr.bf16.mxu1 %v5816_v52  ;;  %v861_v30 = vld [vmem:[#allocation7 + $0x140] sm:$0xff]  ;;  %v5991_v52 = vpack.c.bf16 %v873_v48, %v869_v45  ;;  %v1076_v45 = vld [vmem:[#allocation7 + $0x70] sm:$0xff] }
 0x28d   :  { %v5987_v37 = vpack.c.bf16 %v865_v33, %v861_v30  ;;  %v1074_v17 = vld [vmem:[#allocation7 + $0x60] sm:$0xff]  ;;  %v1072_v33 = vld [vmem:[#allocation7 + $0x50] sm:$0xff] }
 0x28e   :  { %v6025_v30 = vpack.c.bf16 %v1074_v17, %v1070_v9  ;;  %v6028_v48 = vpack.c.bf16 %v1076_v45, %v1072_v33  ;;  %v1117_v17 = vld [vmem:[#allocation7 + $0x1b8] sm:$0xff]  ;;  %v1112_v33 = vld [vmem:[#allocation7 + $0x190] sm:$0xff] }
 0x28f   :  { %4287 = vmatpush1.bf16.msra.mxu1 %v5825_v62  ;;  %4255 = vmatpush1.bf16.msra.mxu0 %v5980_v14  ;;  %v881_v62 = vld [vmem:[#allocation7 + $0x1e0] sm:$0xff]  ;;  %v1116_v45 = vld [vmem:[#allocation7 + $0x1b0] sm:$0xff] }
 0x290   :  { %4289 = vmatprep.subr.bf16.mxu1 %v5828_v1  ;;  %4257 = vmatprep.subr.bf16.mxu0 %v5810_v46  ;;  %v877_v46 = vld [vmem:[#allocation7 + $0x1c0] sm:$0xff] }
 0x291   :  { %v5995_v1 = vpack.c.bf16 %v881_v62, %v877_v46  ;;  %v1079_v46 = vld [vmem:[#allocation7 + $0x88] sm:$0xff] }
 0x292   :  { %v1083_v62 = vld [vmem:[#allocation7 + $0xa8] sm:$0xff] }
 0x293   :  { %4291 = vmatpush1.bf16.msra.mxu1 %v5837_v15  ;;  %4259 = vmatpush1.bf16.msra.mxu0 %v5984_v26  ;;  %v576_v15 = vld [vmem:[#allocation4 + $0x40] sm:$0xff] }
 0x294   :  { %4293 = vmatprep.subr.bf16.mxu1 %v5840_v18  ;;  %4261 = vmatprep.subr.bf16.mxu0 %v5822_v58  ;;  %v577_v58 = vld [vmem:[#allocation4 + $0x48] sm:$0xff] }
 0x297   :  { %4295 = vmatpush1.bf16.msra.mxu1 %v5849_v31  ;;  %4263 = vmatpush1.bf16.msra.mxu0 %v5987_v37 }
 0x298   :  { %4297 = vmatprep.subr.bf16.mxu1 %v5852_v32  ;;  %4265 = vmatprep.subr.bf16.mxu0 %v5834_v10 }
 0x29b   :  { %4299 = vmatpush1.bf16.msra.mxu1 %v5859_v40  ;;  %4267 = vmatpush1.bf16.msra.mxu0 %v5991_v52 }
 0x29c   :  { %4301 = vmatprep.subr.bf16.mxu1 %v5862_v41  ;;  %4269 = vmatprep.subr.bf16.mxu0 %v5846_v27 }
 0x29f   :  { %4303 = vmatpush1.bf16.msra.mxu1 %v5866_v47  ;;  %4271 = vmatpush1.bf16.msra.mxu0 %v5995_v1 }
 0x2a0   :  { %4305 = vmatprep.subr.bf16.mxu0 %v6009_v61  ;;  %4337 = vmatprep.subr.bf16.mxu1 %v6011_v3 }
 0x355   :  { %v710_v18 = vpop.f32.mrb[4].mxu0  ;;  %v781_v31 = vpop.f32.mrb[4].mxu1 }
 0x356   :  { %v786_v32 = vadd.f32 %v710_v18, %v576_v15  ;;  %v712_v40 = vpop.f32.mrb[5].mxu0  ;;  %v783_v41 = vpop.f32.mrb[5].mxu1  ;;  %v788_v36 = vadd.f32 %v781_v31, %v578_v34  ;;  %v1081_v15 = vld [vmem:[#allocation7 + $0x98] sm:$0xff]  ;;  %v1078_v31 = vld [vmem:[#allocation7 + $0x80] sm:$0xff] }
 0x357   :  { %v787_v47 = vadd.f32 %v712_v40, %v577_v58  ;;  %v789_v29 = vadd.f32 %v783_v41, %v579_v28  ;;  %v6033_v58 = vpack.c.bf16 %v1083_v62, %v1079_v46  ;;  %v1085_v18 = vld [vmem:[#allocation7 + $0xb8] sm:$0xff]  ;;  %v1087_v28 = vld [vmem:[#allocation7 + $0xc8] sm:$0xff]  ;;  %v6075_v46 = vpack.c.bf16 %v1117_v17, %v1113_v8 }
 0x358   :  { %v3953_v23 = vmul.f32 -1.442695, %v786_v32  ;;  %v1082_v32 = vld [vmem:[#allocation7 + $0xa0] sm:$0xff]  ;;  %v6035_v40 = vpack.c.bf16 %v1085_v18, %v1081_v15  ;;  %v1089_v34 = vld [vmem:[#allocation7 + $0xd8] sm:$0xff]  ;;  %v1119_v62 = vld [vmem:[#allocation7 + $0x1c8] sm:$0xff] }
 0x359   :  { %v3954_v10 = vmul.f32 -1.442695, %v787_v47  ;;  %v3955_v35 = vmul.f32 -1.442695, %v789_v29  ;;  %v6037_v41 = vpack.c.bf16 %v1082_v32, %v1078_v31  ;;  %v1080_v47 = vld [vmem:[#allocation7 + $0x90] sm:$0xff]  ;;  %v1091_v29 = vld [vmem:[#allocation7 + $0xe8] sm:$0xff]  ;;  %v6080_v32 = vpack.c.bf16 %v1116_v45, %v1112_v33 }
 0x35a   :  { %5269 = vpow2.f32 %v3953_v23  ;;  %v1084_v23 = vld [vmem:[#allocation7 + $0xb0] sm:$0xff]  ;;  %v1123_v15 = vld [vmem:[#allocation7 + $0x1e8] sm:$0xff]  ;;  %v1121_v18 = vld [vmem:[#allocation7 + $0x1d8] sm:$0xff] }
 0x35b   :  { %5271 = vpow2.f32 %v3954_v10  ;;  %v6040_v10 = vpack.c.bf16 %v1084_v23, %v1080_v47  ;;  %v1125_v31 = vld [vmem:[#allocation7 + $0x1f8] sm:$0xff]  ;;  %v6082_v47 = vpack.c.bf16 %v1123_v15, %v1119_v62 }
 0x35c   :  { %5273 = vpow2.f32 %v3955_v35  ;;  %v6045_v35 = vpack.c.bf16 %v1091_v29, %v1087_v28  ;;  %v6085_v23 = vpack.c.bf16 %v1125_v31, %v1121_v18  ;;  %v1120_v28 = vld [vmem:[#allocation7 + $0x1d0] sm:$0xff] }
 0x35d   :  { %5275 = vtanh.f32 %v788_v36  ;;  %v1093_v36 = vld [vmem:[#allocation7 + $0xf8] sm:$0xff]  ;;  %v1124_v29 = vld [vmem:[#allocation7 + $0x1f0] sm:$0xff] }
 0x364   :  { %v5270_v27 = vpop.eup %5269 }
 0x365   :  { %v5272_v38 = vpop.eup %5271  ;;  %v793_v42 = vadd.f32 1.0, %v5270_v27  ;;  %v1088_v27 = vld [vmem:[#allocation7 + $0xd0] sm:$0xff] }
 0x366   :  { %v799_v55 = vadd.f32 1.0, %v5272_v38  ;;  %v5274_v7 = vpop.eup %5273  ;;  %v1092_v38 = vld [vmem:[#allocation7 + $0xf0] sm:$0xff] }
 0x367   :  { %5277 = vrcp.f32 %v793_v42  ;;  %v5276_v44 = vpop.eup %5275  ;;  %v806_v51 = vadd.f32 1.0, %v5274_v7  ;;  %v6047_v42 = vpack.c.bf16 %v1093_v36, %v1089_v34  ;;  %v1095_v7 = vld [vmem:[#allocation7 + $0x108] sm:$0xff]  ;;  %v6090_v34 = vpack.c.bf16 %v1124_v29, %v1120_v28  ;;  %v817_v36 = vld [vmem:[#allocation4 + $0x60] sm:$0xff] }
 0x368   :  { %5279 = vrcp.f32 %v799_v55  ;;  %v6049_v55 = vpack.c.bf16 %v1092_v38, %v1088_v27  ;;  %v818_v27 = vld [vmem:[#allocation4 + $0x68] sm:$0xff] }
 0x369   :  { %5281 = vrcp.f32 %v806_v51  ;;  %v1096_v51 = vld [vmem:[#allocation7 + $0x110] sm:$0xff] }
 0x371   :  { %v5278_v49 = vpop.eup %5277 }
 0x372   :  { %v5280_v24 = vpop.eup %5279  ;;  %v810_v50 = vmul.f32 %v5278_v49, %v5276_v44  ;;  %v1099_v44 = vld [vmem:[#allocation7 + $0x128] sm:$0xff]  ;;  %v1097_v49 = vld [vmem:[#allocation7 + $0x118] sm:$0xff] }
 0x373   :  { %v809_v53 = vmul.f32 %v5280_v24, %v5950_v16  ;;  %v5282_v56 = vpop.eup %5281  ;;  %v1075_v16 = vld [vmem:[#allocation7 + $0x68] sm:$0xff]  ;;  %v6055_v24 = vpack.c.bf16 %v1099_v44, %v1095_v7 }
 0x374   :  { %v6021_v20 = vpack.c.bf16 %v1075_v16, %v1071_v13  ;;  %v6069_v13 = vpack.c.bf16 %v1108_v6, %v1104_v2  ;;  %v1111_v16 = vld [vmem:[#allocation7 + $0x188] sm:$0xff] }
 0x375   :  { %v6000_v54 = vadd.f32 %v810_v50, %v809_v53  ;;  %v1101_v50 = vld [vmem:[#allocation7 + $0x138] sm:$0xff]  ;;  %v1100_v53 = vld [vmem:[#allocation7 + $0x130] sm:$0xff]  ;;  %v6072_v9 = vpack.c.bf16 %v1115_v19, %v1111_v16 }
 0x377   :  { %5283 = vtanh.f32 %v6000_v54 }
 0x381   :  { %v5284_v39 = vpop.eup %5283 }
 0x382   :  { %v6003_v57 = vmul.f32 %v5284_v39, %v5282_v56  ;;  %v6057_v56 = vpack.c.bf16 %v1101_v50, %v1097_v49  ;;  %v6059_v39 = vpack.c.bf16 %v1100_v53, %v1096_v51 }
 0x384   :  { %950 = vmatmul.mubr.f32.vlgmr.msra.gmra.mrb[6].mxu0 %v6003_v57  ;;  %1021 = vmatmul.mubr.f32.vlgmr.msra.gmra.mrb[6].mxu1 %v6003_v57 }
 0x385   :  { %1190 = vmatprep.mubr.f32.mxu0 %v5642_v0  ;;  %1261 = vmatprep.mubr.f32.mxu1 %v5642_v0 }
 0x386   :  { %4307 = vmatpush1.bf16.msra.mxu0 %v6013_v5  ;;  %4339 = vmatpush1.bf16.msra.mxu1 %v6016_v12 }
 0x387   :  { %4309 = vmatprep.subr.bf16.mxu0 %v6021_v20  ;;  %4341 = vmatprep.subr.bf16.mxu1 %v6023_v25 }
 0x38a   :  { %4311 = vmatpush1.bf16.msra.mxu0 %v6025_v30  ;;  %4343 = vmatpush1.bf16.msra.mxu1 %v6028_v48 }
 0x38b   :  { %4313 = vmatprep.subr.bf16.mxu0 %v6033_v58  ;;  %4345 = vmatprep.subr.bf16.mxu1 %v6035_v40 }
 0x38e   :  { %4315 = vmatpush1.bf16.msra.mxu0 %v6037_v41  ;;  %4347 = vmatpush1.bf16.msra.mxu1 %v6040_v10 }
 0x38f   :  { %4317 = vmatprep.subr.bf16.mxu0 %v6045_v35  ;;  %4349 = vmatprep.subr.bf16.mxu1 %v6047_v42 }
 0x392   :  { %4319 = vmatpush1.bf16.msra.mxu0 %v5980_v14  ;;  %4351 = vmatpush1.bf16.msra.mxu1 %v6049_v55 }
 0x393   :  { %4321 = vmatprep.subr.bf16.mxu0 %v6055_v24  ;;  %4353 = vmatprep.subr.bf16.mxu1 %v6057_v56 }
 0x396   :  { %4323 = vmatpush1.bf16.msra.mxu0 %v5984_v26  ;;  %4355 = vmatpush1.bf16.msra.mxu1 %v6059_v39 }
 0x397   :  { %4325 = vmatprep.subr.bf16.mxu0 %v6064_v22  ;;  %4357 = vmatprep.subr.bf16.mxu1 %v6067_v11 }
 0x39a   :  { %4327 = vmatpush1.bf16.msra.mxu0 %v5987_v37  ;;  %4359 = vmatpush1.bf16.msra.mxu1 %v6069_v13 }
 0x39b   :  { %4329 = vmatprep.subr.bf16.mxu0 %v6072_v9  ;;  %4361 = vmatprep.subr.bf16.mxu1 %v6075_v46 }
 0x39e   :  { %4331 = vmatpush1.bf16.msra.mxu0 %v5991_v52  ;;  %4363 = vmatpush1.bf16.msra.mxu1 %v6080_v32 }
 0x39f   :  { %4333 = vmatprep.subr.bf16.mxu0 %v6082_v47  ;;  %4365 = vmatprep.subr.bf16.mxu1 %v6085_v23 }
 0x3a2   :  { %4335 = vmatpush1.bf16.msra.mxu0 %v5995_v1  ;;  %4367 = vmatpush1.bf16.msra.mxu1 %v6090_v34 }
 0x3a3   :  { %4369 = vmatprep.subr.bf16.mxu0 %v6009_v61  ;;  %4401 = vmatprep.subr.bf16.mxu1 %v6011_v3 }
 0x457   :  { %v951_v38 = vpop.f32.mrb[6].mxu0  ;;  %v1022_v7 = vpop.f32.mrb[6].mxu1 }
 0x458   :  { %v1027_v44 = vadd.f32 %v951_v38, %v817_v36  ;;  %v953_v49 = vpop.f32.mrb[7].mxu0  ;;  %v1024_v50 = vpop.f32.mrb[7].mxu1  ;;  %v1029_v6 = vadd.f32 %v1022_v7, %v819_v63  ;;  %v1059_v7 = vld [vmem:[#allocation4 + $0x88] sm:$0xff]  ;;  %v1061_v63 = vld [vmem:[#allocation4 + $0x98] sm:$0xff] }
 0x459   :  { %v1028_v51 = vadd.f32 %v953_v49, %v818_v27  ;;  %v1030_v4 = vadd.f32 %v1024_v50, %v820_v60 }
 0x45a   :  { %v3956_v53 = vmul.f32 -1.442695, %v1027_v44 }
 0x45b   :  { %v3957_v59 = vmul.f32 -1.442695, %v1028_v51  ;;  %v3958_v2 = vmul.f32 -1.442695, %v1030_v4 }
 0x45c   :  { %5285 = vpow2.f32 %v3956_v53 }
 0x45d   :  { %5287 = vpow2.f32 %v3957_v59 }
 0x45e   :  { %5289 = vpow2.f32 %v3958_v2 }
 0x45f   :  { %5291 = vtanh.f32 %v1029_v6  ;;  %v1060_v6 = vld [vmem:[#allocation4 + $0x90] sm:$0xff] }
 0x466   :  { %v5286_v16 = vpop.eup %5285 }
 0x467   :  { %v5288_v19 = vpop.eup %5287  ;;  %v1034_v8 = vadd.f32 1.0, %v5286_v16 }
 0x468   :  { %v1040_v17 = vadd.f32 1.0, %v5288_v19  ;;  %v5290_v33 = vpop.eup %5289 }
 0x469   :  { %5293 = vrcp.f32 %v1034_v8  ;;  %v5292_v45 = vpop.eup %5291  ;;  %v1047_v31 = vadd.f32 1.0, %v5290_v33 }
 0x46a   :  { %5295 = vrcp.f32 %v1040_v17 }
 0x46b   :  { %5297 = vrcp.f32 %v1047_v31 }
 0x473   :  { %v5294_v62 = vpop.eup %5293 }
 0x474   :  { %v5296_v15 = vpop.eup %5295  ;;  %v1051_v18 = vmul.f32 %v5294_v62, %v5292_v45 }
 0x475   :  { %v1050_v28 = vmul.f32 %v5296_v15, %v6000_v54  ;;  %v5298_v36 = vpop.eup %5297  ;;  %v1058_v54 = vld [vmem:[#allocation4 + $0x80] sm:$0xff] }
 0x477   :  { %v6098_v29 = vadd.f32 %v1051_v18, %v1050_v28 }
 0x479   :  { %5299 = vtanh.f32 %v6098_v29 }
 0x483   :  { %v5300_v27 = vpop.eup %5299 }
 0x484   :  { %v6101_v38 = vmul.f32 %v5300_v27, %v5298_v36 }
 0x486   :  { %1191 = vmatmul.mubr.f32.vlgmr.msra.gmra.mrb[8].mxu0 %v6101_v38  ;;  %1262 = vmatmul.mubr.f32.vlgmr.msra.gmra.mrb[8].mxu1 %v6101_v38 }
 0x487   :  { %4371 = vmatpush1.bf16.msra.mxu0 %v6013_v5  ;;  %4403 = vmatpush1.bf16.msra.mxu1 %v6016_v12 }
 0x488   :  { %4373 = vmatprep.subr.bf16.mxu0 %v6021_v20  ;;  %4405 = vmatprep.subr.bf16.mxu1 %v6023_v25 }
 0x489   :  { %1431 = vmatprep.mubr.f32.mxu0 %v5642_v0  ;;  %1502 = vmatprep.mubr.f32.mxu1 %v5642_v0 }
 0x48b   :  { %4375 = vmatpush1.bf16.msra.mxu0 %v6025_v30  ;;  %4407 = vmatpush1.bf16.msra.mxu1 %v6028_v48 }
 0x48c   :  { %4377 = vmatprep.subr.bf16.mxu0 %v6033_v58  ;;  %4409 = vmatprep.subr.bf16.mxu1 %v6035_v40 }
 0x48f   :  { %4379 = vmatpush1.bf16.msra.mxu0 %v6037_v41  ;;  %4411 = vmatpush1.bf16.msra.mxu1 %v6040_v10 }
 0x490   :  { %4381 = vmatprep.subr.bf16.mxu0 %v6045_v35  ;;  %4413 = vmatprep.subr.bf16.mxu1 %v6047_v42 }
 0x493   :  { %4383 = vmatpush1.bf16.msra.mxu0 %v5980_v14  ;;  %4415 = vmatpush1.bf16.msra.mxu1 %v6049_v55 }
 0x494   :  { %4385 = vmatprep.subr.bf16.mxu0 %v6055_v24  ;;  %4417 = vmatprep.subr.bf16.mxu1 %v6057_v56 }
 0x497   :  { %4387 = vmatpush1.bf16.msra.mxu0 %v5984_v26  ;;  %4419 = vmatpush1.bf16.msra.mxu1 %v6059_v39 }
 0x498   :  { %4389 = vmatprep.subr.bf16.mxu0 %v6064_v22  ;;  %4421 = vmatprep.subr.bf16.mxu1 %v6067_v11 }
 0x49b   :  { %4391 = vmatpush1.bf16.msra.mxu0 %v5987_v37  ;;  %4423 = vmatpush1.bf16.msra.mxu1 %v6069_v13 }
 0x49c   :  { %4393 = vmatprep.subr.bf16.mxu0 %v6072_v9  ;;  %4425 = vmatprep.subr.bf16.mxu1 %v6075_v46 }
 0x49f   :  { %4395 = vmatpush1.bf16.msra.mxu0 %v5991_v52  ;;  %4427 = vmatpush1.bf16.msra.mxu1 %v6080_v32 }
 0x4a0   :  { %4397 = vmatprep.subr.bf16.mxu0 %v6082_v47  ;;  %4429 = vmatprep.subr.bf16.mxu1 %v6085_v23 }
 0x4a3   :  { %4399 = vmatpush1.bf16.msra.mxu0 %v5995_v1  ;;  %4431 = vmatpush1.bf16.msra.mxu1 %v6090_v34 }
 0x4a4   :  { %4433 = vmatprep.subr.bf16.mxu0 %v6009_v61  ;;  %4465 = vmatprep.subr.bf16.mxu1 %v6011_v3 }
 0x559   :  { %v1192_v44 = vpop.f32.mrb[8].mxu0  ;;  %v1263_v49 = vpop.f32.mrb[8].mxu1 }
 0x55a   :  { %v1268_v50 = vadd.f32 %v1192_v44, %v1058_v54  ;;  %v1194_v51 = vpop.f32.mrb[9].mxu0  ;;  %v1265_v53 = vpop.f32.mrb[9].mxu1  ;;  %v1270_v19 = vadd.f32 %v1263_v49, %v1060_v6 }
 0x55b   :  { %v1269_v59 = vadd.f32 %v1194_v51, %v1059_v7  ;;  %v1271_v2 = vadd.f32 %v1265_v53, %v1061_v63  ;;  %v1301_v63 = vld [vmem:[#allocation4 + $0xb0] sm:$0xff] }
 0x55c   :  { %v3959_v60 = vmul.f32 -1.442695, %v1268_v50 }
 0x55d   :  { %v3960_v4 = vmul.f32 -1.442695, %v1269_v59  ;;  %v3961_v16 = vmul.f32 -1.442695, %v1271_v2 }
 0x55e   :  { %5301 = vpow2.f32 %v3959_v60 }
 0x55f   :  { %5303 = vpow2.f32 %v3960_v4  ;;  %v1302_v4 = vld [vmem:[#allocation4 + $0xb8] sm:$0xff] }
 0x560   :  { %5305 = vpow2.f32 %v3961_v16 }
 0x561   :  { %5307 = vtanh.f32 %v1270_v19 }
 0x568   :  { %v5302_v8 = vpop.eup %5301 }
 0x569   :  { %v5304_v17 = vpop.eup %5303  ;;  %v1275_v33 = vadd.f32 1.0, %v5302_v8 }
 0x56a   :  { %v1281_v45 = vadd.f32 1.0, %v5304_v17  ;;  %v5306_v62 = vpop.eup %5305 }
 0x56b   :  { %5309 = vrcp.f32 %v1275_v33  ;;  %v5308_v15 = vpop.eup %5307  ;;  %v1288_v36 = vadd.f32 1.0, %v5306_v62 }
 0x56c   :  { %5311 = vrcp.f32 %v1281_v45 }
 0x56d   :  { %5313 = vrcp.f32 %v1288_v36 }
 0x575   :  { %v5310_v18 = vpop.eup %5309 }
 0x576   :  { %v5312_v31 = vpop.eup %5311  ;;  %v1292_v28 = vmul.f32 %v5310_v18, %v5308_v15 }
 0x577   :  { %v1291_v27 = vmul.f32 %v5312_v31, %v6098_v29  ;;  %v5314_v7 = vpop.eup %5313 }
 0x579   :  { %v6140_v54 = vadd.f32 %v1292_v28, %v1291_v27 }
 0x57b   :  { %5315 = vtanh.f32 %v6140_v54 }
 0x585   :  { %v5316_v44 = vpop.eup %5315 }
 0x586   :  { %v6143_v49 = vmul.f32 %v5316_v44, %v5314_v7 }
 0x588   :  { %1432 = vmatmul.mubr.f32.vlgmr.msra.gmra.mrb[10].mxu0 %v6143_v49  ;;  %1503 = vmatmul.mubr.f32.vlgmr.msra.gmra.mrb[10].mxu1 %v6143_v49 }
 0x589   :  { %4435 = vmatpush1.bf16.msra.mxu0 %v6013_v5  ;;  %4467 = vmatpush1.bf16.msra.mxu1 %v6016_v12 }
 0x58a   :  { %4437 = vmatprep.subr.bf16.mxu0 %v6021_v20  ;;  %4469 = vmatprep.subr.bf16.mxu1 %v6023_v25 }
 0x58b   :  { %1672 = vmatprep.mubr.f32.mxu0 %v5642_v0  ;;  %1743 = vmatprep.mubr.f32.mxu1 %v5642_v0 }
 0x58d   :  { %4439 = vmatpush1.bf16.msra.mxu0 %v6025_v30  ;;  %4471 = vmatpush1.bf16.msra.mxu1 %v6028_v48 }
 0x58e   :  { %4441 = vmatprep.subr.bf16.mxu0 %v6033_v58  ;;  %4473 = vmatprep.subr.bf16.mxu1 %v6035_v40 }
 0x591   :  { %4443 = vmatpush1.bf16.msra.mxu0 %v6037_v41  ;;  %4475 = vmatpush1.bf16.msra.mxu1 %v6040_v10 }
 0x592   :  { %4445 = vmatprep.subr.bf16.mxu0 %v6045_v35  ;;  %4477 = vmatprep.subr.bf16.mxu1 %v6047_v42 }
 0x595   :  { %4447 = vmatpush1.bf16.msra.mxu0 %v5980_v14  ;;  %4479 = vmatpush1.bf16.msra.mxu1 %v6049_v55  ;;  %v1299_v14 = vld [vmem:[#allocation4 + $0xa0] sm:$0xff] }
 0x596   :  { %4449 = vmatprep.subr.bf16.mxu0 %v6055_v24  ;;  %4481 = vmatprep.subr.bf16.mxu1 %v6057_v56 }
 0x599   :  { %4451 = vmatpush1.bf16.msra.mxu0 %v5984_v26  ;;  %4483 = vmatpush1.bf16.msra.mxu1 %v6059_v39  ;;  %v1300_v26 = vld [vmem:[#allocation4 + $0xa8] sm:$0xff] }
 0x59a   :  { %4453 = vmatprep.subr.bf16.mxu0 %v6064_v22  ;;  %4485 = vmatprep.subr.bf16.mxu1 %v6067_v11 }
 0x59d   :  { %4455 = vmatpush1.bf16.msra.mxu0 %v5987_v37  ;;  %4487 = vmatpush1.bf16.msra.mxu1 %v6069_v13 }
 0x59e   :  { %4457 = vmatprep.subr.bf16.mxu0 %v6072_v9  ;;  %4489 = vmatprep.subr.bf16.mxu1 %v6075_v46 }
 0x5a1   :  { %4459 = vmatpush1.bf16.msra.mxu0 %v5991_v52  ;;  %4491 = vmatpush1.bf16.msra.mxu1 %v6080_v32 }
 0x5a2   :  { %4461 = vmatprep.subr.bf16.mxu0 %v6082_v47  ;;  %4493 = vmatprep.subr.bf16.mxu1 %v6085_v23 }
 0x5a5   :  { %4463 = vmatpush1.bf16.msra.mxu0 %v5995_v1  ;;  %4495 = vmatpush1.bf16.msra.mxu1 %v6090_v34 }
 0x5a6   :  { %4497 = vmatprep.subr.bf16.mxu0 %v6009_v61  ;;  %4529 = vmatprep.subr.bf16.mxu1 %v6011_v3 }
 0x65b   :  { %v1433_v37 = vpop.f32.mrb[10].mxu0  ;;  %v1504_v29 = vpop.f32.mrb[10].mxu1 }
 0x65c   :  { %v1509_v50 = vadd.f32 %v1433_v37, %v1299_v14  ;;  %v1435_v52 = vpop.f32.mrb[11].mxu0  ;;  %v1506_v51 = vpop.f32.mrb[11].mxu1  ;;  %v1511_v6 = vadd.f32 %v1504_v29, %v1301_v63 }
 0x65d   :  { %v1510_v53 = vadd.f32 %v1435_v52, %v1300_v26  ;;  %v1512_v1 = vadd.f32 %v1506_v51, %v1302_v4  ;;  %v1542_v51 = vld [vmem:[#allocation4 + $0xd0] sm:$0xff] }
 0x65e   :  { %v3962_v59 = vmul.f32 -1.442695, %v1509_v50  ;;  %v1543_v50 = vld [vmem:[#allocation4 + $0xd8] sm:$0xff] }
 0x65f   :  { %v3963_v60 = vmul.f32 -1.442695, %v1510_v53  ;;  %v3964_v2 = vmul.f32 -1.442695, %v1512_v1 }
 0x660   :  { %5317 = vpow2.f32 %v3962_v59 }
 0x661   :  { %5319 = vpow2.f32 %v3963_v60 }
 0x662   :  { %5321 = vpow2.f32 %v3964_v2 }
 0x663   :  { %5323 = vtanh.f32 %v1511_v6 }
 0x66a   :  { %v5318_v61 = vpop.eup %5317 }
 0x66b   :  { %v5320_v16 = vpop.eup %5319  ;;  %v1516_v3 = vadd.f32 1.0, %v5318_v61 }
 0x66c   :  { %v1522_v19 = vadd.f32 1.0, %v5320_v16  ;;  %v5322_v8 = vpop.eup %5321 }
 0x66d   :  { %5325 = vrcp.f32 %v1516_v3  ;;  %v5324_v17 = vpop.eup %5323  ;;  %v1529_v15 = vadd.f32 1.0, %v5322_v8 }
 0x66e   :  { %5327 = vrcp.f32 %v1522_v19 }
 0x66f   :  { %5329 = vrcp.f32 %v1529_v15  ;;  %v2038_v15 = vld [vmem:[#allocation9 + $0x48] sm:$0xff] }
 0x677   :  { %v5326_v33 = vpop.eup %5325 }
 0x678   :  { %v5328_v45 = vpop.eup %5327  ;;  %v1533_v62 = vmul.f32 %v5326_v33, %v5324_v17  ;;  %v2029_v17 = vld [vmem:[#allocation9] sm:$0xff] }
 0x679   :  { %v1532_v18 = vmul.f32 %v5328_v45, %v6140_v54  ;;  %v5330_v28 = vpop.eup %5329  ;;  %v2033_v33 = vld [vmem:[#allocation9 + $0x20] sm:$0xff]  ;;  %v2031_v45 = vld [vmem:[#allocation9 + $0x10] sm:$0xff] }
 0x67b   :  { %v6182_v31 = vadd.f32 %v1533_v62, %v1532_v18  ;;  %v2035_v62 = vld [vmem:[#allocation9 + $0x30] sm:$0xff]  ;;  %v2042_v18 = vld [vmem:[#allocation9 + $0x68] sm:$0xff] }
 0x67d   :  { %5331 = vtanh.f32 %v6182_v31 }
 0x687   :  { %v5332_v36 = vpop.eup %5331 }
 0x688   :  { %v6185_v27 = vmul.f32 %v5332_v36, %v5330_v28  ;;  %v2040_v28 = vld [vmem:[#allocation9 + $0x58] sm:$0xff] }
 0x689   :  { %v2044_v36 = vld [vmem:[#allocation9 + $0x78] sm:$0xff] }
 0x68a   :  { %1673 = vmatmul.mubr.f32.vlgmr.msra.gmra.mrb[12].mxu0 %v6185_v27  ;;  %1744 = vmatmul.mubr.f32.vlgmr.msra.gmra.mrb[12].mxu1 %v6185_v27 }
 0x68b   :  { %4499 = vmatpush1.bf16.msra.mxu0 %v6013_v5  ;;  %4531 = vmatpush1.bf16.msra.mxu1 %v6016_v12  ;;  %v1809_v5 = vld [vmem:[#allocation7 + $0xc0] sm:$0xff] }
 0x68c   :  { %4501 = vmatprep.subr.bf16.mxu0 %v6021_v20  ;;  %4533 = vmatprep.subr.bf16.mxu1 %v6023_v25  ;;  %v1813_v12 = vld [vmem:[#allocation7 + $0xe0] sm:$0xff] }
 0x68d   :  { %1913 = vmatprep.mubr.f32.mxu0 %v5642_v0  ;;  %1984 = vmatprep.mubr.f32.mxu1 %v5642_v0  ;;  %v4510_v20 = vpack.c.bf16 %v1813_v12, %v1809_v5  ;;  %v1817_v25 = vld [vmem:[#allocation7 + $0x100] sm:$0xff] }
 0x68f   :  { %4503 = vmatpush1.bf16.msra.mxu0 %v6025_v30  ;;  %4535 = vmatpush1.bf16.msra.mxu1 %v6028_v48  ;;  %v1821_v30 = vld [vmem:[#allocation7 + $0x120] sm:$0xff] }
 0x690   :  { %4505 = vmatprep.subr.bf16.mxu0 %v6033_v58  ;;  %4537 = vmatprep.subr.bf16.mxu1 %v6035_v40  ;;  %v4514_v48 = vpack.c.bf16 %v1821_v30, %v1817_v25  ;;  %v1825_v58 = vld [vmem:[#allocation7 + $0x140] sm:$0xff]  ;;  %v4594_v25 = vpack.c.bf16 %v2035_v62, %v2031_v45  ;;  %v2076_v45 = vld [vmem:[#allocation9 + $0x178] sm:$0xff] }
 0x691   :  { %v1829_v40 = vld [vmem:[#allocation7 + $0x160] sm:$0xff] }
 0x692   :  { %v2037_v30 = vld [vmem:[#allocation9 + $0x40] sm:$0xff] }
 0x693   :  { %4507 = vmatpush1.bf16.msra.mxu0 %v6037_v41  ;;  %4539 = vmatpush1.bf16.msra.mxu1 %v6040_v10  ;;  %v4518_v41 = vpack.c.bf16 %v1829_v40, %v1825_v58  ;;  %v1833_v10 = vld [vmem:[#allocation7 + $0x180] sm:$0xff]  ;;  %v4564_v58 = vpack.c.bf16 %v2042_v18, %v2038_v15  ;;  %v4596_v40 = vpack.c.bf16 %v2044_v36, %v2040_v28 }
 0x694   :  { %4509 = vmatprep.subr.bf16.mxu0 %v6045_v35  ;;  %4541 = vmatprep.subr.bf16.mxu1 %v6047_v42  ;;  %v1837_v35 = vld [vmem:[#allocation7 + $0x1a0] sm:$0xff]  ;;  %v2032_v42 = vld [vmem:[#allocation9 + $0x18] sm:$0xff] }
 0x695   :  { %v2069_v18 = vld [vmem:[#allocation9 + $0x140] sm:$0xff] }
 0x696   :  { %v2073_v28 = vld [vmem:[#allocation9 + $0x160] sm:$0xff] }
 0x697   :  { %4543 = vmatpush1.bf16.msra.mxu1 %v6049_v55  ;;  %4511 = vmatpush1.bf16.msra.mxu0 %v4510_v20  ;;  %v2036_v55 = vld [vmem:[#allocation9 + $0x38] sm:$0xff]  ;;  %v4562_v20 = vpack.c.bf16 %v2033_v33, %v2029_v17  ;;  %v2074_v17 = vld [vmem:[#allocation9 + $0x168] sm:$0xff] }
 0x698   :  { %4545 = vmatprep.subr.bf16.mxu1 %v6057_v56  ;;  %4513 = vmatprep.subr.bf16.mxu0 %v6055_v24  ;;  %v4522_v56 = vpack.c.bf16 %v1837_v35, %v1833_v10  ;;  %v1845_v24 = vld [vmem:[#allocation7 + $0x1e0] sm:$0xff]  ;;  %v2043_v10 = vld [vmem:[#allocation9 + $0x70] sm:$0xff]  ;;  %v2046_v35 = vld [vmem:[#allocation9 + $0x88] sm:$0xff] }
 0x699   :  { %v2072_v33 = vld [vmem:[#allocation9 + $0x158] sm:$0xff] }
 0x69b   :  { %4547 = vmatpush1.bf16.msra.mxu1 %v6059_v39  ;;  %4515 = vmatpush1.bf16.msra.mxu0 %v4514_v48  ;;  %v4592_v39 = vpack.c.bf16 %v2036_v55, %v2032_v42  ;;  %v2041_v48 = vld [vmem:[#allocation9 + $0x60] sm:$0xff]  ;;  %v2050_v42 = vld [vmem:[#allocation9 + $0xa8] sm:$0xff]  ;;  %v2048_v55 = vld [vmem:[#allocation9 + $0x98] sm:$0xff] }
 0x69c   :  { %4549 = vmatprep.subr.bf16.mxu1 %v6067_v11  ;;  %4517 = vmatprep.subr.bf16.mxu0 %v6064_v22  ;;  %v1841_v11 = vld [vmem:[#allocation7 + $0x1c0] sm:$0xff] }
 0x69f   :  { %4551 = vmatpush1.bf16.msra.mxu1 %v6069_v13  ;;  %4519 = vmatpush1.bf16.msra.mxu0 %v4518_v41  ;;  %v2030_v13 = vld [vmem:[#allocation9 + $0x8] sm:$0xff]  ;;  %v2039_v41 = vld [vmem:[#allocation9 + $0x50] sm:$0xff] }
 0x6a0   :  { %4553 = vmatprep.subr.bf16.mxu1 %v6075_v46  ;;  %4521 = vmatprep.subr.bf16.mxu0 %v6072_v9  ;;  %v2034_v46 = vld [vmem:[#allocation9 + $0x28] sm:$0xff] }
 0x6a1   :  { %v4560_v22 = vpack.c.bf16 %v2034_v46, %v2030_v13  ;;  %v2049_v13 = vld [vmem:[#allocation9 + $0xa0] sm:$0xff]  ;;  %v4568_v46 = vpack.c.bf16 %v2050_v42, %v2046_v35 }
 0x6a2   :  { %v2081_v35 = vld [vmem:[#allocation9 + $0x1a0] sm:$0xff] }
 0x6a3   :  { %4555 = vmatpush1.bf16.msra.mxu1 %v6080_v32  ;;  %4523 = vmatpush1.bf16.msra.mxu0 %v4522_v56  ;;  %v4526_v32 = vpack.c.bf16 %v1845_v24, %v1841_v11  ;;  %v2052_v56 = vld [vmem:[#allocation9 + $0xb8] sm:$0xff]  ;;  %v4598_v11 = vpack.c.bf16 %v2043_v10, %v2039_v41  ;;  %v2045_v24 = vld [vmem:[#allocation9 + $0x80] sm:$0xff] }
 0x6a4   :  { %4557 = vmatprep.subr.bf16.mxu1 %v6085_v23  ;;  %4525 = vmatprep.subr.bf16.mxu0 %v6082_v47  ;;  %v1540_v23 = vld [vmem:[#allocation4 + $0xc0] sm:$0xff] }
 0x6a5   :  { %v2077_v10 = vld [vmem:[#allocation9 + $0x180] sm:$0xff] }
 0x6a7   :  { %4559 = vmatpush1.bf16.msra.mxu1 %v6090_v34  ;;  %4527 = vmatpush1.bf16.msra.mxu0 %v4526_v32  ;;  %v1541_v34 = vld [vmem:[#allocation4 + $0xc8] sm:$0xff]  ;;  %v4600_v32 = vpack.c.bf16 %v2052_v56, %v2048_v55  ;;  %v2079_v56 = vld [vmem:[#allocation9 + $0x190] sm:$0xff] }
 0x6a8   :  { %4593 = vmatprep.subr.bf16.mxu1 %v4592_v39  ;;  %4561 = vmatprep.subr.bf16.mxu0 %v4560_v22  ;;  %v4566_v39 = vpack.c.bf16 %v2041_v48, %v2037_v30  ;;  %v2047_v22 = vld [vmem:[#allocation9 + $0x90] sm:$0xff]  ;;  %v2082_v30 = vld [vmem:[#allocation9 + $0x1a8] sm:$0xff]  ;;  %v2080_v48 = vld [vmem:[#allocation9 + $0x198] sm:$0xff] }
 0x75d   :  { %v1674_v54 = vpop.f32.mrb[12].mxu0  ;;  %v1745_v7 = vpop.f32.mrb[12].mxu1 }
 0x75e   :  { %v1750_v44 = vadd.f32 %v1674_v54, %v1540_v23  ;;  %v1676_v14 = vpop.f32.mrb[13].mxu0  ;;  %v1747_v26 = vpop.f32.mrb[13].mxu1  ;;  %v1752_v47 = vadd.f32 %v1745_v7, %v1542_v51  ;;  %v2051_v23 = vld [vmem:[#allocation9 + $0xb0] sm:$0xff]  ;;  %v2058_v54 = vld [vmem:[#allocation9 + $0xe8] sm:$0xff]  ;;  %v2056_v7 = vld [vmem:[#allocation9 + $0xd8] sm:$0xff] }
 0x75f   :  { %v1751_v9 = vadd.f32 %v1676_v14, %v1541_v34  ;;  %v1753_v52 = vadd.f32 %v1747_v26, %v1543_v50  ;;  %v2054_v34 = vld [vmem:[#allocation9 + $0xc8] sm:$0xff]  ;;  %v4570_v14 = vpack.c.bf16 %v2049_v13, %v2045_v24  ;;  %v4602_v26 = vpack.c.bf16 %v2051_v23, %v2047_v22  ;;  %v2059_v51 = vld [vmem:[#allocation9 + $0xf0] sm:$0xff]  ;;  %v2088_v13 = vld [vmem:[#allocation9 + $0x1d8] sm:$0xff] }
 0x760   :  { %v3965_v37 = vmul.f32 -1.442695, %v1750_v44  ;;  %v2060_v44 = vld [vmem:[#allocation9 + $0xf8] sm:$0xff]  ;;  %v2090_v24 = vld [vmem:[#allocation9 + $0x1e8] sm:$0xff]  ;;  %v2085_v23 = vld [vmem:[#allocation9 + $0x1c0] sm:$0xff] }
 0x761   :  { %v3966_v29 = vmul.f32 -1.442695, %v1751_v9  ;;  %v3967_v53 = vmul.f32 -1.442695, %v1753_v52  ;;  %v2053_v9 = vld [vmem:[#allocation9 + $0xc0] sm:$0xff]  ;;  %v4604_v50 = vpack.c.bf16 %v2060_v44, %v2056_v7  ;;  %v2055_v52 = vld [vmem:[#allocation9 + $0xd0] sm:$0xff] }
 0x762   :  { %5333 = vpow2.f32 %v3965_v37  ;;  %v2057_v37 = vld [vmem:[#allocation9 + $0xe0] sm:$0xff]  ;;  %v2087_v44 = vld [vmem:[#allocation9 + $0x1d0] sm:$0xff] }
 0x763   :  { %5335 = vpow2.f32 %v3966_v29  ;;  %v4572_v29 = vpack.c.bf16 %v2058_v54, %v2054_v34  ;;  %v2089_v7 = vld [vmem:[#allocation9 + $0x1e0] sm:$0xff] }
 0x764   :  { %5337 = vpow2.f32 %v3967_v53  ;;  %v2062_v53 = vld [vmem:[#allocation9 + $0x108] sm:$0xff] }
 0x765   :  { %5339 = vtanh.f32 %v1752_v47  ;;  %v2066_v47 = vld [vmem:[#allocation9 + $0x128] sm:$0xff] }
 0x76c   :  { %v5334_v59 = vpop.eup %5333 }
 0x76d   :  { %v5336_v60 = vpop.eup %5335  ;;  %v1757_v4 = vadd.f32 1.0, %v5334_v59  ;;  %v2064_v59 = vld [vmem:[#allocation9 + $0x118] sm:$0xff] }
 0x76e   :  { %v1763_v1 = vadd.f32 1.0, %v5336_v60  ;;  %v5338_v63 = vpop.eup %5337  ;;  %v2068_v60 = vld [vmem:[#allocation9 + $0x138] sm:$0xff] }
 0x76f   :  { %5341 = vrcp.f32 %v1757_v4  ;;  %v5340_v2 = vpop.eup %5339  ;;  %v1770_v3 = vadd.f32 1.0, %v5338_v63  ;;  %v4574_v4 = vpack.c.bf16 %v2057_v37, %v2053_v9  ;;  %v2061_v63 = vld [vmem:[#allocation9 + $0x100] sm:$0xff] }
 0x770   :  { %5343 = vrcp.f32 %v1763_v1  ;;  %v4606_v1 = vpack.c.bf16 %v2059_v51, %v2055_v52  ;;  %v2381_v37 = vld [vmem:[#allocation10 + $0x20] sm:$0xff]  ;;  %v2379_v52 = vld [vmem:[#allocation10 + $0x10] sm:$0xff] }
 0x771   :  { %5345 = vrcp.f32 %v1770_v3  ;;  %v2067_v3 = vld [vmem:[#allocation9 + $0x130] sm:$0xff] }
 0x772   :  { %v2383_v51 = vld [vmem:[#allocation10 + $0x30] sm:$0xff] }
 0x779   :  { %v5342_v6 = vpop.eup %5341 }
 0x77a   :  { %v5344_v61 = vpop.eup %5343  ;;  %v1774_v16 = vmul.f32 %v5342_v6, %v5340_v2  ;;  %v2065_v2 = vld [vmem:[#allocation9 + $0x120] sm:$0xff]  ;;  %v4576_v6 = vpack.c.bf16 %v2066_v47, %v2062_v53  ;;  %v2386_v53 = vld [vmem:[#allocation10 + $0x48] sm:$0xff] }
 0x77b   :  { %v1773_v19 = vmul.f32 %v5344_v61, %v6182_v31  ;;  %v5346_v5 = vpop.eup %5345  ;;  %v4608_v61 = vpack.c.bf16 %v2068_v60, %v2064_v59  ;;  %v4578_v62 = vpack.c.bf16 %v2065_v2, %v2061_v63  ;;  %v2390_v47 = vld [vmem:[#allocation10 + $0x68] sm:$0xff]  ;;  %v2388_v59 = vld [vmem:[#allocation10 + $0x58] sm:$0xff] }
 0x77c   :  { %v6266_v60 = vpack.c.bf16 %v2390_v47, %v2386_v53  ;;  %v2392_v63 = vld [vmem:[#allocation10 + $0x78] sm:$0xff]  ;;  %v2426_v47 = vld [vmem:[#allocation10 + $0x188] sm:$0xff] }
 0x77d   :  { %v6217_v8 = vadd.f32 %v1774_v16, %v1773_v19  ;;  %v2063_v16 = vld [vmem:[#allocation9 + $0x110] sm:$0xff]  ;;  %v2070_v19 = vld [vmem:[#allocation9 + $0x148] sm:$0xff] }
 0x77e   :  { %v4610_v15 = vpack.c.bf16 %v2067_v3, %v2063_v16  ;;  %v4580_v36 = vpack.c.bf16 %v2074_v17, %v2070_v19  ;;  %v2391_v16 = vld [vmem:[#allocation10 + $0x70] sm:$0xff]  ;;  %v2394_v19 = vld [vmem:[#allocation10 + $0x88] sm:$0xff] }
 0x77f   :  { %5347 = vtanh.f32 %v6217_v8  ;;  %v2398_v17 = vld [vmem:[#allocation10 + $0xa8] sm:$0xff] }
 0x789   :  { %v5348_v12 = vpop.eup %5347 }
 0x78a   :  { %v6220_v31 = vmul.f32 %v5348_v12, %v5346_v5  ;;  %v4612_v5 = vpack.c.bf16 %v2076_v45, %v2072_v33  ;;  %v2071_v12 = vld [vmem:[#allocation9 + $0x150] sm:$0xff]  ;;  %v2396_v33 = vld [vmem:[#allocation10 + $0x98] sm:$0xff]  ;;  %v6278_v45 = vpack.c.bf16 %v2398_v17, %v2394_v19 }
 0x78b   :  { %v2432_v19 = vld [vmem:[#allocation10 + $0x1b8] sm:$0xff] }
 0x78c   :  { %1914 = vmatmul.mubr.f32.vlgmr.msra.gmra.mrb[14].mxu0 %v6220_v31  ;;  %1985 = vmatmul.mubr.f32.vlgmr.msra.gmra.mrb[14].mxu1 %v6220_v31 }
 0x78d   :  { %4563 = vmatpush1.bf16.msra.mxu0 %v4562_v20  ;;  %4595 = vmatpush1.bf16.msra.mxu1 %v4594_v25  ;;  %v2075_v20 = vld [vmem:[#allocation9 + $0x170] sm:$0xff]  ;;  %v2078_v25 = vld [vmem:[#allocation9 + $0x188] sm:$0xff] }
 0x78e   :  { %4565 = vmatprep.subr.bf16.mxu0 %v4564_v58  ;;  %4597 = vmatprep.subr.bf16.mxu1 %v4596_v40  ;;  %v2084_v58 = vld [vmem:[#allocation9 + $0x1b8] sm:$0xff]  ;;  %v4582_v40 = vpack.c.bf16 %v2073_v28, %v2069_v18  ;;  %v4614_v41 = vpack.c.bf16 %v2075_v20, %v2071_v12  ;;  %v4584_v42 = vpack.c.bf16 %v2082_v30, %v2078_v25  ;;  %v2399_v12 = vld [vmem:[#allocation10 + $0xb0] sm:$0xff]  ;;  %v2402_v25 = vld [vmem:[#allocation10 + $0xc8] sm:$0xff] }
 0x78f   :  { %2179 = vmatprep.mubr.f32.mxu0 %v5642_v0  ;;  %2292 = vmatprep.mubr.f32.mxu1 %v5642_v0  ;;  %v4616_v55 = vpack.c.bf16 %v2084_v58, %v2080_v48  ;;  %v2400_v18 = vld [vmem:[#allocation10 + $0xb8] sm:$0xff]  ;;  %v2406_v30 = vld [vmem:[#allocation10 + $0xe8] sm:$0xff] }
 0x790   :  { %v2404_v48 = vld [vmem:[#allocation10 + $0xd8] sm:$0xff]  ;;  %v6290_v58 = vpack.c.bf16 %v2406_v30, %v2402_v25 }
 0x791   :  { %4567 = vmatpush1.bf16.msra.mxu0 %v4566_v39  ;;  %4599 = vmatpush1.bf16.msra.mxu1 %v4598_v11  ;;  %v2083_v39 = vld [vmem:[#allocation9 + $0x1b0] sm:$0xff]  ;;  %v2086_v11 = vld [vmem:[#allocation9 + $0x1c8] sm:$0xff]  ;;  %v2436_v30 = vld [vmem:[#allocation10 + $0x1d8] sm:$0xff] }
 0x792   :  { %4569 = vmatprep.subr.bf16.mxu0 %v4568_v46  ;;  %4601 = vmatprep.subr.bf16.mxu1 %v4600_v32  ;;  %v2092_v46 = vld [vmem:[#allocation9 + $0x1f8] sm:$0xff]  ;;  %v4586_v32 = vpack.c.bf16 %v2081_v35, %v2077_v10  ;;  %v4618_v22 = vpack.c.bf16 %v2083_v39, %v2079_v56  ;;  %v4588_v34 = vpack.c.bf16 %v2090_v24, %v2086_v11  ;;  %v2407_v56 = vld [vmem:[#allocation10 + $0xf0] sm:$0xff]  ;;  %v2410_v39 = vld [vmem:[#allocation10 + $0x108] sm:$0xff] }
 0x793   :  { %v4620_v54 = vpack.c.bf16 %v2092_v46, %v2088_v13  ;;  %v2408_v10 = vld [vmem:[#allocation10 + $0xf8] sm:$0xff]  ;;  %v2414_v24 = vld [vmem:[#allocation10 + $0x128] sm:$0xff]  ;;  %v2409_v13 = vld [vmem:[#allocation10 + $0x100] sm:$0xff] }
 0x794   :  { %v2413_v46 = vld [vmem:[#allocation10 + $0x120] sm:$0xff] }
 0x795   :  { %4571 = vmatpush1.bf16.msra.mxu0 %v4570_v14  ;;  %4603 = vmatpush1.bf16.msra.mxu1 %v4602_v26  ;;  %v2091_v14 = vld [vmem:[#allocation9 + $0x1f0] sm:$0xff]  ;;  %v4590_v26 = vpack.c.bf16 %v2089_v7, %v2085_v23  ;;  %v2412_v23 = vld [vmem:[#allocation10 + $0x118] sm:$0xff] }
 0x796   :  { %4573 = vmatprep.subr.bf16.mxu0 %v4572_v29  ;;  %4605 = vmatprep.subr.bf16.mxu1 %v4604_v50  ;;  %v4622_v9 = vpack.c.bf16 %v2091_v14, %v2087_v44  ;;  %v2415_v44 = vld [vmem:[#allocation10 + $0x130] sm:$0xff]  ;;  %v2418_v14 = vld [vmem:[#allocation10 + $0x148] sm:$0xff] }
 0x799   :  { %4575 = vmatpush1.bf16.msra.mxu0 %v4574_v4  ;;  %4607 = vmatpush1.bf16.msra.mxu1 %v4606_v1  ;;  %v2385_v4 = vld [vmem:[#allocation10 + $0x40] sm:$0xff] }
 0x79a   :  { %4577 = vmatprep.subr.bf16.mxu0 %v4576_v6  ;;  %4609 = vmatprep.subr.bf16.mxu1 %v4608_v61  ;;  %v2389_v1 = vld [vmem:[#allocation10 + $0x60] sm:$0xff]  ;;  %v6270_v6 = vpack.c.bf16 %v2392_v63, %v2388_v59  ;;  %v2387_v61 = vld [vmem:[#allocation10 + $0x50] sm:$0xff]  ;;  %v2430_v59 = vld [vmem:[#allocation10 + $0x1a8] sm:$0xff] }
 0x79b   :  { %v6268_v2 = vpack.c.bf16 %v2389_v1, %v2385_v4  ;;  %v6273_v3 = vpack.c.bf16 %v2391_v16, %v2387_v61  ;;  %v2425_v4 = vld [vmem:[#allocation10 + $0x180] sm:$0xff]  ;;  %v6323_v63 = vpack.c.bf16 %v2430_v59, %v2426_v47  ;;  %v2428_v16 = vld [vmem:[#allocation10 + $0x198] sm:$0xff] }
 0x79c   :  { %v2429_v61 = vld [vmem:[#allocation10 + $0x1a0] sm:$0xff]  ;;  %v6326_v17 = vpack.c.bf16 %v2432_v19, %v2428_v16 }
 0x79d   :  { %4579 = vmatpush1.bf16.msra.mxu0 %v4578_v62  ;;  %4611 = vmatpush1.bf16.msra.mxu1 %v4610_v15  ;;  %v2393_v62 = vld [vmem:[#allocation10 + $0x80] sm:$0xff] }
 0x79e   :  { %4581 = vmatprep.subr.bf16.mxu0 %v4580_v36  ;;  %4613 = vmatprep.subr.bf16.mxu1 %v4612_v5  ;;  %v2397_v15 = vld [vmem:[#allocation10 + $0xa0] sm:$0xff]  ;;  %v6282_v36 = vpack.c.bf16 %v2400_v18, %v2396_v33  ;;  %v2395_v5 = vld [vmem:[#allocation10 + $0x90] sm:$0xff]  ;;  %v2438_v18 = vld [vmem:[#allocation10 + $0x1e8] sm:$0xff] }
 0x79f   :  { %v6280_v28 = vpack.c.bf16 %v2397_v15, %v2393_v62  ;;  %v6285_v20 = vpack.c.bf16 %v2399_v12, %v2395_v5  ;;  %v2427_v33 = vld [vmem:[#allocation10 + $0x190] sm:$0xff]  ;;  %v2434_v15 = vld [vmem:[#allocation10 + $0x1c8] sm:$0xff]  ;;  %v6329_v5 = vpack.c.bf16 %v2429_v61, %v2425_v4 }
 0x7a0   :  { %v2431_v62 = vld [vmem:[#allocation10 + $0x1b0] sm:$0xff]  ;;  %v6335_v25 = vpack.c.bf16 %v2438_v18, %v2434_v15 }
 0x7a1   :  { %4583 = vmatpush1.bf16.msra.mxu0 %v4582_v40  ;;  %4615 = vmatpush1.bf16.msra.mxu1 %v4614_v41  ;;  %v2401_v40 = vld [vmem:[#allocation10 + $0xc0] sm:$0xff]  ;;  %v6333_v12 = vpack.c.bf16 %v2431_v62, %v2427_v33 }
 0x7a2   :  { %4585 = vmatprep.subr.bf16.mxu0 %v4584_v42  ;;  %4617 = vmatprep.subr.bf16.mxu1 %v4616_v55  ;;  %v2405_v41 = vld [vmem:[#allocation10 + $0xe0] sm:$0xff]  ;;  %v6294_v42 = vpack.c.bf16 %v2408_v10, %v2404_v48  ;;  %v2403_v55 = vld [vmem:[#allocation10 + $0xd0] sm:$0xff]  ;;  %v2440_v48 = vld [vmem:[#allocation10 + $0x1f8] sm:$0xff] }
 0x7a3   :  { %v6292_v35 = vpack.c.bf16 %v2405_v41, %v2401_v40  ;;  %v6297_v11 = vpack.c.bf16 %v2407_v56, %v2403_v55  ;;  %v2433_v40 = vld [vmem:[#allocation10 + $0x1c0] sm:$0xff]  ;;  %v6341_v10 = vpack.c.bf16 %v2440_v48, %v2436_v30  ;;  %v2435_v55 = vld [vmem:[#allocation10 + $0x1d0] sm:$0xff] }
 0x7a4   :  { %v2437_v41 = vld [vmem:[#allocation10 + $0x1e0] sm:$0xff] }
 0x7a5   :  { %4587 = vmatpush1.bf16.msra.mxu0 %v4586_v32  ;;  %4619 = vmatpush1.bf16.msra.mxu1 %v4618_v22  ;;  %v6301_v32 = vpack.c.bf16 %v2414_v24, %v2410_v39  ;;  %v6303_v22 = vpack.c.bf16 %v2413_v46, %v2409_v13  ;;  %v6343_v56 = vpack.c.bf16 %v2437_v41, %v2433_v40  ;;  %v2439_v39 = vld [vmem:[#allocation10 + $0x1f0] sm:$0xff]  ;;  %v1781_v13 = vld [vmem:[#allocation4 + $0xe0] sm:$0xff]  ;;  %v1782_v46 = vld [vmem:[#allocation4 + $0xe8] sm:$0xff] }
 0x7a6   :  { %4589 = vmatprep.subr.bf16.mxu0 %v4588_v34  ;;  %4621 = vmatprep.subr.bf16.mxu1 %v4620_v54  ;;  %v2416_v34 = vld [vmem:[#allocation10 + $0x138] sm:$0xff]  ;;  %v2411_v54 = vld [vmem:[#allocation10 + $0x110] sm:$0xff]  ;;  %v6346_v24 = vpack.c.bf16 %v2439_v39, %v2435_v55 }
 0x7a7   :  { %v6306_v7 = vpack.c.bf16 %v2416_v34, %v2412_v23 }
 0x7a9   :  { %4591 = vmatpush1.bf16.msra.mxu0 %v4590_v26  ;;  %4623 = vmatpush1.bf16.msra.mxu1 %v4622_v9  ;;  %v2422_v26 = vld [vmem:[#allocation10 + $0x168] sm:$0xff]  ;;  %v6309_v9 = vpack.c.bf16 %v2415_v44, %v2411_v54 }
 0x7ac   :  { %2180 = vmatmul.mubr.f32.vlgmr.msra.gmra.mrb[16].mxu0 %v5911_v43  ;;  %2293 = vmatmul.mubr.f32.vlgmr.msra.gmra.mrb[16].mxu1 %v5911_v43  ;;  %v2378_v43 = vld [vmem:[#allocation10 + $0x8] sm:$0xff] }
 0x7ad   :  { %2185 = vmatprep.mubr.f32.mxu0 %v5642_v0  ;;  %2298 = vmatprep.mubr.f32.mxu1 %v5642_v0 }
 0x7b0   :  { %2186 = vmatmul.mubr.f32.gmra.mrb[18].mxu0 %v5953_v21  ;;  %2299 = vmatmul.mubr.f32.gmra.mrb[18].mxu1 %v5953_v21  ;;  %v2382_v21 = vld [vmem:[#allocation10 + $0x28] sm:$0xff] }
 0x7b1   :  { %2191 = vmatprep.mubr.f32.mxu0 %v5642_v0  ;;  %2304 = vmatprep.mubr.f32.mxu1 %v5642_v0 }
 0x7b4   :  { %2192 = vmatmul.mubr.f32.gmra.mrb[20].mxu0 %v6003_v57  ;;  %2305 = vmatmul.mubr.f32.gmra.mrb[20].mxu1 %v6003_v57  ;;  %v2380_v57 = vld [vmem:[#allocation10 + $0x18] sm:$0xff] }
 0x7b5   :  { %2197 = vmatprep.mubr.f32.mxu0 %v5642_v0  ;;  %2310 = vmatprep.mubr.f32.mxu1 %v5642_v0 }
 0x7b8   :  { %2198 = vmatmul.mubr.f32.gmra.mrb[22].mxu0 %v6101_v38  ;;  %2311 = vmatmul.mubr.f32.gmra.mrb[22].mxu1 %v6101_v38  ;;  %v6254_v38 = vpack.c.bf16 %v2382_v21, %v2378_v43  ;;  %v6311_v43 = vpack.c.bf16 %v2422_v26, %v2418_v14  ;;  %v2417_v21 = vld [vmem:[#allocation10 + $0x140] sm:$0xff] }
 0x7b9   :  { %2203 = vmatprep.mubr.f32.mxu0 %v5642_v0  ;;  %2316 = vmatprep.mubr.f32.mxu1 %v5642_v0 }
 0x7ba   :  { %4625 = vmatprep.subr.bf16.mxu0 %v6254_v38 }
 0x7bc   :  { %2204 = vmatmul.mubr.f32.gmra.mrb[24].mxu0 %v6143_v49  ;;  %2317 = vmatmul.mubr.f32.gmra.mrb[24].mxu1 %v6143_v49  ;;  %v2377_v49 = vld [vmem:[#allocation10] sm:$0xff] }
 0x7bd   :  { %2209 = vmatprep.mubr.f32.mxu0 %v5642_v0  ;;  %2322 = vmatprep.mubr.f32.mxu1 %v5642_v0  ;;  %v6256_v29 = vpack.c.bf16 %v2381_v37, %v2377_v49  ;;  %v2420_v49 = vld [vmem:[#allocation10 + $0x158] sm:$0xff] }
 0x7be   :  { %v2424_v37 = vld [vmem:[#allocation10 + $0x178] sm:$0xff] }
 0x7bf   :  { %4627 = vmatpush1.bf16.msra.mxu0 %v6256_v29  ;;  %v6317_v53 = vpack.c.bf16 %v2424_v37, %v2420_v49  ;;  %v1784_v49 = vld [vmem:[#allocation4 + $0xf8] sm:$0xff] }
 0x7c0   :  { %2210 = vmatmul.mubr.f32.gmra.mrb[26].mxu0 %v6185_v27  ;;  %2323 = vmatmul.mubr.f32.gmra.mrb[26].mxu1 %v6185_v27  ;;  %v2384_v27 = vld [vmem:[#allocation10 + $0x38] sm:$0xff] }
 0x7c1   :  { %2215 = vmatprep.mubr.f32.mxu0 %v5642_v0  ;;  %2328 = vmatprep.mubr.f32.mxu1 %v5642_v0  ;;  %v6258_v50 = vpack.c.bf16 %v2384_v27, %v2380_v57  ;;  %v2421_v57 = vld [vmem:[#allocation10 + $0x160] sm:$0xff]  ;;  %v2419_v27 = vld [vmem:[#allocation10 + $0x150] sm:$0xff] }
 0x7c2   :  { %4629 = vmatprep.subr.bf16.mxu0 %v6266_v60 }
 0x7c3   :  { %4657 = vmatprep.subr.bf16.mxu1 %v6258_v50  ;;  %4631 = vmatpush1.bf16.msra.mxu0 %v6268_v2 }
 0x7c4   :  { %2216 = vmatmul.mubr.f32.gmra.mrb[28].mxu0 %v6220_v31  ;;  %2329 = vmatmul.mubr.f32.gmra.mrb[28].mxu1 %v6220_v31  ;;  %v6261_v31 = vpack.c.bf16 %v2383_v51, %v2379_v52  ;;  %v2423_v52 = vld [vmem:[#allocation10 + $0x170] sm:$0xff]  ;;  %v6315_v51 = vpack.c.bf16 %v2421_v57, %v2417_v21 }
 0x7c5   :  { %2221 = vmatprep.mubr.f32.mxu0 %v5642_v0  ;;  %2334 = vmatprep.mubr.f32.mxu1 %v5642_v0  ;;  %v6321_v1 = vpack.c.bf16 %v2423_v52, %v2419_v27  ;;  %v1783_v27 = vld [vmem:[#allocation4 + $0xf0] sm:$0xff] }
 0x7c6   :  { %4659 = vmatpush1.bf16.msra.mxu1 %v6261_v31  ;;  %4633 = vmatprep.subr.bf16.mxu0 %v6278_v45 }
 0x7c7   :  { %4661 = vmatprep.subr.bf16.mxu1 %v6270_v6  ;;  %4635 = vmatpush1.bf16.msra.mxu0 %v6280_v28 }
 0x7c8   :  { %4637 = vmatprep.subr.bf16.mxu0 %v6290_v58 }
 0x7ca   :  { %4663 = vmatpush1.bf16.msra.mxu1 %v6273_v3 }
 0x7cb   :  { %4665 = vmatprep.subr.bf16.mxu1 %v6282_v36  ;;  %4639 = vmatpush1.bf16.msra.mxu0 %v6292_v35 }
 0x7cc   :  { %4641 = vmatprep.subr.bf16.mxu0 %v6301_v32 }
 0x7ce   :  { %4667 = vmatpush1.bf16.msra.mxu1 %v6285_v20 }
 0x7cf   :  { %4669 = vmatprep.subr.bf16.mxu1 %v6294_v42  ;;  %4643 = vmatpush1.bf16.msra.mxu0 %v6303_v22 }
 0x7d0   :  { %4645 = vmatprep.subr.bf16.mxu0 %v6311_v43 }
 0x7d2   :  { %4671 = vmatpush1.bf16.msra.mxu1 %v6297_v11 }
 0x7d3   :  { %4673 = vmatprep.subr.bf16.mxu1 %v6306_v7  ;;  %4647 = vmatpush1.bf16.msra.mxu0 %v6315_v51 }
 0x7d4   :  { %4649 = vmatprep.subr.bf16.mxu0 %v6323_v63 }
 0x7d6   :  { %4675 = vmatpush1.bf16.msra.mxu1 %v6309_v9 }
 0x7d7   :  { %4677 = vmatprep.subr.bf16.mxu1 %v6317_v53  ;;  %4651 = vmatpush1.bf16.msra.mxu0 %v6329_v5 }
 0x7d8   :  { %4653 = vmatprep.subr.bf16.mxu0 %v6335_v25 }
 0x7da   :  { %4679 = vmatpush1.bf16.msra.mxu1 %v6321_v1 }
 0x7db   :  { %4681 = vmatprep.subr.bf16.mxu1 %v6326_v17  ;;  %4655 = vmatpush1.bf16.msra.mxu0 %v6343_v56 }
 0x7dc   :  { %4689 = vmatprep.subr.bf16.mxu0 %v6254_v38 }
 0x7de   :  { %4683 = vmatpush1.bf16.msra.mxu1 %v6333_v12 }
 0x7df   :  { %4685 = vmatprep.subr.bf16.mxu1 %v6341_v10 }
 0x7e2   :  { %4687 = vmatpush1.bf16.msra.mxu1 %v6346_v24 }
 0x7e3   :  { %4721 = vmatprep.subr.bf16.mxu1 %v6258_v50 }
 0x85f   :  { %v1915_v23 = vpop.f32.mrb[14].mxu0  ;;  %v1986_v34 = vpop.f32.mrb[14].mxu1 }
 0x860   :  { %v1991_v54 = vadd.f32 %v1915_v23, %v1781_v13  ;;  %v1917_v44 = vpop.f32.mrb[15].mxu0  ;;  %v1988_v14 = vpop.f32.mrb[15].mxu1  ;;  %v1993_v47 = vadd.f32 %v1986_v34, %v1783_v27  ;;  %v2093_v23 = vld [vmem:[%s6683_s3] sm:$0xf] }
 0x861   :  { %v1992_v26 = vadd.f32 %v1917_v44, %v1782_v46  ;;  %v1994_v37 = vadd.f32 %v1988_v14, %v1784_v49 }
 0x862   :  { %v3968_v21 = vmul.f32 -1.442695, %v1991_v54 }
 0x863   :  { %v3969_v57 = vmul.f32 -1.442695, %v1992_v26  ;;  %v3970_v52 = vmul.f32 -1.442695, %v1994_v37 }
 0x864   :  { %5349 = vpow2.f32 %v3968_v21 }
 0x865   :  { %5351 = vpow2.f32 %v3969_v57 }
 0x866   :  { %5353 = vpow2.f32 %v3970_v52 }
 0x867   :  { %5355 = vtanh.f32 %v1993_v47 }
 0x86e   :  { %v5350_v59 = vpop.eup %5349 }
 0x86f   :  { %v5352_v4 = vpop.eup %5351  ;;  %v1998_v61 = vadd.f32 1.0, %v5350_v59 }
 0x870   :  { %v2004_v16 = vadd.f32 1.0, %v5352_v4  ;;  %v5354_v19 = vpop.eup %5353 }
 0x871   :  { %5357 = vrcp.f32 %v1998_v61  ;;  %v5356_v33 = vpop.eup %5355  ;;  %v2011_v30 = vadd.f32 1.0, %v5354_v19 }
 0x872   :  { %5359 = vrcp.f32 %v2004_v16 }
 0x873   :  { %5361 = vrcp.f32 %v2011_v30 }
 0x87b   :  { %v5358_v62 = vpop.eup %5357 }
 0x87c   :  { %v5360_v15 = vpop.eup %5359  ;;  %v2015_v18 = vmul.f32 %v5358_v62, %v5356_v33 }
 0x87d   :  { %v2014_v48 = vmul.f32 %v5360_v15, %v6217_v8  ;;  %v5362_v41 = vpop.eup %5361  ;;  %v2095_v8 = vlaneseq }
 0x87f   :  { %v2016_v40 = vadd.f32 %v2015_v18, %v2014_v48  ;;  %v2096_v13 = vshrl.u32 %v2095_v8, 7 }
 0x881   :  { %5363 = vtanh.f32 %v2016_v40  ;;  %v2097_v46 = vsub.s32 0, %v2096_v13  ;;  %v2101_v34 = vsub.s32 1, %v2096_v13  ;;  %v2109_v21 = vsub.s32 3, %v2096_v13 }
 0x882   :  { %v2105_v4 = vsub.s32 2, %v2096_v13 }
 0x883   :  { %v6394_v54 = vrot.slane %v2093_v23, %v2097_v46  ;;  %v6396_v44 = vrot.slane %v2093_v23, %v2101_v34  ;;  %v6400_v59 = vrot.slane %v2093_v23, %v2109_v21 }
 0x884   :  { %v6403_v16 = vrot.slane %v2093_v23, %v2105_v4 }
 0x88b   :  { %v5364_v55 = vpop.eup %5363 }
 0x88c   :  { %v2018_v39 = vmul.f32 %v5364_v55, %v5362_v41 }
 0x88e   :  { %2222 = vmatmul.mubr.f32.gmra.mrb[30].mxu0 %v2018_v39  ;;  %2335 = vmatmul.mubr.f32.gmra.mrb[30].mxu1 %v2018_v39 }
 0x88f   :  { %2505 = vmatprep.mubr.f32.mxu0 %v5642_v0  ;;  %2576 = vmatprep.mubr.f32.mxu1 %v5642_v0 }
 0x892   :  { %2506 = vmatmul.mubr.f32.vlgmr.msra.gmra.mrb[16].mxu0 %v5642_v0  ;;  %2577 = vmatmul.mubr.f32.vlgmr.msra.gmra.mrb[16].mxu1 %v5642_v0 }
 0x893   :  { %4691 = vmatpush1.bf16.msra.mxu0 %v6256_v29  ;;  %4723 = vmatpush1.bf16.msra.mxu1 %v6261_v31 }
 0x894   :  { %4693 = vmatprep.subr.bf16.mxu0 %v6266_v60  ;;  %4725 = vmatprep.subr.bf16.mxu1 %v6270_v6 }
 0x895   :  { %2680 = vmatprep.mubr.f32.mxu0 %v5642_v0  ;;  %2751 = vmatprep.mubr.f32.mxu1 %v5642_v0 }
 0x897   :  { %4695 = vmatpush1.bf16.msra.mxu0 %v6268_v2  ;;  %4727 = vmatpush1.bf16.msra.mxu1 %v6273_v3 }
 0x898   :  { %4697 = vmatprep.subr.bf16.mxu0 %v6278_v45  ;;  %4729 = vmatprep.subr.bf16.mxu1 %v6282_v36 }
 0x89b   :  { %4699 = vmatpush1.bf16.msra.mxu0 %v6280_v28  ;;  %4731 = vmatpush1.bf16.msra.mxu1 %v6285_v20 }
 0x89c   :  { %4701 = vmatprep.subr.bf16.mxu0 %v6290_v58  ;;  %4733 = vmatprep.subr.bf16.mxu1 %v6294_v42 }
 0x89f   :  { %4703 = vmatpush1.bf16.msra.mxu0 %v6292_v35  ;;  %4735 = vmatpush1.bf16.msra.mxu1 %v6297_v11 }
 0x8a0   :  { %4705 = vmatprep.subr.bf16.mxu0 %v6301_v32  ;;  %4737 = vmatprep.subr.bf16.mxu1 %v6306_v7 }
 0x8a3   :  { %4707 = vmatpush1.bf16.msra.mxu0 %v6303_v22  ;;  %4739 = vmatpush1.bf16.msra.mxu1 %v6309_v9 }
 0x8a4   :  { %4709 = vmatprep.subr.bf16.mxu0 %v6311_v43  ;;  %4741 = vmatprep.subr.bf16.mxu1 %v6317_v53 }
 0x8a7   :  { %4711 = vmatpush1.bf16.msra.mxu0 %v6315_v51  ;;  %4743 = vmatpush1.bf16.msra.mxu1 %v6321_v1 }
 0x8a8   :  { %4713 = vmatprep.subr.bf16.mxu0 %v6323_v63  ;;  %4745 = vmatprep.subr.bf16.mxu1 %v6326_v17 }
 0x8ab   :  { %4715 = vmatpush1.bf16.msra.mxu0 %v6329_v5  ;;  %4747 = vmatpush1.bf16.msra.mxu1 %v6333_v12 }
 0x8ac   :  { %4717 = vmatprep.subr.bf16.mxu0 %v6335_v25  ;;  %4749 = vmatprep.subr.bf16.mxu1 %v6341_v10 }
 0x8af   :  { %4719 = vmatpush1.bf16.msra.mxu0 %v6343_v56  ;;  %4751 = vmatpush1.bf16.msra.mxu1 %v6346_v24 }
 0x8b0   :  { %4753 = vmatprep.subr.bf16.mxu0 %v6254_v38  ;;  %4785 = vmatprep.subr.bf16.mxu1 %v6258_v50 }
 0x965   :  { %v2507_v14 = vpop.f32.mrb[16].mxu0  ;;  %v2578_v26 = vpop.f32.mrb[16].mxu1 }
 0x966   :  { %v5160_v57 = vadd.f32 %v2507_v14, %v6394_v54  ;;  %v2509_v49 = vpop.f32.mrb[17].mxu0  ;;  %v2580_v37 = vpop.f32.mrb[17].mxu1  ;;  %v5176_v33 = vadd.f32 %v2578_v26, %v6403_v16 }
 0x967   :  { %v5161_v27 = vadd.f32 %v2509_v49, %v6396_v44  ;;  %v5177_v61 = vadd.f32 %v2580_v37, %v6400_v59 }
 0x968   :  { %v3971_v52 = vmul.f32 -1.442695, %v5160_v57 }
 0x969   :  { %v3972_v47 = vmul.f32 -1.442695, %v5161_v27  ;;  %v3973_v19 = vmul.f32 -1.442695, %v5177_v61 }
 0x96a   :  { %5365 = vpow2.f32 %v3971_v52 }
 0x96b   :  { %5367 = vpow2.f32 %v3972_v47 }
 0x96c   :  { %5369 = vpow2.f32 %v3973_v19 }
 0x96d   :  { %5371 = vtanh.f32 %v5176_v33 }
 0x974   :  { %v5366_v62 = vpop.eup %5365 }
 0x975   :  { %v5368_v15 = vpop.eup %5367  ;;  %v2590_v18 = vadd.f32 1.0, %v5366_v62 }
 0x976   :  { %v2596_v30 = vadd.f32 1.0, %v5368_v15  ;;  %v5370_v48 = vpop.eup %5369 }
 0x977   :  { %5373 = vrcp.f32 %v2590_v18  ;;  %v5372_v40 = vpop.eup %5371  ;;  %v2603_v8 = vadd.f32 1.0, %v5370_v48 }
 0x978   :  { %5375 = vrcp.f32 %v2596_v30 }
 0x979   :  { %5377 = vrcp.f32 %v2603_v8 }
 0x981   :  { %v5374_v41 = vpop.eup %5373 }
 0x982   :  { %v5376_v55 = vpop.eup %5375  ;;  %v2607_v39 = vmul.f32 %v5374_v41, %v5372_v40 }
 0x983   :  { %v2606_v13 = vmul.f32 0.0, %v5376_v55  ;;  %v5378_v23 = vpop.eup %5377 }
 0x985   :  { %v6406_v46 = vadd.f32 %v2607_v39, %v2606_v13 }
 0x987   :  { %5379 = vtanh.f32 %v6406_v46 }
 0x991   :  { %v5380_v34 = vpop.eup %5379 }
 0x992   :  { %v2610_v14 = vmul.f32 %v5380_v34, %v5378_v23 }
 0x994   :  { %2681 = vmatmul.mubr.f32.vlgmr.msra.gmra.mrb[18].mxu0 %v2610_v14  ;;  %2752 = vmatmul.mubr.f32.vlgmr.msra.gmra.mrb[18].mxu1 %v2610_v14 }
 0x995   :  { %4755 = vmatpush1.bf16.msra.mxu0 %v6256_v29  ;;  %4787 = vmatpush1.bf16.msra.mxu1 %v6261_v31 }
 0x996   :  { %4757 = vmatprep.subr.bf16.mxu0 %v6266_v60  ;;  %4789 = vmatprep.subr.bf16.mxu1 %v6270_v6 }
 0x997   :  { %2855 = vmatprep.mubr.f32.mxu0 %v5642_v0  ;;  %2926 = vmatprep.mubr.f32.mxu1 %v5642_v0 }
 0x999   :  { %4759 = vmatpush1.bf16.msra.mxu0 %v6268_v2  ;;  %4791 = vmatpush1.bf16.msra.mxu1 %v6273_v3 }
 0x99a   :  { %4761 = vmatprep.subr.bf16.mxu0 %v6278_v45  ;;  %4793 = vmatprep.subr.bf16.mxu1 %v6282_v36 }
 0x99d   :  { %4763 = vmatpush1.bf16.msra.mxu0 %v6280_v28  ;;  %4795 = vmatpush1.bf16.msra.mxu1 %v6285_v20 }
 0x99e   :  { %4765 = vmatprep.subr.bf16.mxu0 %v6290_v58  ;;  %4797 = vmatprep.subr.bf16.mxu1 %v6294_v42 }
 0x9a1   :  { %4767 = vmatpush1.bf16.msra.mxu0 %v6292_v35  ;;  %4799 = vmatpush1.bf16.msra.mxu1 %v6297_v11 }
 0x9a2   :  { %4769 = vmatprep.subr.bf16.mxu0 %v6301_v32  ;;  %4801 = vmatprep.subr.bf16.mxu1 %v6306_v7 }
 0x9a5   :  { %4771 = vmatpush1.bf16.msra.mxu0 %v6303_v22  ;;  %4803 = vmatpush1.bf16.msra.mxu1 %v6309_v9 }
 0x9a6   :  { %4773 = vmatprep.subr.bf16.mxu0 %v6311_v43  ;;  %4805 = vmatprep.subr.bf16.mxu1 %v6317_v53 }
 0x9a9   :  { %4775 = vmatpush1.bf16.msra.mxu0 %v6315_v51  ;;  %4807 = vmatpush1.bf16.msra.mxu1 %v6321_v1 }
 0x9aa   :  { %4777 = vmatprep.subr.bf16.mxu0 %v6323_v63  ;;  %4809 = vmatprep.subr.bf16.mxu1 %v6326_v17 }
 0x9ad   :  { %4779 = vmatpush1.bf16.msra.mxu0 %v6329_v5  ;;  %4811 = vmatpush1.bf16.msra.mxu1 %v6333_v12 }
 0x9ae   :  { %4781 = vmatprep.subr.bf16.mxu0 %v6335_v25  ;;  %4813 = vmatprep.subr.bf16.mxu1 %v6341_v10 }
 0x9b1   :  { %4783 = vmatpush1.bf16.msra.mxu0 %v6343_v56  ;;  %4815 = vmatpush1.bf16.msra.mxu1 %v6346_v24 }
 0x9b2   :  { %4817 = vmatprep.subr.bf16.mxu0 %v6254_v38  ;;  %4849 = vmatprep.subr.bf16.mxu1 %v6258_v50 }
 0xa67   :  { %v2682_v26 = vpop.f32.mrb[18].mxu0  ;;  %v2753_v21 = vpop.f32.mrb[18].mxu1 }
 0xa68   :  { %v5162_v57 = vadd.f32 %v2682_v26, %v6394_v54  ;;  %v2684_v49 = vpop.f32.mrb[19].mxu0  ;;  %v2755_v37 = vpop.f32.mrb[19].mxu1  ;;  %v5178_v19 = vadd.f32 %v2753_v21, %v6403_v16 }
 0xa69   :  { %v5163_v27 = vadd.f32 %v2684_v49, %v6396_v44  ;;  %v5179_v4 = vadd.f32 %v2755_v37, %v6400_v59 }
 0xa6a   :  { %v3974_v52 = vmul.f32 -1.442695, %v5162_v57 }
 0xa6b   :  { %v3975_v47 = vmul.f32 -1.442695, %v5163_v27  ;;  %v3976_v61 = vmul.f32 -1.442695, %v5179_v4 }
 0xa6c   :  { %5381 = vpow2.f32 %v3974_v52 }
 0xa6d   :  { %5383 = vpow2.f32 %v3975_v47 }
 0xa6e   :  { %5385 = vpow2.f32 %v3976_v61 }
 0xa6f   :  { %5387 = vtanh.f32 %v5178_v19 }
 0xa76   :  { %v5382_v33 = vpop.eup %5381 }
 0xa77   :  { %v5384_v62 = vpop.eup %5383  ;;  %v2765_v15 = vadd.f32 1.0, %v5382_v33 }
 0xa78   :  { %v2771_v18 = vadd.f32 1.0, %v5384_v62  ;;  %v5386_v30 = vpop.eup %5385 }
 0xa79   :  { %5389 = vrcp.f32 %v2765_v15  ;;  %v5388_v48 = vpop.eup %5387  ;;  %v2778_v39 = vadd.f32 1.0, %v5386_v30 }
 0xa7a   :  { %5391 = vrcp.f32 %v2771_v18 }
 0xa7b   :  { %5393 = vrcp.f32 %v2778_v39 }
 0xa83   :  { %v5390_v40 = vpop.eup %5389 }
 0xa84   :  { %v5392_v41 = vpop.eup %5391  ;;  %v2782_v55 = vmul.f32 %v5390_v40, %v5388_v48 }
 0xa85   :  { %v2781_v8 = vmul.f32 %v5392_v41, %v6406_v46  ;;  %v5394_v23 = vpop.eup %5393 }
 0xa87   :  { %v6448_v13 = vadd.f32 %v2782_v55, %v2781_v8 }
 0xa89   :  { %5395 = vtanh.f32 %v6448_v13 }
 0xa93   :  { %v5396_v34 = vpop.eup %5395 }
 0xa94   :  { %v2785_v14 = vmul.f32 %v5396_v34, %v5394_v23 }
 0xa96   :  { %2856 = vmatmul.mubr.f32.vlgmr.msra.gmra.mrb[20].mxu0 %v2785_v14  ;;  %2927 = vmatmul.mubr.f32.vlgmr.msra.gmra.mrb[20].mxu1 %v2785_v14 }
 0xa97   :  { %4819 = vmatpush1.bf16.msra.mxu0 %v6256_v29  ;;  %4851 = vmatpush1.bf16.msra.mxu1 %v6261_v31 }
 0xa98   :  { %4821 = vmatprep.subr.bf16.mxu0 %v6266_v60  ;;  %4853 = vmatprep.subr.bf16.mxu1 %v6270_v6 }
 0xa99   :  { %3030 = vmatprep.mubr.f32.mxu0 %v5642_v0  ;;  %3101 = vmatprep.mubr.f32.mxu1 %v5642_v0 }
 0xa9b   :  { %4823 = vmatpush1.bf16.msra.mxu0 %v6268_v2  ;;  %4855 = vmatpush1.bf16.msra.mxu1 %v6273_v3 }
 0xa9c   :  { %4825 = vmatprep.subr.bf16.mxu0 %v6278_v45  ;;  %4857 = vmatprep.subr.bf16.mxu1 %v6282_v36 }
 0xa9f   :  { %4827 = vmatpush1.bf16.msra.mxu0 %v6280_v28  ;;  %4859 = vmatpush1.bf16.msra.mxu1 %v6285_v20 }
 0xaa0   :  { %4829 = vmatprep.subr.bf16.mxu0 %v6290_v58  ;;  %4861 = vmatprep.subr.bf16.mxu1 %v6294_v42 }
 0xaa3   :  { %4831 = vmatpush1.bf16.msra.mxu0 %v6292_v35  ;;  %4863 = vmatpush1.bf16.msra.mxu1 %v6297_v11 }
 0xaa4   :  { %4833 = vmatprep.subr.bf16.mxu0 %v6301_v32  ;;  %4865 = vmatprep.subr.bf16.mxu1 %v6306_v7 }
 0xaa7   :  { %4835 = vmatpush1.bf16.msra.mxu0 %v6303_v22  ;;  %4867 = vmatpush1.bf16.msra.mxu1 %v6309_v9 }
 0xaa8   :  { %4837 = vmatprep.subr.bf16.mxu0 %v6311_v43  ;;  %4869 = vmatprep.subr.bf16.mxu1 %v6317_v53 }
 0xaab   :  { %4839 = vmatpush1.bf16.msra.mxu0 %v6315_v51  ;;  %4871 = vmatpush1.bf16.msra.mxu1 %v6321_v1 }
 0xaac   :  { %4841 = vmatprep.subr.bf16.mxu0 %v6323_v63  ;;  %4873 = vmatprep.subr.bf16.mxu1 %v6326_v17 }
 0xaaf   :  { %4843 = vmatpush1.bf16.msra.mxu0 %v6329_v5  ;;  %4875 = vmatpush1.bf16.msra.mxu1 %v6333_v12 }
 0xab0   :  { %4845 = vmatprep.subr.bf16.mxu0 %v6335_v25  ;;  %4877 = vmatprep.subr.bf16.mxu1 %v6341_v10 }
 0xab3   :  { %4847 = vmatpush1.bf16.msra.mxu0 %v6343_v56  ;;  %4879 = vmatpush1.bf16.msra.mxu1 %v6346_v24 }
 0xab4   :  { %4881 = vmatprep.subr.bf16.mxu0 %v6254_v38  ;;  %4913 = vmatprep.subr.bf16.mxu1 %v6258_v50 }
 0xb69   :  { %v2857_v46 = vpop.f32.mrb[20].mxu0  ;;  %v2928_v26 = vpop.f32.mrb[20].mxu1 }
 0xb6a   :  { %v5164_v21 = vadd.f32 %v2857_v46, %v6394_v54  ;;  %v2859_v57 = vpop.f32.mrb[21].mxu0  ;;  %v2930_v49 = vpop.f32.mrb[21].mxu1  ;;  %v5180_v61 = vadd.f32 %v2928_v26, %v6403_v16 }
 0xb6b   :  { %v5165_v37 = vadd.f32 %v2859_v57, %v6396_v44  ;;  %v5181_v47 = vadd.f32 %v2930_v49, %v6400_v59 }
 0xb6c   :  { %v3977_v27 = vmul.f32 -1.442695, %v5164_v21 }
 0xb6d   :  { %v3978_v52 = vmul.f32 -1.442695, %v5165_v37  ;;  %v3979_v4 = vmul.f32 -1.442695, %v5181_v47 }
 0xb6e   :  { %5397 = vpow2.f32 %v3977_v27 }
 0xb6f   :  { %5399 = vpow2.f32 %v3978_v52 }
 0xb70   :  { %5401 = vpow2.f32 %v3979_v4 }
 0xb71   :  { %5403 = vtanh.f32 %v5180_v61 }
 0xb78   :  { %v5398_v19 = vpop.eup %5397 }
 0xb79   :  { %v5400_v33 = vpop.eup %5399  ;;  %v2940_v62 = vadd.f32 1.0, %v5398_v19 }
 0xb7a   :  { %v2946_v15 = vadd.f32 1.0, %v5400_v33  ;;  %v5402_v18 = vpop.eup %5401 }
 0xb7b   :  { %5405 = vrcp.f32 %v2940_v62  ;;  %v5404_v30 = vpop.eup %5403  ;;  %v2953_v55 = vadd.f32 1.0, %v5402_v18 }
 0xb7c   :  { %5407 = vrcp.f32 %v2946_v15 }
 0xb7d   :  { %5409 = vrcp.f32 %v2953_v55 }
 0xb85   :  { %v5406_v48 = vpop.eup %5405 }
 0xb86   :  { %v5408_v40 = vpop.eup %5407  ;;  %v2957_v41 = vmul.f32 %v5406_v48, %v5404_v30 }
 0xb87   :  { %v2956_v39 = vmul.f32 %v5408_v40, %v6448_v13  ;;  %v5410_v23 = vpop.eup %5409 }
 0xb89   :  { %v6490_v8 = vadd.f32 %v2957_v41, %v2956_v39 }
 0xb8b   :  { %5411 = vtanh.f32 %v6490_v8 }
 0xb95   :  { %v5412_v34 = vpop.eup %5411 }
 0xb96   :  { %v2960_v14 = vmul.f32 %v5412_v34, %v5410_v23 }
 0xb98   :  { %3031 = vmatmul.mubr.f32.vlgmr.msra.gmra.mrb[22].mxu0 %v2960_v14  ;;  %3102 = vmatmul.mubr.f32.vlgmr.msra.gmra.mrb[22].mxu1 %v2960_v14 }
 0xb99   :  { %4883 = vmatpush1.bf16.msra.mxu0 %v6256_v29  ;;  %4915 = vmatpush1.bf16.msra.mxu1 %v6261_v31 }
 0xb9a   :  { %4885 = vmatprep.subr.bf16.mxu0 %v6266_v60  ;;  %4917 = vmatprep.subr.bf16.mxu1 %v6270_v6 }
 0xb9b   :  { %3205 = vmatprep.mubr.f32.mxu0 %v5642_v0  ;;  %3276 = vmatprep.mubr.f32.mxu1 %v5642_v0 }
 0xb9d   :  { %4887 = vmatpush1.bf16.msra.mxu0 %v6268_v2  ;;  %4919 = vmatpush1.bf16.msra.mxu1 %v6273_v3 }
 0xb9e   :  { %4889 = vmatprep.subr.bf16.mxu0 %v6278_v45  ;;  %4921 = vmatprep.subr.bf16.mxu1 %v6282_v36 }
 0xba1   :  { %4891 = vmatpush1.bf16.msra.mxu0 %v6280_v28  ;;  %4923 = vmatpush1.bf16.msra.mxu1 %v6285_v20 }
 0xba2   :  { %4893 = vmatprep.subr.bf16.mxu0 %v6290_v58  ;;  %4925 = vmatprep.subr.bf16.mxu1 %v6294_v42 }
 0xba5   :  { %4895 = vmatpush1.bf16.msra.mxu0 %v6292_v35  ;;  %4927 = vmatpush1.bf16.msra.mxu1 %v6297_v11 }
 0xba6   :  { %4897 = vmatprep.subr.bf16.mxu0 %v6301_v32  ;;  %4929 = vmatprep.subr.bf16.mxu1 %v6306_v7 }
 0xba9   :  { %4899 = vmatpush1.bf16.msra.mxu0 %v6303_v22  ;;  %4931 = vmatpush1.bf16.msra.mxu1 %v6309_v9 }
 0xbaa   :  { %4901 = vmatprep.subr.bf16.mxu0 %v6311_v43  ;;  %4933 = vmatprep.subr.bf16.mxu1 %v6317_v53 }
 0xbad   :  { %4903 = vmatpush1.bf16.msra.mxu0 %v6315_v51  ;;  %4935 = vmatpush1.bf16.msra.mxu1 %v6321_v1 }
 0xbae   :  { %4905 = vmatprep.subr.bf16.mxu0 %v6323_v63  ;;  %4937 = vmatprep.subr.bf16.mxu1 %v6326_v17 }
 0xbb1   :  { %4907 = vmatpush1.bf16.msra.mxu0 %v6329_v5  ;;  %4939 = vmatpush1.bf16.msra.mxu1 %v6333_v12 }
 0xbb2   :  { %4909 = vmatprep.subr.bf16.mxu0 %v6335_v25  ;;  %4941 = vmatprep.subr.bf16.mxu1 %v6341_v10 }
 0xbb5   :  { %4911 = vmatpush1.bf16.msra.mxu0 %v6343_v56  ;;  %4943 = vmatpush1.bf16.msra.mxu1 %v6346_v24 }
 0xbb6   :  { %4945 = vmatprep.subr.bf16.mxu0 %v6254_v38  ;;  %4977 = vmatprep.subr.bf16.mxu1 %v6258_v50 }
 0xc6b   :  { %v3032_v13 = vpop.f32.mrb[22].mxu0  ;;  %v3103_v46 = vpop.f32.mrb[22].mxu1 }
 0xc6c   :  { %v5166_v26 = vadd.f32 %v3032_v13, %v6394_v54  ;;  %v3034_v21 = vpop.f32.mrb[23].mxu0  ;;  %v3105_v57 = vpop.f32.mrb[23].mxu1  ;;  %v5182_v4 = vadd.f32 %v3103_v46, %v6403_v16 }
 0xc6d   :  { %v5167_v49 = vadd.f32 %v3034_v21, %v6396_v44  ;;  %v5183_v52 = vadd.f32 %v3105_v57, %v6400_v59 }
 0xc6e   :  { %v3980_v37 = vmul.f32 -1.442695, %v5166_v26 }
 0xc6f   :  { %v3981_v27 = vmul.f32 -1.442695, %v5167_v49  ;;  %v3982_v47 = vmul.f32 -1.442695, %v5183_v52 }
 0xc70   :  { %5413 = vpow2.f32 %v3980_v37 }
 0xc71   :  { %5415 = vpow2.f32 %v3981_v27 }
 0xc72   :  { %5417 = vpow2.f32 %v3982_v47 }
 0xc73   :  { %5419 = vtanh.f32 %v5182_v4 }
 0xc7a   :  { %v5414_v61 = vpop.eup %5413 }
 0xc7b   :  { %v5416_v19 = vpop.eup %5415  ;;  %v3115_v33 = vadd.f32 1.0, %v5414_v61 }
 0xc7c   :  { %v3121_v62 = vadd.f32 1.0, %v5416_v19  ;;  %v5418_v15 = vpop.eup %5417 }
 0xc7d   :  { %5421 = vrcp.f32 %v3115_v33  ;;  %v5420_v18 = vpop.eup %5419  ;;  %v3128_v41 = vadd.f32 1.0, %v5418_v15 }
 0xc7e   :  { %5423 = vrcp.f32 %v3121_v62 }
 0xc7f   :  { %5425 = vrcp.f32 %v3128_v41 }
 0xc87   :  { %v5422_v30 = vpop.eup %5421 }
 0xc88   :  { %v5424_v48 = vpop.eup %5423  ;;  %v3132_v40 = vmul.f32 %v5422_v30, %v5420_v18 }
 0xc89   :  { %v3131_v55 = vmul.f32 %v5424_v48, %v6490_v8  ;;  %v5426_v23 = vpop.eup %5425 }
 0xc8b   :  { %v6532_v39 = vadd.f32 %v3132_v40, %v3131_v55 }
 0xc8d   :  { %5427 = vtanh.f32 %v6532_v39 }
 0xc97   :  { %v5428_v34 = vpop.eup %5427 }
 0xc98   :  { %v3135_v14 = vmul.f32 %v5428_v34, %v5426_v23 }
 0xc9a   :  { %3206 = vmatmul.mubr.f32.vlgmr.msra.gmra.mrb[24].mxu0 %v3135_v14  ;;  %3277 = vmatmul.mubr.f32.vlgmr.msra.gmra.mrb[24].mxu1 %v3135_v14 }
 0xc9b   :  { %4947 = vmatpush1.bf16.msra.mxu0 %v6256_v29  ;;  %4979 = vmatpush1.bf16.msra.mxu1 %v6261_v31 }
 0xc9c   :  { %4949 = vmatprep.subr.bf16.mxu0 %v6266_v60  ;;  %4981 = vmatprep.subr.bf16.mxu1 %v6270_v6 }
 0xc9d   :  { %3380 = vmatprep.mubr.f32.mxu0 %v5642_v0  ;;  %3451 = vmatprep.mubr.f32.mxu1 %v5642_v0 }
 0xc9f   :  { %4951 = vmatpush1.bf16.msra.mxu0 %v6268_v2  ;;  %4983 = vmatpush1.bf16.msra.mxu1 %v6273_v3 }
 0xca0   :  { %4953 = vmatprep.subr.bf16.mxu0 %v6278_v45  ;;  %4985 = vmatprep.subr.bf16.mxu1 %v6282_v36 }
 0xca3   :  { %4955 = vmatpush1.bf16.msra.mxu0 %v6280_v28  ;;  %4987 = vmatpush1.bf16.msra.mxu1 %v6285_v20 }
 0xca4   :  { %4957 = vmatprep.subr.bf16.mxu0 %v6290_v58  ;;  %4989 = vmatprep.subr.bf16.mxu1 %v6294_v42 }
 0xca7   :  { %4959 = vmatpush1.bf16.msra.mxu0 %v6292_v35  ;;  %4991 = vmatpush1.bf16.msra.mxu1 %v6297_v11 }
 0xca8   :  { %4961 = vmatprep.subr.bf16.mxu0 %v6301_v32  ;;  %4993 = vmatprep.subr.bf16.mxu1 %v6306_v7 }
 0xcab   :  { %4963 = vmatpush1.bf16.msra.mxu0 %v6303_v22  ;;  %4995 = vmatpush1.bf16.msra.mxu1 %v6309_v9 }
 0xcac   :  { %4965 = vmatprep.subr.bf16.mxu0 %v6311_v43  ;;  %4997 = vmatprep.subr.bf16.mxu1 %v6317_v53 }
 0xcaf   :  { %4967 = vmatpush1.bf16.msra.mxu0 %v6315_v51  ;;  %4999 = vmatpush1.bf16.msra.mxu1 %v6321_v1 }
 0xcb0   :  { %4969 = vmatprep.subr.bf16.mxu0 %v6323_v63  ;;  %5001 = vmatprep.subr.bf16.mxu1 %v6326_v17 }
 0xcb3   :  { %4971 = vmatpush1.bf16.msra.mxu0 %v6329_v5  ;;  %5003 = vmatpush1.bf16.msra.mxu1 %v6333_v12 }
 0xcb4   :  { %4973 = vmatprep.subr.bf16.mxu0 %v6335_v25  ;;  %5005 = vmatprep.subr.bf16.mxu1 %v6341_v10 }
 0xcb7   :  { %4975 = vmatpush1.bf16.msra.mxu0 %v6343_v56  ;;  %5007 = vmatpush1.bf16.msra.mxu1 %v6346_v24 }
 0xcb8   :  { %5009 = vmatprep.subr.bf16.mxu0 %v6254_v38  ;;  %5041 = vmatprep.subr.bf16.mxu1 %v6258_v50 }
 0xd6d   :  { %v3207_v8 = vpop.f32.mrb[24].mxu0  ;;  %v3278_v13 = vpop.f32.mrb[24].mxu1 }
 0xd6e   :  { %v5168_v46 = vadd.f32 %v3207_v8, %v6394_v54  ;;  %v3209_v26 = vpop.f32.mrb[25].mxu0  ;;  %v3280_v21 = vpop.f32.mrb[25].mxu1  ;;  %v5184_v47 = vadd.f32 %v3278_v13, %v6403_v16 }
 0xd6f   :  { %v5169_v57 = vadd.f32 %v3209_v26, %v6396_v44  ;;  %v5185_v27 = vadd.f32 %v3280_v21, %v6400_v59 }
 0xd70   :  { %v3983_v49 = vmul.f32 -1.442695, %v5168_v46 }
 0xd71   :  { %v3984_v37 = vmul.f32 -1.442695, %v5169_v57  ;;  %v3985_v52 = vmul.f32 -1.442695, %v5185_v27 }
 0xd72   :  { %5429 = vpow2.f32 %v3983_v49 }
 0xd73   :  { %5431 = vpow2.f32 %v3984_v37 }
 0xd74   :  { %5433 = vpow2.f32 %v3985_v52 }
 0xd75   :  { %5435 = vtanh.f32 %v5184_v47 }
 0xd7c   :  { %v5430_v4 = vpop.eup %5429 }
 0xd7d   :  { %v5432_v61 = vpop.eup %5431  ;;  %v3290_v19 = vadd.f32 1.0, %v5430_v4 }
 0xd7e   :  { %v3296_v33 = vadd.f32 1.0, %v5432_v61  ;;  %v5434_v62 = vpop.eup %5433 }
 0xd7f   :  { %5437 = vrcp.f32 %v3290_v19  ;;  %v5436_v15 = vpop.eup %5435  ;;  %v3303_v40 = vadd.f32 1.0, %v5434_v62 }
 0xd80   :  { %5439 = vrcp.f32 %v3296_v33 }
 0xd81   :  { %5441 = vrcp.f32 %v3303_v40 }
 0xd89   :  { %v5438_v18 = vpop.eup %5437 }
 0xd8a   :  { %v5440_v30 = vpop.eup %5439  ;;  %v3307_v48 = vmul.f32 %v5438_v18, %v5436_v15 }
 0xd8b   :  { %v3306_v41 = vmul.f32 %v5440_v30, %v6532_v39  ;;  %v5442_v23 = vpop.eup %5441 }
 0xd8d   :  { %v6574_v55 = vadd.f32 %v3307_v48, %v3306_v41 }
 0xd8f   :  { %5443 = vtanh.f32 %v6574_v55 }
 0xd99   :  { %v5444_v34 = vpop.eup %5443 }
 0xd9a   :  { %v3310_v14 = vmul.f32 %v5444_v34, %v5442_v23  ;;  %v3839_v34 = vld [vmem:[#allocation12 + $0x18] sm:$0xff] }
 0xd9c   :  { %3381 = vmatmul.mubr.f32.vlgmr.msra.gmra.mrb[26].mxu0 %v3310_v14  ;;  %3452 = vmatmul.mubr.f32.vlgmr.msra.gmra.mrb[26].mxu1 %v3310_v14 }
 0xd9d   :  { %5011 = vmatpush1.bf16.msra.mxu0 %v6256_v29  ;;  %5043 = vmatpush1.bf16.msra.mxu1 %v6261_v31 }
 0xd9e   :  { %5013 = vmatprep.subr.bf16.mxu0 %v6266_v60  ;;  %5045 = vmatprep.subr.bf16.mxu1 %v6270_v6 }
 0xd9f   :  { %3555 = vmatprep.mubr.f32.mxu0 %v5642_v0  ;;  %3626 = vmatprep.mubr.f32.mxu1 %v5642_v0 }
 0xda1   :  { %5015 = vmatpush1.bf16.msra.mxu0 %v6268_v2  ;;  %5047 = vmatpush1.bf16.msra.mxu1 %v6273_v3 }
 0xda2   :  { %5017 = vmatprep.subr.bf16.mxu0 %v6278_v45  ;;  %5049 = vmatprep.subr.bf16.mxu1 %v6282_v36 }
 0xda5   :  { %5019 = vmatpush1.bf16.msra.mxu0 %v6280_v28  ;;  %5051 = vmatpush1.bf16.msra.mxu1 %v6285_v20 }
 0xda6   :  { %5021 = vmatprep.subr.bf16.mxu0 %v6290_v58  ;;  %5053 = vmatprep.subr.bf16.mxu1 %v6294_v42 }
 0xda9   :  { %5023 = vmatpush1.bf16.msra.mxu0 %v6292_v35  ;;  %5055 = vmatpush1.bf16.msra.mxu1 %v6297_v11 }
 0xdaa   :  { %5025 = vmatprep.subr.bf16.mxu0 %v6301_v32  ;;  %5057 = vmatprep.subr.bf16.mxu1 %v6306_v7 }
 0xdad   :  { %5027 = vmatpush1.bf16.msra.mxu0 %v6303_v22  ;;  %5059 = vmatpush1.bf16.msra.mxu1 %v6309_v9 }
 0xdae   :  { %5029 = vmatprep.subr.bf16.mxu0 %v6311_v43  ;;  %5061 = vmatprep.subr.bf16.mxu1 %v6317_v53 }
 0xdb1   :  { %5031 = vmatpush1.bf16.msra.mxu0 %v6315_v51  ;;  %5063 = vmatpush1.bf16.msra.mxu1 %v6321_v1 }
 0xdb2   :  { %5033 = vmatprep.subr.bf16.mxu0 %v6323_v63  ;;  %5065 = vmatprep.subr.bf16.mxu1 %v6326_v17 }
 0xdb5   :  { %5035 = vmatpush1.bf16.msra.mxu0 %v6329_v5  ;;  %5067 = vmatpush1.bf16.msra.mxu1 %v6333_v12 }
 0xdb6   :  { %5037 = vmatprep.subr.bf16.mxu0 %v6335_v25  ;;  %5069 = vmatprep.subr.bf16.mxu1 %v6341_v10 }
 0xdb9   :  { %5039 = vmatpush1.bf16.msra.mxu0 %v6343_v56  ;;  %5071 = vmatpush1.bf16.msra.mxu1 %v6346_v24 }
 0xdba   :  { %5073 = vmatprep.subr.bf16.mxu0 %v6254_v38  ;;  %5105 = vmatprep.subr.bf16.mxu1 %v6258_v50 }
 0xe6f   :  { %v3382_v39 = vpop.f32.mrb[26].mxu0  ;;  %v3453_v8 = vpop.f32.mrb[26].mxu1 }
 0xe70   :  { %v5170_v13 = vadd.f32 %v3382_v39, %v6394_v54  ;;  %v3384_v46 = vpop.f32.mrb[27].mxu0  ;;  %v3455_v26 = vpop.f32.mrb[27].mxu1  ;;  %v5186_v52 = vadd.f32 %v3453_v8, %v6403_v16  ;;  %v3840_v39 = vld [vmem:[#allocation12 + $0x20] sm:$0xff]  ;;  %v3841_v8 = vld [vmem:[#allocation12 + $0x28] sm:$0xff] }
 0xe71   :  { %v5171_v21 = vadd.f32 %v3384_v46, %v6396_v44  ;;  %v5187_v37 = vadd.f32 %v3455_v26, %v6400_v59  ;;  %v3842_v46 = vld [vmem:[#allocation12 + $0x30] sm:$0xff]  ;;  %v3843_v26 = vld [vmem:[#allocation12 + $0x38] sm:$0xff] }
 0xe72   :  { %v3986_v57 = vmul.f32 -1.442695, %v5170_v13  ;;  %v5143_v13 = vpack.c.bf16 %v3841_v8, %v3840_v39 }
 0xe73   :  { %v3987_v49 = vmul.f32 -1.442695, %v5171_v21  ;;  %v3988_v27 = vmul.f32 -1.442695, %v5187_v37  ;;  %v5146_v21 = vpack.c.bf16 %v3843_v26, %v3842_v46 }
 0xe74   :  { %5445 = vpow2.f32 %v3986_v57  ;;  %v3844_v57 = vld [vmem:[#allocation12 + $0x40] sm:$0xff] }
 0xe75   :  { %5447 = vpow2.f32 %v3987_v49  ;;  %v3845_v49 = vld [vmem:[#allocation12 + $0x48] sm:$0xff] }
 0xe76   :  { %5449 = vpow2.f32 %v3988_v27  ;;  %v5149_v37 = vpack.c.bf16 %v3845_v49, %v3844_v57  ;;  %v3846_v27 = vld [vmem:[#allocation12 + $0x50] sm:$0xff] }
 0xe77   :  { %5451 = vtanh.f32 %v5186_v52  ;;  %v3847_v52 = vld [vmem:[#allocation12 + $0x58] sm:$0xff] }
 0xe7e   :  { %v5446_v38 = vpop.eup %5445 }
 0xe7f   :  { %v5448_v47 = vpop.eup %5447  ;;  %v3465_v50 = vadd.f32 1.0, %v5446_v38  ;;  %v3848_v38 = vld [vmem:[#allocation12 + $0x60] sm:$0xff] }
 0xe80   :  { %v3471_v4 = vadd.f32 1.0, %v5448_v47  ;;  %v5450_v61 = vpop.eup %5449  ;;  %v5152_v47 = vpack.c.bf16 %v3847_v52, %v3846_v27 }
 0xe81   :  { %5453 = vrcp.f32 %v3465_v50  ;;  %v5452_v19 = vpop.eup %5451  ;;  %v3478_v18 = vadd.f32 1.0, %v5450_v61  ;;  %v3849_v50 = vld [vmem:[#allocation12 + $0x68] sm:$0xff]  ;;  %v3850_v61 = vld [vmem:[#allocation12 + $0x70] sm:$0xff] }
 0xe82   :  { %5455 = vrcp.f32 %v3471_v4  ;;  %v5155_v4 = vpack.c.bf16 %v3849_v50, %v3848_v38 }
 0xe83   :  { %5457 = vrcp.f32 %v3478_v18 }
 0xe8b   :  { %v5454_v33 = vpop.eup %5453 }
 0xe8c   :  { %v5456_v62 = vpop.eup %5455  ;;  %v3482_v15 = vmul.f32 %v5454_v33, %v5452_v19  ;;  %v3851_v19 = vld [vmem:[#allocation12 + $0x78] sm:$0xff] }
 0xe8d   :  { %v3481_v30 = vmul.f32 %v5456_v62, %v6574_v55  ;;  %v5458_v40 = vpop.eup %5457  ;;  %v3838_v55 = vld [vmem:[#allocation12 + $0x10] sm:$0xff]  ;;  %v5158_v33 = vpack.c.bf16 %v3851_v19, %v3850_v61 }
 0xe8e   :  { %v5140_v14 = vpack.c.bf16 %v3839_v34, %v3838_v55 }
 0xe8f   :  { %v6616_v48 = vadd.f32 %v3482_v15, %v3481_v30 }
 0xe91   :  { %5459 = vtanh.f32 %v6616_v48 }
 0xe9b   :  { %v5460_v41 = vpop.eup %5459 }
 0xe9c   :  { %v3485_v23 = vmul.f32 %v5460_v41, %v5458_v40 }
 0xe9e   :  { %3556 = vmatmul.mubr.f32.vlgmr.msra.gmra.mrb[28].mxu0 %v3485_v23  ;;  %3627 = vmatmul.mubr.f32.vlgmr.msra.gmra.mrb[28].mxu1 %v3485_v23 }
 0xe9f   :  { %5075 = vmatpush1.bf16.msra.mxu0 %v6256_v29  ;;  %5107 = vmatpush1.bf16.msra.mxu1 %v6261_v31 }
 0xea0   :  { %5077 = vmatprep.subr.bf16.mxu0 %v6266_v60  ;;  %5109 = vmatprep.subr.bf16.mxu1 %v6270_v6 }
 0xea1   :  { %3730 = vmatprep.mubr.f32.mxu0 %v5642_v0  ;;  %3801 = vmatprep.mubr.f32.mxu1 %v5642_v0 }
 0xea3   :  { %5079 = vmatpush1.bf16.msra.mxu0 %v6268_v2  ;;  %5111 = vmatpush1.bf16.msra.mxu1 %v6273_v3 }
 0xea4   :  { %5081 = vmatprep.subr.bf16.mxu0 %v6278_v45  ;;  %5113 = vmatprep.subr.bf16.mxu1 %v6282_v36 }
 0xea7   :  { %5083 = vmatpush1.bf16.msra.mxu0 %v6280_v28  ;;  %5115 = vmatpush1.bf16.msra.mxu1 %v6285_v20 }
 0xea8   :  { %5085 = vmatprep.subr.bf16.mxu0 %v6290_v58  ;;  %5117 = vmatprep.subr.bf16.mxu1 %v6294_v42 }
 0xeab   :  { %5087 = vmatpush1.bf16.msra.mxu0 %v6292_v35  ;;  %5119 = vmatpush1.bf16.msra.mxu1 %v6297_v11 }
 0xeac   :  { %5089 = vmatprep.subr.bf16.mxu0 %v6301_v32  ;;  %5121 = vmatprep.subr.bf16.mxu1 %v6306_v7 }
 0xeaf   :  { %5091 = vmatpush1.bf16.msra.mxu0 %v6303_v22  ;;  %5123 = vmatpush1.bf16.msra.mxu1 %v6309_v9 }
 0xeb0   :  { %5093 = vmatprep.subr.bf16.mxu0 %v6311_v43  ;;  %5125 = vmatprep.subr.bf16.mxu1 %v6317_v53 }
 0xeb3   :  { %5095 = vmatpush1.bf16.msra.mxu0 %v6315_v51  ;;  %5127 = vmatpush1.bf16.msra.mxu1 %v6321_v1 }
 0xeb4   :  { %5097 = vmatprep.subr.bf16.mxu0 %v6323_v63  ;;  %5129 = vmatprep.subr.bf16.mxu1 %v6326_v17 }
 0xeb7   :  { %5099 = vmatpush1.bf16.msra.mxu0 %v6329_v5  ;;  %5131 = vmatpush1.bf16.msra.mxu1 %v6333_v12 }
 0xeb8   :  { %5101 = vmatprep.subr.bf16.mxu0 %v6335_v25  ;;  %5133 = vmatprep.subr.bf16.mxu1 %v6341_v10  ;;  %v3836_v25 = vld [vmem:[#allocation12] sm:$0xff]  ;;  %v3837_v10 = vld [vmem:[#allocation12 + $0x8] sm:$0xff] }
 0xebb   :  { %5103 = vmatpush1.bf16.msra.mxu0 %v6343_v56  ;;  %5135 = vmatpush1.bf16.msra.mxu1 %v6346_v24  ;;  %v5137_v56 = vpack.c.bf16 %v3837_v10, %v3836_v25  ;;  %v5643_v24 = vmov 0.0|0.0  }
 0xebc   :  { %5136 = vmatprep.subr.bf16.mxu0 %v5643_v24 }
 0xf71   :  { %v3557_v29 = vpop.f32.mrb[28].mxu0  ;;  %v3628_v31 = vpop.f32.mrb[28].mxu1 }
 0xf72   :  { %v5172_v60 = vadd.f32 %v3557_v29, %v6394_v54  ;;  %v3559_v2 = vpop.f32.mrb[29].mxu0  ;;  %v3630_v6 = vpop.f32.mrb[29].mxu1  ;;  %v5188_v58 = vadd.f32 %v3628_v31, %v6403_v16 }
 0xf73   :  { %v5173_v3 = vadd.f32 %v3559_v2, %v6396_v44  ;;  %v5189_v36 = vadd.f32 %v3630_v6, %v6400_v59 }
 0xf74   :  { %v3989_v45 = vmul.f32 -1.442695, %v5172_v60 }
 0xf75   :  { %v3990_v28 = vmul.f32 -1.442695, %v5173_v3  ;;  %v3991_v20 = vmul.f32 -1.442695, %v5189_v36 }
 0xf76   :  { %5461 = vpow2.f32 %v3989_v45 }
 0xf77   :  { %5463 = vpow2.f32 %v3990_v28 }
 0xf78   :  { %5465 = vpow2.f32 %v3991_v20 }
 0xf79   :  { %5467 = vtanh.f32 %v5188_v58 }
 0xf80   :  { %v5462_v35 = vpop.eup %5461 }
 0xf81   :  { %v5464_v42 = vpop.eup %5463  ;;  %v3640_v11 = vadd.f32 1.0, %v5462_v35 }
 0xf82   :  { %v3646_v32 = vadd.f32 1.0, %v5464_v42  ;;  %v5466_v22 = vpop.eup %5465 }
 0xf83   :  { %5469 = vrcp.f32 %v3640_v11  ;;  %v5468_v7 = vpop.eup %5467  ;;  %v3653_v53 = vadd.f32 1.0, %v5466_v22  ;;  %v3995_v11 = vld [vmem:[%s6686_s6] ss:$0 sm:$0xff] }
 0xf84   :  { %5471 = vrcp.f32 %v3646_v32 }
 0xf85   :  { %5473 = vrcp.f32 %v3653_v53 }
 0xf8d   :  { %v5470_v9 = vpop.eup %5469 }
 0xf8e   :  { %v5472_v43 = vpop.eup %5471  ;;  %v3657_v51 = vmul.f32 %v5470_v9, %v5468_v7 }
 0xf8f   :  { %v3656_v1 = vmul.f32 %v5472_v43, %v6616_v48  ;;  %v5474_v17 = vpop.eup %5473 }
 0xf91   :  { %v6656_v63 = vadd.f32 %v3657_v51, %v3656_v1 }
 0xf93   :  { %5475 = vtanh.f32 %v6656_v63 }
 0xf9d   :  { %v5476_v5 = vpop.eup %5475 }
 0xf9e   :  { %v3660_v12 = vmul.f32 %v5476_v5, %v5474_v17 }
 0xfa0   :  { %3731 = vmatmul.mubr.f32.vlgmr.msra.gmra.mrb[30].mxu0 %v3660_v12  ;;  %3802 = vmatmul.mubr.f32.vlgmr.msra.gmra.mrb[30].mxu1 %v3660_v12 }
 0xfa1   :  { %5138 = vmatpush3.bf16.msra.mxu0 %v5137_v56  ;;  %4045 = vmatprep.mubr.msk.f32.mxu0 %vm5644_vm0, %v5642_v0 }
 0xfa2   :  { %5139 = vmatprep.subr.bf16.mxu0 %v5643_v24 }
 0xfa5   :  { %5141 = vmatpush3.bf16.msra.mxu0 %v5140_v14 }
 0xfa6   :  { %5142 = vmatprep.subr.bf16.mxu0 %v5643_v24 }
 0xfa9   :  { %5144 = vmatpush3.bf16.msra.mxu0 %v5143_v13 }
 0xfaa   :  { %5145 = vmatprep.subr.bf16.mxu0 %v5643_v24 }
 0xfad   :  { %5147 = vmatpush3.bf16.msra.mxu0 %v5146_v21 }
 0xfae   :  { %5148 = vmatprep.subr.bf16.mxu0 %v5643_v24 }
 0xfb1   :  { %5150 = vmatpush3.bf16.msra.mxu0 %v5149_v37 }
 0xfb2   :  { %5151 = vmatprep.subr.bf16.mxu0 %v5643_v24 }
 0xfb5   :  { %5153 = vmatpush3.bf16.msra.mxu0 %v5152_v47 }
 0xfb6   :  { %5154 = vmatprep.subr.bf16.mxu0 %v5643_v24 }
 0xfb9   :  { %5156 = vmatpush3.bf16.msra.mxu0 %v5155_v4 }
 0xfba   :  { %5157 = vmatprep.subr.bf16.mxu0 %v5643_v24 }
 0xfbd   :  { %5159 = vmatpush3.bf16.msra.mxu0 %v5158_v33 }
0x1073   :  { %v3732_v62 = vpop.f32.mrb[30].mxu0  ;;  %v3803_v15 = vpop.f32.mrb[30].mxu1 }
0x1074   :  { %v5174_v18 = vadd.f32 %v3732_v62, %v6394_v54  ;;  %v3734_v30 = vpop.f32.mrb[31].mxu0  ;;  %v3805_v48 = vpop.f32.mrb[31].mxu1  ;;  %v5190_v31 = vadd.f32 %v3803_v15, %v6403_v16 }
0x1075   :  { %v5175_v40 = vadd.f32 %v3734_v30, %v6396_v44  ;;  %v5191_v0 = vadd.f32 %v3805_v48, %v6400_v59 }
0x1076   :  { %v3992_v41 = vmul.f32 -1.442695, %v5174_v18 }
0x1077   :  { %v3993_v23 = vmul.f32 -1.442695, %v5175_v40  ;;  %v3994_v29 = vmul.f32 -1.442695, %v5191_v0 }
0x1078   :  { %5477 = vpow2.f32 %v3992_v41 }
0x1079   :  { %5479 = vpow2.f32 %v3993_v23 }
0x107a   :  { %5481 = vpow2.f32 %v3994_v29 }
0x107b   :  { %5483 = vtanh.f32 %v5190_v31 }
0x1082   :  { %v5478_v60 = vpop.eup %5477 }
0x1083   :  { %v5480_v2 = vpop.eup %5479  ;;  %v3815_v6 = vadd.f32 1.0, %v5478_v60 }
0x1084   :  { %v3821_v3 = vadd.f32 1.0, %v5480_v2  ;;  %v5482_v54 = vpop.eup %5481 }
0x1085   :  { %5485 = vrcp.f32 %v3815_v6  ;;  %v5484_v45 = vpop.eup %5483  ;;  %v3828_v20 = vadd.f32 1.0, %v5482_v54 }
0x1086   :  { %5487 = vrcp.f32 %v3821_v3 }
0x1087   :  { %5489 = vrcp.f32 %v3828_v20 }
0x108f   :  { %v5486_v44 = vpop.eup %5485 }
0x1090   :  { %v5488_v28 = vpop.eup %5487  ;;  %v3832_v36 = vmul.f32 %v5486_v44, %v5484_v45 }
0x1091   :  { %v3831_v58 = vmul.f32 %v5488_v28, %v6656_v63  ;;  %v5490_v16 = vpop.eup %5489 }
0x1093   :  { %v3833_v59 = vadd.f32 %v3832_v36, %v3831_v58 }
0x1095   :  { %5491 = vtanh.f32 %v3833_v59 }
0x109f   :  { %v5492_v35 = vpop.eup %5491 }
0x10a0   :  { %v3835_v42 = vmul.f32 %v5492_v35, %v5490_v16 }
0x10a2   :  { %4046 = vmatmul.mubr.f32.vlgmr.msra.gmra.mrb[32].mxu0 %v3835_v42 }
0x1175   :  { %v3925_v32 = vpop.f32.mrb[32].mxu0 }
0x1176   :  { %v3926_v22 = vadd.f32 %v3995_v11, %v3925_v32  ;;  %v4047_v7 = vpop.f32.mrb[33].mxu0 }
0x1178   :  { %3929 = vst [vmem:[#allocation13] sm:$0xff] %v3926_v22 }
0x1179   :  { %5614 = shalt.err (!%p5611_p2)
}
0x117a   :  { %s5615_s22 = scalar_lea.hbm %s6687_s7, 128 }
0x117b   :  { %p5616_p3 = scmp.ne.s32.totalorder %s6687_s7, %s5615_s22  ;;  %p5619_p4 = scmp.lt.u32.totalorder %s5615_s22, %s6687_s7 }
0x117d   :  { %p5621_p5 = pnand %p5619_p4, %p5616_p3 }
0x117f   :  { %5624 = shalt.err (!%p5621_p5)
}
0x1180   :  { %3939 = dma.vmem_to_hbm [thread:$0]  %s3937_s18, 128, %s6687_s7, [#allocation6]  }
0x1181   :  { %5631 = dma.done.wait [#allocation6], 128  }
0x1182   :  { %5632 = vsyncadd [#allocation6], 4294967168 }
0x1183   :  { %3943 = vsyncpa [#allocation5], 1 }
0x1184   :  { %3944 = vsyncpa [#allocation8], 1 }
0x1185   :  { %3945 = vsyncpa [#allocation11], 1 }
0x1186   :  { %3946 = vsyncpa [#allocation6], 1 }

</bundles_post_ra>
